<compile_context>
chip_gen: v7x
topology: tpu7x:2x2x1
jax: 0.10.0
libtpu: 0.0.40
codegen_flags: <defaults>
</compile_context>

<pallas_src>
import numpy as np
import jax
import jax.numpy as jnp
from jax import lax
from jax.experimental import pallas as pl
from jax.experimental.pallas import tpu as pltpu

# ---------------- model_conf (small, synthetic) ----------------
ID_VOCAB = 64          # model_conf.id_vocab
ID_DIM = 32            # model_conf.id_dimension
NHEAD = 2              # model_conf.nhead
MLP_LAYERS = 2         # model_conf.mlp_layers
FF_DIM = 4 * ID_DIM    # dim_feedforward
LN_EPS = 1e-5
NEG_INF = -1e30


def _pick_block_b():
    """Per-generation sequences-per-grid-step.

    Single-TensorCore chips (v5e / v6e): one big step, M = Bt*L = 256 matmuls
    (matches the 2x256x256 MXU, drops a ~0.35us pipeline step).
    Dual-TensorCore chips (v7x & friends): keep grid >= 2 with
    dimension_semantics=("parallel",) so both cores get work.
    """
    try:
        kind = jax.devices()[0].device_kind.lower()
    except Exception:
        return 8
    single_tc = ("lite" in kind) or ("v5e" in kind) or ("v6e" in kind)
    return 16 if single_tc else 8


BLOCK_B = _pick_block_b()


def _full_spec(shape):
    n = len(shape)
    return pl.BlockSpec(shape, lambda *args, n=n: (0,) * n)


def _ln(x, g, b):
    mu = jnp.mean(x, axis=-1, keepdims=True)
    xc = x - mu
    var = jnp.mean(xc * xc, axis=-1, keepdims=True)
    return xc * lax.rsqrt(var + LN_EPS) * g + b


# =====================================================================
# Fused kernel: seq_trans + TransformerEncoderLayer (post-norm, relu FFN,
# dropout=0) + row-gather at seq_length + branch classifier MLP + select.
# Processes BLOCK_B sequences per grid step; all linears run on [Bt*L, *]
# slabs with bf16 MXU operands and f32 accumulation.
# =====================================================================
def _encoder_kernel(x_ref, len_ref, mask_ref, sel_ref,
                    stw_ref, stb_ref,
                    qkvw_ref, qkvb_ref,
                    ow_ref, ob_ref,
                    g1_ref, be1_ref,
                    fw1_ref, fb1_ref, fw2_ref, fb2_ref,
                    g2_ref, be2_ref,
                    aw1_ref, ab1_ref, aw2_ref, ab2_ref,
                    bw1_ref, bb1_ref, bw2_ref, bb2_ref,
                    out_ref):
    Bt, L, D = x_ref.shape
    M = Bt * L
    dh = D // NHEAD

    # ---- seq_trans: Linear(D, D) + Tanh on the whole [Bt*L, D] slab ----
    x = x_ref[...].reshape(M, D).astype(jnp.bfloat16)
    h = jnp.tanh(jnp.dot(x, stw_ref[...],
                         preferred_element_type=jnp.float32) + stb_ref[...])
    h16 = h.astype(jnp.bfloat16)

    # ---- fused QKV projection: one [M, D] x [D, 3D] matmul ----
    # (1/sqrt(dh) already folded into the Q columns by the wrapper)
    qkv = jnp.dot(h16, qkvw_ref[...],
                  preferred_element_type=jnp.float32) + qkvb_ref[...]   # [M, 3D]

    # ---- block-diagonal flat attention (one [M, M] score tile per head) ----
    mask = mask_ref[...]                                 # [M, M] additive, f32
    ctxs = []
    for hd in range(NHEAD):                              # static unroll (2 heads)
        q = qkv[:, hd * dh:(hd + 1) * dh].astype(jnp.bfloat16)
        k = qkv[:, D + hd * dh:D + (hd + 1) * dh].astype(jnp.bfloat16)
        v = qkv[:, 2 * D + hd * dh:2 * D + (hd + 1) * dh].astype(jnp.bfloat16)
        s = jnp.einsum('md,nd->mn', q, k,
                       preferred_element_type=jnp.float32) + mask       # [M, M]
        s = s - jnp.max(s, axis=-1, keepdims=True)
        probs = jnp.exp(s)                               # masked entries -> 0.0
        probs = probs * pl.reciprocal(jnp.sum(probs, axis=-1, keepdims=True),
                                      approx=True)
        ctxs.append(jnp.dot(probs.astype(jnp.bfloat16), v,
                            preferred_element_type=jnp.float32))        # [M, dh]
    ctx = jnp.concatenate(ctxs, axis=-1).astype(jnp.bfloat16)           # [M, D]
    attn = jnp.dot(ctx, ow_ref[...],
                   preferred_element_type=jnp.float32) + ob_ref[...]

    # ---- residual + LayerNorm1 (f32) ----
    y = _ln(h + attn, g1_ref[...], be1_ref[...])
    y16 = y.astype(jnp.bfloat16)

    # ---- feed-forward: Linear(D, 4D) -> ReLU -> Linear(4D, D) ----
    f = jnp.maximum(jnp.dot(y16, fw1_ref[...],
                            preferred_element_type=jnp.float32) + fb1_ref[...], 0.0)
    f = jnp.dot(f.astype(jnp.bfloat16), fw2_ref[...],
                preferred_element_type=jnp.float32) + fb2_ref[...]

    # ---- residual + LayerNorm2 (f32) ----
    z = _ln(y + f, g2_ref[...], be2_ref[...])            # [M, D]

    # ---- gather the row at seq_length per sequence (exact one-hot matmul) ----
    lens = len_ref[...]                                  # [Bt, 1] int32
    rowi = lax.broadcasted_iota(jnp.int32, (Bt, M), 0)
    coli = lax.broadcasted_iota(jnp.int32, (Bt, M), 1)
    pick = (coli == rowi * L + lens).astype(jnp.float32)         # [Bt, M]
    state = jnp.dot(pick, z, preferred_element_type=jnp.float32)  # [Bt, D]
    s16 = state.astype(jnp.bfloat16)

    # ---- per-branch classifier MLP (2-layer StackedDense) + branch select ----
    ua = jnp.dot(jnp.tanh(jnp.dot(s16, aw1_ref[...],
                                  preferred_element_type=jnp.float32)
                          + ab1_ref[...]).astype(jnp.bfloat16),
                 aw2_ref[...], preferred_element_type=jnp.float32) + ab2_ref[...]
    ub = jnp.dot(jnp.tanh(jnp.dot(s16, bw1_ref[...],
                                  preferred_element_type=jnp.float32)
                          + bb1_ref[...]).astype(jnp.bfloat16),
                 bw2_ref[...], preferred_element_type=jnp.float32) + bb2_ref[...]
    sel = sel_ref[...]                                   # 1 = click, 0 = large_pred
    out_ref[...] = sel * ua + (1.0 - sel) * ub


def fused_encode_classify(x, lens, attn_mask, sel, weights, block_b):
    Bp, L, D = x.shape
    Mrows = block_b * L
    grid = (Bp // block_b,)
    in_specs = [
        pl.BlockSpec((block_b, L, D), lambda i: (i, 0, 0)),
        pl.BlockSpec((block_b, 1), lambda i: (i, 0)),
        pl.BlockSpec((Mrows, Mrows), lambda i: (i, 0)),
        pl.BlockSpec((block_b, 1), lambda i: (i, 0)),
    ] + [_full_spec(w.shape) for w in weights]
    return pl.pallas_call(
        _encoder_kernel,
        grid=grid,
        in_specs=in_specs,
        out_specs=pl.BlockSpec((block_b, D), lambda i: (i, 0)),
        out_shape=jax.ShapeDtypeStruct((Bp, D), jnp.float32),
        compiler_params=pltpu.CompilerParams(
            dimension_semantics=("parallel",)),
    )(x, lens, attn_mask, sel, *weights)


# =====================================================================
# Parameters (deterministic synthetic init; weights stored [in, out])
# =====================================================================
def init_params(key):
    ks = jax.random.split(key, 24)

    def w(k, shape, scale=0.02):
        return jax.random.normal(k, shape, jnp.float32) * scale

    p = {}
    p["id_emb"] = w(ks[0], (ID_VOCAB, ID_DIM), 0.1)     # _id_encoder
    p["pos_emb"] = w(ks[1], (ID_VOCAB, ID_DIM), 0.1)    # _position_embedding
    # _target_trans: Linear(D,D)+Tanh, Linear(D,D)
    p["tt_w1"] = w(ks[2], (ID_DIM, ID_DIM)); p["tt_b1"] = w(ks[3], (1, ID_DIM))
    p["tt_w2"] = w(ks[4], (ID_DIM, ID_DIM)); p["tt_b2"] = w(ks[5], (1, ID_DIM))
    # _seq_trans: Linear(D,D)+Tanh
    p["st_w"] = w(ks[6], (ID_DIM, ID_DIM)); p["st_b"] = w(ks[7], (1, ID_DIM))
    # _transformer (TransformerEncoderLayer)
    p["in_w"] = w(ks[8], (ID_DIM, 3 * ID_DIM)); p["in_b"] = w(ks[9], (1, 3 * ID_DIM))
    p["out_w"] = w(ks[10], (ID_DIM, ID_DIM)); p["out_b"] = w(ks[11], (1, ID_DIM))
    p["ln1_g"] = jnp.ones((1, ID_DIM), jnp.float32); p["ln1_b"] = jnp.zeros((1, ID_DIM), jnp.float32)
    p["ff_w1"] = w(ks[12], (ID_DIM, FF_DIM)); p["ff_b1"] = w(ks[13], (1, FF_DIM))
    p["ff_w2"] = w(ks[14], (FF_DIM, ID_DIM)); p["ff_b2"] = w(ks[15], (1, ID_DIM))
    p["ln2_g"] = jnp.ones((1, ID_DIM), jnp.float32); p["ln2_b"] = jnp.zeros((1, ID_DIM), jnp.float32)
    # _classifier / _classifier_large (MLP_LAYERS = 2)
    p["cl_w1"] = w(ks[16], (ID_DIM, ID_DIM)); p["cl_b1"] = w(ks[17], (1, ID_DIM))
    p["cl_w2"] = w(ks[18], (ID_DIM, ID_DIM)); p["cl_b2"] = w(ks[19], (1, ID_DIM))
    p["cll_w1"] = w(ks[20], (ID_DIM, ID_DIM)); p["cll_b1"] = w(ks[21], (1, ID_DIM))
    p["cll_w2"] = w(ks[22], (ID_DIM, ID_DIM)); p["cll_b2"] = w(ks[23], (1, ID_DIM))
    # _fusion_layer: Linear(2, 1)
    p["fus_w"] = jnp.array([[0.6, 0.4]], jnp.float32)
    p["fus_b"] = jnp.array([[0.05]], jnp.float32)
    return p


def _enc_weights(p):
    """Kernel weight list: fused QKV (1/sqrt(dh) folded into the Q columns,
    which is exact since scale = 0.25), matmul weights cast to bf16 once in
    the wrapper; biases / LayerNorm params stay f32."""
    D = ID_DIM
    dh = D // NHEAD
    scale = 1.0 / float(np.sqrt(dh))
    bf = jnp.bfloat16
    qkv_w = jnp.concatenate([p["in_w"][:, :D] * scale, p["in_w"][:, D:]], axis=1)
    qkv_b = jnp.concatenate([p["in_b"][:, :D] * scale, p["in_b"][:, D:]], axis=1)
    return [p["st_w"].astype(bf), p["st_b"],
            qkv_w.astype(bf), qkv_b,
            p["out_w"].astype(bf), p["out_b"],
            p["ln1_g"], p["ln1_b"],
            p["ff_w1"].astype(bf), p["ff_b1"],
            p["ff_w2"].astype(bf), p["ff_b2"],
            p["ln2_g"], p["ln2_b"],
            p["cl_w1"].astype(bf), p["cl_b1"],
            p["cl_w2"].astype(bf), p["cl_b2"],
            p["cll_w1"].astype(bf), p["cll_b1"],
            p["cll_w2"].astype(bf), p["cll_b2"]]


# =====================================================================
# SasRec.forward
# =====================================================================
@jax.jit
def sasrec_forward(p, target_id, click_seq, large_pred):
    B, L = click_seq.shape
    Blp, Llp = large_pred.shape

    # sequence-length bookkeeping (torch.no_grad block)
    seq_length = jnp.maximum(jnp.sum((click_seq != 0).astype(jnp.int32), axis=1) - 1, 0)
    lp_length = jnp.maximum(jnp.sum((large_pred != 0).astype(jnp.int32), axis=1) - 1, 0)

    # ---- merge both branches into one padded batch for a single encoder call ----
    lp_pad = jnp.pad(large_pred, ((0, 0), (0, L - Llp)))
    total = B + Blp
    Bp = ((total + BLOCK_B - 1) // BLOCK_B) * BLOCK_B
    pad_rows = Bp - total

    tokens = jnp.concatenate([click_seq, lp_pad], axis=0)
    tokens = jnp.pad(tokens, ((0, pad_rows), (0, 0)))
    hist = p["id_emb"][tokens] + p["pos_emb"][jnp.arange(L)][None, :, :]   # [Bp, L, D]

    lens = jnp.concatenate([seq_length, lp_length,
                            jnp.zeros((pad_rows,), jnp.int32)], axis=0)
    lens = lens.astype(jnp.int32).reshape(Bp, 1)

    # key-validity: large_pred rows only softmax over their original Llp keys
    key_valid = jnp.concatenate([
        jnp.ones((B, L), jnp.float32),
        jnp.broadcast_to((jnp.arange(L) < Llp).astype(jnp.float32)[None, :], (Blp, L)),
        jnp.ones((pad_rows, L), jnp.float32)], axis=0)
    kmask = (1.0 - key_valid) * NEG_INF                                    # [Bp, L]

    # flat block-diagonal additive attention mask, precomputed per grid step
    # (hoists the per-head broadcast out of the kernel; cross-sequence and
    # padded-key entries exp to 0 inside the kernel's flat softmax).
    nblk = Bp // BLOCK_B
    Mrows = BLOCK_B * L
    seq_of = jnp.arange(Mrows) // L
    blockdiag = jnp.where(seq_of[:, None] == seq_of[None, :], 0.0, NEG_INF)  # [M, M]
    attn_mask = (blockdiag[None, :, :] + kmask.reshape(nblk, 1, Mrows)
                 ).reshape(nblk * Mrows, Mrows)

    # which classifier each row uses: 1 -> _classifier, 0 -> _classifier_large
    sel = jnp.concatenate([jnp.ones((B, 1), jnp.float32),
                           jnp.zeros((Blp, 1), jnp.float32),
                           jnp.ones((pad_rows, 1), jnp.float32)], axis=0)

    emb = fused_encode_classify(hist, lens, attn_mask, sel, _enc_weights(p), BLOCK_B)

    user_embedding = emb[:B]                                               # [B, D]
    lp_embedding = jnp.repeat(emb[B:B + Blp], 5, axis=0)                   # repeat_interleave(5)

    # target_trans + two row-wise dot products + Linear(2,1): ~[B,32] of work,
    # left to XLA per the perf review (a grid=(1,) Pallas launch here was
    # pure fixed overhead + an extra HBM round trip of emb).
    t = p["id_emb"][target_id]
    t = jnp.tanh(t @ p["tt_w1"] + p["tt_b1"]) @ p["tt_w2"] + p["tt_b2"]
    s1 = jnp.sum(user_embedding * t, axis=1, keepdims=True)
    s2 = jnp.sum(lp_embedding * t, axis=1, keepdims=True)
    return s1 * p["fus_w"][0, 0] + s2 * p["fus_w"][0, 1] + p["fus_b"][0, 0]


# =====================================================================
# Pure-JAX f32 reference (PyTorch semantics) used as a correctness check
# =====================================================================
def _ref_encoder(x, p):
    B, L, D = x.shape
    dh = D // NHEAD
    h = jnp.tanh(x @ p["st_w"] + p["st_b"])
    qkv = h @ p["in_w"] + p["in_b"]
    q, k, v = qkv[..., :D], qkv[..., D:2 * D], qkv[..., 2 * D:]
    qh = q.reshape(B, L, NHEAD, dh).transpose(0, 2, 1, 3)
    kh = k.reshape(B, L, NHEAD, dh).transpose(0, 2, 1, 3)
    vh = v.reshape(B, L, NHEAD, dh).transpose(0, 2, 1, 3)
    s = jnp.einsum("bhld,bhmd->bhlm", qh, kh) / np.sqrt(dh)
    a = jax.nn.softmax(s, axis=-1)
    attn = jnp.einsum("bhlm,bhmd->bhld", a, vh).transpose(0, 2, 1, 3).reshape(B, L, D)
    attn = attn @ p["out_w"] + p["out_b"]

    def ln(z, g, b):
        mu = z.mean(-1, keepdims=True)
        var = ((z - mu) ** 2).mean(-1, keepdims=True)
        return (z - mu) / jnp.sqrt(var + LN_EPS) * g + b

    y = ln(h + attn, p["ln1_g"], p["ln1_b"])
    f = jnp.maximum(y @ p["ff_w1"] + p["ff_b1"], 0.0) @ p["ff_w2"] + p["ff_b2"]
    return ln(y + f, p["ln2_g"], p["ln2_b"])


def _ref_forward(p, target_id, click_seq, large_pred):
    B, L = click_seq.shape
    Blp, Llp = large_pred.shape
    t = p["id_emb"][target_id]
    t = jnp.tanh(t @ p["tt_w1"] + p["tt_b1"]) @ p["tt_w2"] + p["tt_b2"]
    seq_length = jnp.maximum(jnp.sum((click_seq != 0).astype(jnp.int32), axis=1) - 1, 0)
    lp_length = jnp.maximum(jnp.sum((large_pred != 0).astype(jnp.int32), axis=1) - 1, 0)

    hist = p["id_emb"][click_seq] + p["pos_emb"][jnp.arange(L)][None]
    u = _ref_encoder(hist, p)[jnp.arange(B), seq_length]
    u = jnp.tanh(u @ p["cl_w1"] + p["cl_b1"]) @ p["cl_w2"] + p["cl_b2"]

    lp_hist = p["id_emb"][large_pred] + p["pos_emb"][jnp.arange(Llp)][None]
    lpu = _ref_encoder(lp_hist, p)[jnp.arange(Blp), lp_length]
    lpu = jnp.tanh(lpu @ p["cll_w1"] + p["cll_b1"]) @ p["cll_w2"] + p["cll_b2"]
    lpu = jnp.repeat(lpu, 5, axis=0)

    s1 = jnp.sum(u * t, axis=1, keepdims=True)
    s2 = jnp.sum(lpu * t, axis=1, keepdims=True)
    return jnp.concatenate([s1, s2], axis=1) @ p["fus_w"].T + p["fus_b"][0]


# =====================================================================
if __name__ == "__main__":
    key = jax.random.PRNGKey(0)
    kp, k1, k2, k3 = jax.random.split(key, 4)

    params = init_params(kp)

    B_LP, L_LP = 2, 8
    B, L = 5 * B_LP, 16   # repeat_interleave(5) requires B == 5 * B_lp

    target_id = jax.random.randint(k1, (B,), 1, ID_VOCAB, dtype=jnp.int32)
    click_seq = jax.random.randint(k2, (B, L), 0, ID_VOCAB, dtype=jnp.int32)
    large_pred = jax.random.randint(k3, (B_LP, L_LP), 0, ID_VOCAB, dtype=jnp.int32)

    out = jax.block_until_ready(sasrec_forward(params, target_id, click_seq, large_pred))
    ref = jax.block_until_ready(_ref_forward(params, target_id, click_seq, large_pred))

    assert out.shape == (B, 1), out.shape
    err = float(np.max(np.abs(np.asarray(out) - np.asarray(ref))))
    assert np.allclose(np.asarray(out), np.asarray(ref), rtol=2e-3, atol=2e-3), err
    print("KERNEL_OK")
</pallas_src>

<mosaic_0001>
module attributes {stable_mosaic.version = 11 : i64} {
  func.func @_encoder_kernel(%arg0: i32, %arg1: memref<8x16x32xf32, #tpu.memory_space<vmem>>, %arg2: memref<8x1xi32, #tpu.memory_space<vmem>>, %arg3: memref<128x128xf32, #tpu.memory_space<vmem>>, %arg4: memref<8x1xf32, #tpu.memory_space<vmem>>, %arg5: memref<32x32xbf16, #tpu.memory_space<vmem>>, %arg6: memref<1x32xf32, #tpu.memory_space<vmem>>, %arg7: memref<32x96xbf16, #tpu.memory_space<vmem>>, %arg8: memref<1x96xf32, #tpu.memory_space<vmem>>, %arg9: memref<32x32xbf16, #tpu.memory_space<vmem>>, %arg10: memref<1x32xf32, #tpu.memory_space<vmem>>, %arg11: memref<1x32xf32, #tpu.memory_space<vmem>>, %arg12: memref<1x32xf32, #tpu.memory_space<vmem>>, %arg13: memref<32x128xbf16, #tpu.memory_space<vmem>>, %arg14: memref<1x128xf32, #tpu.memory_space<vmem>>, %arg15: memref<128x32xbf16, #tpu.memory_space<vmem>>, %arg16: memref<1x32xf32, #tpu.memory_space<vmem>>, %arg17: memref<1x32xf32, #tpu.memory_space<vmem>>, %arg18: memref<1x32xf32, #tpu.memory_space<vmem>>, %arg19: memref<32x32xbf16, #tpu.memory_space<vmem>>, %arg20: memref<1x32xf32, #tpu.memory_space<vmem>>, %arg21: memref<32x32xbf16, #tpu.memory_space<vmem>>, %arg22: memref<1x32xf32, #tpu.memory_space<vmem>>, %arg23: memref<32x32xbf16, #tpu.memory_space<vmem>>, %arg24: memref<1x32xf32, #tpu.memory_space<vmem>>, %arg25: memref<32x32xbf16, #tpu.memory_space<vmem>>, %arg26: memref<1x32xf32, #tpu.memory_space<vmem>>, %arg27: memref<8x32xf32, #tpu.memory_space<vmem>>) attributes {dimension_semantics = [#tpu.dimension_semantics<parallel>], iteration_bounds = array<i64: 2>, scalar_prefetch = 0 : i64, scratch_operands = 0 : i64, tpu.core_type = #tpu.core_type<tc>, window_params = [{transform_indices = @transform_0, window_bounds = array<i64: 8, 16, 32>}, {transform_indices = @transform_1, window_bounds = array<i64: 8, 1>}, {transform_indices = @transform_2, window_bounds = array<i64: 128, 128>}, {transform_indices = @transform_3, window_bounds = array<i64: 8, 1>}, {pipeline_mode = #tpu.pipeline_mode<synchronous>, transform_indices = @transform_4, window_bounds = array<i64: 32, 32>}, {pipeline_mode = #tpu.pipeline_mode<synchronous>, transform_indices = @transform_5, window_bounds = array<i64: 1, 32>}, {pipeline_mode = #tpu.pipeline_mode<synchronous>, transform_indices = @transform_6, window_bounds = array<i64: 32, 96>}, {pipeline_mode = #tpu.pipeline_mode<synchronous>, transform_indices = @transform_7, window_bounds = array<i64: 1, 96>}, {pipeline_mode = #tpu.pipeline_mode<synchronous>, transform_indices = @transform_8, window_bounds = array<i64: 32, 32>}, {pipeline_mode = #tpu.pipeline_mode<synchronous>, transform_indices = @transform_9, window_bounds = array<i64: 1, 32>}, {pipeline_mode = #tpu.pipeline_mode<synchronous>, transform_indices = @transform_10, window_bounds = array<i64: 1, 32>}, {pipeline_mode = #tpu.pipeline_mode<synchronous>, transform_indices = @transform_11, window_bounds = array<i64: 1, 32>}, {pipeline_mode = #tpu.pipeline_mode<synchronous>, transform_indices = @transform_12, window_bounds = array<i64: 32, 128>}, {pipeline_mode = #tpu.pipeline_mode<synchronous>, transform_indices = @transform_13, window_bounds = array<i64: 1, 128>}, {pipeline_mode = #tpu.pipeline_mode<synchronous>, transform_indices = @transform_14, window_bounds = array<i64: 128, 32>}, {pipeline_mode = #tpu.pipeline_mode<synchronous>, transform_indices = @transform_15, window_bounds = array<i64: 1, 32>}, {pipeline_mode = #tpu.pipeline_mode<synchronous>, transform_indices = @transform_16, window_bounds = array<i64: 1, 32>}, {pipeline_mode = #tpu.pipeline_mode<synchronous>, transform_indices = @transform_17, window_bounds = array<i64: 1, 32>}, {pipeline_mode = #tpu.pipeline_mode<synchronous>, transform_indices = @transform_18, window_bounds = array<i64: 32, 32>}, {pipeline_mode = #tpu.pipeline_mode<synchronous>, transform_indices = @transform_19, window_bounds = array<i64: 1, 32>}, {pipeline_mode = #tpu.pipeline_mode<synchronous>, transform_indices = @transform_20, window_bounds = array<i64: 32, 32>}, {pipeline_mode = #tpu.pipeline_mode<synchronous>, transform_indices = @transform_21, window_bounds = array<i64: 1, 32>}, {pipeline_mode = #tpu.pipeline_mode<synchronous>, transform_indices = @transform_22, window_bounds = array<i64: 32, 32>}, {pipeline_mode = #tpu.pipeline_mode<synchronous>, transform_indices = @transform_23, window_bounds = array<i64: 1, 32>}, {pipeline_mode = #tpu.pipeline_mode<synchronous>, transform_indices = @transform_24, window_bounds = array<i64: 32, 32>}, {pipeline_mode = #tpu.pipeline_mode<synchronous>, transform_indices = @transform_25, window_bounds = array<i64: 1, 32>}, {transform_indices = @transform_26, window_bounds = array<i64: 8, 32>}]} {
    %c0 = arith.constant 0 : index
    %c0_0 = arith.constant 0 : index
    %c0_1 = arith.constant 0 : index
    %0 = vector.load %arg1[%c0, %c0_0, %c0_1] : memref<8x16x32xf32, #tpu.memory_space<vmem>>, vector<8x16x32xf32>
    %1 = vector.shape_cast %0 : vector<8x16x32xf32> to vector<128x32xf32>
    %2 = arith.truncf %1 : vector<128x32xf32> to vector<128x32xbf16>
    %c0_2 = arith.constant 0 : index
    %c0_3 = arith.constant 0 : index
    %3 = vector.load %arg5[%c0_2, %c0_3] : memref<32x32xbf16, #tpu.memory_space<vmem>>, vector<32x32xbf16>
    %cst = arith.constant dense<0.000000e+00> : vector<128x32xf32>
    %4 = tpu.matmul %2, %3, %cst {dimension_numbers = #tpu.dot_dimension_numbers<[1], [0], [0], [1], [0, 0, 1, 1], [], []>} : vector<128x32xbf16>, vector<32x32xbf16>, vector<128x32xf32> -> vector<128x32xf32>
    %c0_4 = arith.constant 0 : index
    %c0_5 = arith.constant 0 : index
    %5 = vector.load %arg6[%c0_4, %c0_5] : memref<1x32xf32, #tpu.memory_space<vmem>>, vector<1x32xf32>
    %6 = vector.broadcast %5 : vector<1x32xf32> to vector<128x32xf32>
    %7 = arith.addf %4, %6 : vector<128x32xf32>
    %8 = math.tanh %7 : vector<128x32xf32>
    %9 = arith.truncf %8 : vector<128x32xf32> to vector<128x32xbf16>
    %c0_6 = arith.constant 0 : index
    %c0_7 = arith.constant 0 : index
    %10 = vector.load %arg7[%c0_6, %c0_7] : memref<32x96xbf16, #tpu.memory_space<vmem>>, vector<32x96xbf16>
    %cst_8 = arith.constant dense<0.000000e+00> : vector<128x96xf32>
    %11 = tpu.matmul %9, %10, %cst_8 {dimension_numbers = #tpu.dot_dimension_numbers<[1], [0], [0], [1], [0, 0, 1, 1], [], []>} : vector<128x32xbf16>, vector<32x96xbf16>, vector<128x96xf32> -> vector<128x96xf32>
    %c0_9 = arith.constant 0 : index
    %c0_10 = arith.constant 0 : index
    %12 = vector.load %arg8[%c0_9, %c0_10] : memref<1x96xf32, #tpu.memory_space<vmem>>, vector<1x96xf32>
    %13 = vector.broadcast %12 : vector<1x96xf32> to vector<128x96xf32>
    %14 = arith.addf %11, %13 : vector<128x96xf32>
    %c0_11 = arith.constant 0 : index
    %c0_12 = arith.constant 0 : index
    %15 = vector.load %arg3[%c0_11, %c0_12] : memref<128x128xf32, #tpu.memory_space<vmem>>, vector<128x128xf32>
    %16 = vector.extract_strided_slice %14 {offsets = [0, 0], sizes = [128, 16], strides = [1, 1]} : vector<128x96xf32> to vector<128x16xf32>
    %17 = arith.truncf %16 : vector<128x16xf32> to vector<128x16xbf16>
    %18 = vector.extract_strided_slice %14 {offsets = [0, 32], sizes = [128, 16], strides = [1, 1]} : vector<128x96xf32> to vector<128x16xf32>
    %19 = arith.truncf %18 : vector<128x16xf32> to vector<128x16xbf16>
    %20 = vector.extract_strided_slice %14 {offsets = [0, 64], sizes = [128, 16], strides = [1, 1]} : vector<128x96xf32> to vector<128x16xf32>
    %21 = arith.truncf %20 : vector<128x16xf32> to vector<128x16xbf16>
    "tpu.trace_start"() <{level = 10 : i32, message = "md,nd->mn"}> : () -> ()
    %cst_13 = arith.constant dense<0.000000e+00> : vector<128x128xf32>
    %22 = tpu.matmul %17, %19, %cst_13 {dimension_numbers = #tpu.dot_dimension_numbers<[1], [1], [0], [0], [0, 0, 1, 0], [], []>} : vector<128x16xbf16>, vector<128x16xbf16>, vector<128x128xf32> -> vector<128x128xf32>
    "tpu.trace_stop"() : () -> ()
    %23 = arith.addf %22, %15 : vector<128x128xf32>
    %cst_14 = arith.constant dense<0xFF800000> : vector<128xf32>
    %24 = vector.multi_reduction <maximumf>, %23, %cst_14 [1] : vector<128x128xf32> to vector<128xf32>
    %25 = vector.shape_cast %24 : vector<128xf32> to vector<128x1xf32>
    %26 = vector.broadcast %25 : vector<128x1xf32> to vector<128x128xf32>
    %27 = arith.subf %23, %26 : vector<128x128xf32>
    %28 = math.exp %27 : vector<128x128xf32>
    %cst_15 = arith.constant dense<0.000000e+00> : vector<128xf32>
    %29 = vector.multi_reduction <add>, %28, %cst_15 [1] : vector<128x128xf32> to vector<128xf32>
    %30 = vector.shape_cast %29 : vector<128xf32> to vector<128x1xf32>
    %31 = tpu.reciprocal %30 {approx = true} : vector<128x1xf32> -> vector<128x1xf32>
    %32 = vector.broadcast %31 : vector<128x1xf32> to vector<128x128xf32>
    %33 = arith.mulf %28, %32 : vector<128x128xf32>
    %34 = arith.truncf %33 : vector<128x128xf32> to vector<128x128xbf16>
    %cst_16 = arith.constant dense<0.000000e+00> : vector<128x16xf32>
    %35 = tpu.matmul %34, %21, %cst_16 {dimension_numbers = #tpu.dot_dimension_numbers<[1], [0], [0], [1], [0, 0, 1, 1], [], []>} : vector<128x128xbf16>, vector<128x16xbf16>, vector<128x16xf32> -> vector<128x16xf32>
    %36 = vector.extract_strided_slice %14 {offsets = [0, 16], sizes = [128, 16], strides = [1, 1]} : vector<128x96xf32> to vector<128x16xf32>
    %37 = arith.truncf %36 : vector<128x16xf32> to vector<128x16xbf16>
    %38 = vector.extract_strided_slice %14 {offsets = [0, 48], sizes = [128, 16], strides = [1, 1]} : vector<128x96xf32> to vector<128x16xf32>
    %39 = arith.truncf %38 : vector<128x16xf32> to vector<128x16xbf16>
    %40 = vector.extract_strided_slice %14 {offsets = [0, 80], sizes = [128, 16], strides = [1, 1]} : vector<128x96xf32> to vector<128x16xf32>
    %41 = arith.truncf %40 : vector<128x16xf32> to vector<128x16xbf16>
    "tpu.trace_start"() <{level = 10 : i32, message = "md,nd->mn"}> : () -> ()
    %cst_17 = arith.constant dense<0.000000e+00> : vector<128x128xf32>
    %42 = tpu.matmul %37, %39, %cst_17 {dimension_numbers = #tpu.dot_dimension_numbers<[1], [1], [0], [0], [0, 0, 1, 0], [], []>} : vector<128x16xbf16>, vector<128x16xbf16>, vector<128x128xf32> -> vector<128x128xf32>
    "tpu.trace_stop"() : () -> ()
    %43 = arith.addf %42, %15 : vector<128x128xf32>
    %cst_18 = arith.constant dense<0xFF800000> : vector<128xf32>
    %44 = vector.multi_reduction <maximumf>, %43, %cst_18 [1] : vector<128x128xf32> to vector<128xf32>
    %45 = vector.shape_cast %44 : vector<128xf32> to vector<128x1xf32>
    %46 = vector.broadcast %45 : vector<128x1xf32> to vector<128x128xf32>
    %47 = arith.subf %43, %46 : vector<128x128xf32>
    %48 = math.exp %47 : vector<128x128xf32>
    %cst_19 = arith.constant dense<0.000000e+00> : vector<128xf32>
    %49 = vector.multi_reduction <add>, %48, %cst_19 [1] : vector<128x128xf32> to vector<128xf32>
    %50 = vector.shape_cast %49 : vector<128xf32> to vector<128x1xf32>
    %51 = tpu.reciprocal %50 {approx = true} : vector<128x1xf32> -> vector<128x1xf32>
    %52 = vector.broadcast %51 : vector<128x1xf32> to vector<128x128xf32>
    %53 = arith.mulf %48, %52 : vector<128x128xf32>
    %54 = arith.truncf %53 : vector<128x128xf32> to vector<128x128xbf16>
    %cst_20 = arith.constant dense<0.000000e+00> : vector<128x16xf32>
    %55 = tpu.matmul %54, %41, %cst_20 {dimension_numbers = #tpu.dot_dimension_numbers<[1], [0], [0], [1], [0, 0, 1, 1], [], []>} : vector<128x128xbf16>, vector<128x16xbf16>, vector<128x16xf32> -> vector<128x16xf32>
    %56 = tpu.concatenate %35, %55 in 1 : vector<128x16xf32>, vector<128x16xf32> -> vector<128x32xf32>
    %57 = arith.truncf %56 : vector<128x32xf32> to vector<128x32xbf16>
    %c0_21 = arith.constant 0 : index
    %c0_22 = arith.constant 0 : index
    %58 = vector.load %arg9[%c0_21, %c0_22] : memref<32x32xbf16, #tpu.memory_space<vmem>>, vector<32x32xbf16>
    %cst_23 = arith.constant dense<0.000000e+00> : vector<128x32xf32>
    %59 = tpu.matmul %57, %58, %cst_23 {dimension_numbers = #tpu.dot_dimension_numbers<[1], [0], [0], [1], [0, 0, 1, 1], [], []>} : vector<128x32xbf16>, vector<32x32xbf16>, vector<128x32xf32> -> vector<128x32xf32>
    %c0_24 = arith.constant 0 : index
    %c0_25 = arith.constant 0 : index
    %60 = vector.load %arg10[%c0_24, %c0_25] : memref<1x32xf32, #tpu.memory_space<vmem>>, vector<1x32xf32>
    %61 = vector.broadcast %60 : vector<1x32xf32> to vector<128x32xf32>
    %62 = arith.addf %59, %61 : vector<128x32xf32>
    %63 = arith.addf %8, %62 : vector<128x32xf32>
    %c0_26 = arith.constant 0 : index
    %c0_27 = arith.constant 0 : index
    %64 = vector.load %arg11[%c0_26, %c0_27] : memref<1x32xf32, #tpu.memory_space<vmem>>, vector<1x32xf32>
    %c0_28 = arith.constant 0 : index
    %c0_29 = arith.constant 0 : index
    %65 = vector.load %arg12[%c0_28, %c0_29] : memref<1x32xf32, #tpu.memory_space<vmem>>, vector<1x32xf32>
    %cst_30 = arith.constant dense<0.000000e+00> : vector<128xf32>
    %66 = vector.multi_reduction <add>, %63, %cst_30 [1] : vector<128x32xf32> to vector<128xf32>
    %67 = vector.shape_cast %66 : vector<128xf32> to vector<128x1xf32>
    %cst_31 = arith.constant 3.200000e+01 : f32
    %68 = vector.broadcast %cst_31 : f32 to vector<128x1xf32>
    %69 = arith.divf %67, %68 : vector<128x1xf32>
    %70 = vector.broadcast %69 : vector<128x1xf32> to vector<128x32xf32>
    %71 = arith.subf %63, %70 : vector<128x32xf32>
    %72 = arith.mulf %71, %71 : vector<128x32xf32>
    %cst_32 = arith.constant dense<0.000000e+00> : vector<128xf32>
    %73 = vector.multi_reduction <add>, %72, %cst_32 [1] : vector<128x32xf32> to vector<128xf32>
    %74 = vector.shape_cast %73 : vector<128xf32> to vector<128x1xf32>
    %cst_33 = arith.constant 3.200000e+01 : f32
    %75 = vector.broadcast %cst_33 : f32 to vector<128x1xf32>
    %76 = arith.divf %74, %75 : vector<128x1xf32>
    %cst_34 = arith.constant 9.99999974E-6 : f32
    %77 = vector.broadcast %cst_34 : f32 to vector<128x1xf32>
    %78 = arith.addf %76, %77 : vector<128x1xf32>
    %79 = math.rsqrt %78 : vector<128x1xf32>
    %80 = vector.broadcast %79 : vector<128x1xf32> to vector<128x32xf32>
    %81 = arith.mulf %71, %80 : vector<128x32xf32>
    %82 = vector.broadcast %64 : vector<1x32xf32> to vector<128x32xf32>
    %83 = arith.mulf %81, %82 : vector<128x32xf32>
    %84 = vector.broadcast %65 : vector<1x32xf32> to vector<128x32xf32>
    %85 = arith.addf %83, %84 : vector<128x32xf32>
    %86 = arith.truncf %85 : vector<128x32xf32> to vector<128x32xbf16>
    %c0_35 = arith.constant 0 : index
    %c0_36 = arith.constant 0 : index
    %87 = vector.load %arg13[%c0_35, %c0_36] : memref<32x128xbf16, #tpu.memory_space<vmem>>, vector<32x128xbf16>
    %cst_37 = arith.constant dense<0.000000e+00> : vector<128x128xf32>
    %88 = tpu.matmul %86, %87, %cst_37 {dimension_numbers = #tpu.dot_dimension_numbers<[1], [0], [0], [1], [0, 0, 1, 1], [], []>} : vector<128x32xbf16>, vector<32x128xbf16>, vector<128x128xf32> -> vector<128x128xf32>
    %c0_38 = arith.constant 0 : index
    %c0_39 = arith.constant 0 : index
    %89 = vector.load %arg14[%c0_38, %c0_39] : memref<1x128xf32, #tpu.memory_space<vmem>>, vector<1x128xf32>
    %90 = vector.broadcast %89 : vector<1x128xf32> to vector<128x128xf32>
    %91 = arith.addf %88, %90 : vector<128x128xf32>
    %cst_40 = arith.constant 0.000000e+00 : f32
    %92 = vector.broadcast %cst_40 : f32 to vector<128x128xf32>
    %93 = arith.maximumf %91, %92 : vector<128x128xf32>
    %94 = arith.truncf %93 : vector<128x128xf32> to vector<128x128xbf16>
    %c0_41 = arith.constant 0 : index
    %c0_42 = arith.constant 0 : index
    %95 = vector.load %arg15[%c0_41, %c0_42] : memref<128x32xbf16, #tpu.memory_space<vmem>>, vector<128x32xbf16>
    %cst_43 = arith.constant dense<0.000000e+00> : vector<128x32xf32>
    %96 = tpu.matmul %94, %95, %cst_43 {dimension_numbers = #tpu.dot_dimension_numbers<[1], [0], [0], [1], [0, 0, 1, 1], [], []>} : vector<128x128xbf16>, vector<128x32xbf16>, vector<128x32xf32> -> vector<128x32xf32>
    %c0_44 = arith.constant 0 : index
    %c0_45 = arith.constant 0 : index
    %97 = vector.load %arg16[%c0_44, %c0_45] : memref<1x32xf32, #tpu.memory_space<vmem>>, vector<1x32xf32>
    %98 = vector.broadcast %97 : vector<1x32xf32> to vector<128x32xf32>
    %99 = arith.addf %96, %98 : vector<128x32xf32>
    %100 = arith.addf %85, %99 : vector<128x32xf32>
    %c0_46 = arith.constant 0 : index
    %c0_47 = arith.constant 0 : index
    %101 = vector.load %arg17[%c0_46, %c0_47] : memref<1x32xf32, #tpu.memory_space<vmem>>, vector<1x32xf32>
    %c0_48 = arith.constant 0 : index
    %c0_49 = arith.constant 0 : index
    %102 = vector.load %arg18[%c0_48, %c0_49] : memref<1x32xf32, #tpu.memory_space<vmem>>, vector<1x32xf32>
    %cst_50 = arith.constant dense<0.000000e+00> : vector<128xf32>
    %103 = vector.multi_reduction <add>, %100, %cst_50 [1] : vector<128x32xf32> to vector<128xf32>
    %104 = vector.shape_cast %103 : vector<128xf32> to vector<128x1xf32>
    %cst_51 = arith.constant 3.200000e+01 : f32
    %105 = vector.broadcast %cst_51 : f32 to vector<128x1xf32>
    %106 = arith.divf %104, %105 : vector<128x1xf32>
    %107 = vector.broadcast %106 : vector<128x1xf32> to vector<128x32xf32>
    %108 = arith.subf %100, %107 : vector<128x32xf32>
    %109 = arith.mulf %108, %108 : vector<128x32xf32>
    %cst_52 = arith.constant dense<0.000000e+00> : vector<128xf32>
    %110 = vector.multi_reduction <add>, %109, %cst_52 [1] : vector<128x32xf32> to vector<128xf32>
    %111 = vector.shape_cast %110 : vector<128xf32> to vector<128x1xf32>
    %cst_53 = arith.constant 3.200000e+01 : f32
    %112 = vector.broadcast %cst_53 : f32 to vector<128x1xf32>
    %113 = arith.divf %111, %112 : vector<128x1xf32>
    %cst_54 = arith.constant 9.99999974E-6 : f32
    %114 = vector.broadcast %cst_54 : f32 to vector<128x1xf32>
    %115 = arith.addf %113, %114 : vector<128x1xf32>
    %116 = math.rsqrt %115 : vector<128x1xf32>
    %117 = vector.broadcast %116 : vector<128x1xf32> to vector<128x32xf32>
    %118 = arith.mulf %108, %117 : vector<128x32xf32>
    %119 = vector.broadcast %101 : vector<1x32xf32> to vector<128x32xf32>
    %120 = arith.mulf %118, %119 : vector<128x32xf32>
    %121 = vector.broadcast %102 : vector<1x32xf32> to vector<128x32xf32>
    %122 = arith.addf %120, %121 : vector<128x32xf32>
    %c0_55 = arith.constant 0 : index
    %c0_56 = arith.constant 0 : index
    %123 = vector.load %arg2[%c0_55, %c0_56] : memref<8x1xi32, #tpu.memory_space<vmem>>, vector<8x1xi32>
    %124 = tpu.iota {dimensions = array<i32: 0>} : vector<8x128xi32>
    %125 = tpu.iota {dimensions = array<i32: 1>} : vector<8x128xi32>
    %c16_i32 = arith.constant 16 : i32
    %126 = vector.broadcast %c16_i32 : i32 to vector<8x128xi32>
    %127 = arith.muli %124, %126 : vector<8x128xi32>
    %128 = vector.broadcast %123 : vector<8x1xi32> to vector<8x128xi32>
    %129 = arith.addi %127, %128 : vector<8x128xi32>
    %130 = arith.cmpi eq, %125, %129 : vector<8x128xi32>
    %131 = arith.extui %130 : vector<8x128xi1> to vector<8x128xi32>
    %132 = arith.sitofp %131 : vector<8x128xi32> to vector<8x128xf32>
    %cst_57 = arith.constant dense<0.000000e+00> : vector<8x32xf32>
    %133 = tpu.matmul %132, %122, %cst_57 {dimension_numbers = #tpu.dot_dimension_numbers<[1], [0], [0], [1], [0, 0, 1, 1], [], []>} : vector<8x128xf32>, vector<128x32xf32>, vector<8x32xf32> -> vector<8x32xf32>
    %134 = arith.truncf %133 : vector<8x32xf32> to vector<8x32xbf16>
    %c0_58 = arith.constant 0 : index
    %c0_59 = arith.constant 0 : index
    %135 = vector.load %arg19[%c0_58, %c0_59] : memref<32x32xbf16, #tpu.memory_space<vmem>>, vector<32x32xbf16>
    %cst_60 = arith.constant dense<0.000000e+00> : vector<8x32xf32>
    %136 = tpu.matmul %134, %135, %cst_60 {dimension_numbers = #tpu.dot_dimension_numbers<[1], [0], [0], [1], [0, 0, 1, 1], [], []>} : vector<8x32xbf16>, vector<32x32xbf16>, vector<8x32xf32> -> vector<8x32xf32>
    %c0_61 = arith.constant 0 : index
    %c0_62 = arith.constant 0 : index
    %137 = vector.load %arg20[%c0_61, %c0_62] : memref<1x32xf32, #tpu.memory_space<vmem>>, vector<1x32xf32>
    %138 = vector.broadcast %137 : vector<1x32xf32> to vector<8x32xf32>
    %139 = arith.addf %136, %138 : vector<8x32xf32>
    %140 = math.tanh %139 : vector<8x32xf32>
    %141 = arith.truncf %140 : vector<8x32xf32> to vector<8x32xbf16>
    %c0_63 = arith.constant 0 : index
    %c0_64 = arith.constant 0 : index
    %142 = vector.load %arg21[%c0_63, %c0_64] : memref<32x32xbf16, #tpu.memory_space<vmem>>, vector<32x32xbf16>
    %cst_65 = arith.constant dense<0.000000e+00> : vector<8x32xf32>
    %143 = tpu.matmul %141, %142, %cst_65 {dimension_numbers = #tpu.dot_dimension_numbers<[1], [0], [0], [1], [0, 0, 1, 1], [], []>} : vector<8x32xbf16>, vector<32x32xbf16>, vector<8x32xf32> -> vector<8x32xf32>
    %c0_66 = arith.constant 0 : index
    %c0_67 = arith.constant 0 : index
    %144 = vector.load %arg22[%c0_66, %c0_67] : memref<1x32xf32, #tpu.memory_space<vmem>>, vector<1x32xf32>
    %145 = vector.broadcast %144 : vector<1x32xf32> to vector<8x32xf32>
    %146 = arith.addf %143, %145 : vector<8x32xf32>
    %c0_68 = arith.constant 0 : index
    %c0_69 = arith.constant 0 : index
    %147 = vector.load %arg23[%c0_68, %c0_69] : memref<32x32xbf16, #tpu.memory_space<vmem>>, vector<32x32xbf16>
    %cst_70 = arith.constant dense<0.000000e+00> : vector<8x32xf32>
    %148 = tpu.matmul %134, %147, %cst_70 {dimension_numbers = #tpu.dot_dimension_numbers<[1], [0], [0], [1], [0, 0, 1, 1], [], []>} : vector<8x32xbf16>, vector<32x32xbf16>, vector<8x32xf32> -> vector<8x32xf32>
    %c0_71 = arith.constant 0 : index
    %c0_72 = arith.constant 0 : index
    %149 = vector.load %arg24[%c0_71, %c0_72] : memref<1x32xf32, #tpu.memory_space<vmem>>, vector<1x32xf32>
    %150 = vector.broadcast %149 : vector<1x32xf32> to vector<8x32xf32>
    %151 = arith.addf %148, %150 : vector<8x32xf32>
    %152 = math.tanh %151 : vector<8x32xf32>
    %153 = arith.truncf %152 : vector<8x32xf32> to vector<8x32xbf16>
    %c0_73 = arith.constant 0 : index
    %c0_74 = arith.constant 0 : index
    %154 = vector.load %arg25[%c0_73, %c0_74] : memref<32x32xbf16, #tpu.memory_space<vmem>>, vector<32x32xbf16>
    %cst_75 = arith.constant dense<0.000000e+00> : vector<8x32xf32>
    %155 = tpu.matmul %153, %154, %cst_75 {dimension_numbers = #tpu.dot_dimension_numbers<[1], [0], [0], [1], [0, 0, 1, 1], [], []>} : vector<8x32xbf16>, vector<32x32xbf16>, vector<8x32xf32> -> vector<8x32xf32>
    %c0_76 = arith.constant 0 : index
    %c0_77 = arith.constant 0 : index
    %156 = vector.load %arg26[%c0_76, %c0_77] : memref<1x32xf32, #tpu.memory_space<vmem>>, vector<1x32xf32>
    %157 = vector.broadcast %156 : vector<1x32xf32> to vector<8x32xf32>
    %158 = arith.addf %155, %157 : vector<8x32xf32>
    %c0_78 = arith.constant 0 : index
    %c0_79 = arith.constant 0 : index
    %159 = vector.load %arg4[%c0_78, %c0_79] : memref<8x1xf32, #tpu.memory_space<vmem>>, vector<8x1xf32>
    %160 = vector.broadcast %159 : vector<8x1xf32> to vector<8x32xf32>
    %161 = arith.mulf %160, %146 : vector<8x32xf32>
    %cst_80 = arith.constant 1.000000e+00 : f32
    %162 = vector.broadcast %cst_80 : f32 to vector<8x1xf32>
    %163 = arith.subf %162, %159 : vector<8x1xf32>
    %164 = vector.broadcast %163 : vector<8x1xf32> to vector<8x32xf32>
    %165 = arith.mulf %164, %158 : vector<8x32xf32>
    %166 = arith.addf %161, %165 : vector<8x32xf32>
    %c0_81 = arith.constant 0 : index
    %c0_82 = arith.constant 0 : index
    %167 = vector.load %arg27[%c0_81, %c0_82] : memref<8x32xf32, #tpu.memory_space<vmem>>, vector<8x32xf32>
    tpu.vector_store %arg27[%c0_81, %c0_82], %166 {strides = array<i32>} : memref<8x32xf32, #tpu.memory_space<vmem>>, vector<8x32xf32>,
    return
  }
  func.func @transform_0(%arg0: i32) -> (i32, i32, i32) {
    %c0_i32 = arith.constant 0 : i32
    %c0_i32_0 = arith.constant 0 : i32
    %c0_i32_1 = arith.constant 0 : i32
    return %arg0, %c0_i32, %c0_i32_0 : i32, i32, i32
  }
  func.func @transform_1(%arg0: i32) -> (i32, i32) {
    %c0_i32 = arith.constant 0 : i32
    %c0_i32_0 = arith.constant 0 : i32
    return %arg0, %c0_i32 : i32, i32
  }
  func.func @transform_2(%arg0: i32) -> (i32, i32) {
    %c0_i32 = arith.constant 0 : i32
    %c0_i32_0 = arith.constant 0 : i32
    return %arg0, %c0_i32 : i32, i32
  }
  func.func @transform_3(%arg0: i32) -> (i32, i32) {
    %c0_i32 = arith.constant 0 : i32
    %c0_i32_0 = arith.constant 0 : i32
    return %arg0, %c0_i32 : i32, i32
  }
  func.func @transform_4(%arg0: i32) -> (i32, i32) {
    %c0_i32 = arith.constant 0 : i32
    %c0_i32_0 = arith.constant 0 : i32
    %c0_i32_1 = arith.constant 0 : i32
    return %c0_i32, %c0_i32_0 : i32, i32
  }
  func.func @transform_5(%arg0: i32) -> (i32, i32) {
    %c0_i32 = arith.constant 0 : i32
    %c0_i32_0 = arith.constant 0 : i32
    %c0_i32_1 = arith.constant 0 : i32
    return %c0_i32, %c0_i32_0 : i32, i32
  }
  func.func @transform_6(%arg0: i32) -> (i32, i32) {
    %c0_i32 = arith.constant 0 : i32
    %c0_i32_0 = arith.constant 0 : i32
    %c0_i32_1 = arith.constant 0 : i32
    return %c0_i32, %c0_i32_0 : i32, i32
  }
  func.func @transform_7(%arg0: i32) -> (i32, i32) {
    %c0_i32 = arith.constant 0 : i32
    %c0_i32_0 = arith.constant 0 : i32
    %c0_i32_1 = arith.constant 0 : i32
    return %c0_i32, %c0_i32_0 : i32, i32
  }
  func.func @transform_8(%arg0: i32) -> (i32, i32) {
    %c0_i32 = arith.constant 0 : i32
    %c0_i32_0 = arith.constant 0 : i32
    %c0_i32_1 = arith.constant 0 : i32
    return %c0_i32, %c0_i32_0 : i32, i32
  }
  func.func @transform_9(%arg0: i32) -> (i32, i32) {
    %c0_i32 = arith.constant 0 : i32
    %c0_i32_0 = arith.constant 0 : i32
    %c0_i32_1 = arith.constant 0 : i32
    return %c0_i32, %c0_i32_0 : i32, i32
  }
  func.func @transform_10(%arg0: i32) -> (i32, i32) {
    %c0_i32 = arith.constant 0 : i32
    %c0_i32_0 = arith.constant 0 : i32
    %c0_i32_1 = arith.constant 0 : i32
    return %c0_i32, %c0_i32_0 : i32, i32
  }
  func.func @transform_11(%arg0: i32) -> (i32, i32) {
    %c0_i32 = arith.constant 0 : i32
    %c0_i32_0 = arith.constant 0 : i32
    %c0_i32_1 = arith.constant 0 : i32
    return %c0_i32, %c0_i32_0 : i32, i32
  }
  func.func @transform_12(%arg0: i32) -> (i32, i32) {
    %c0_i32 = arith.constant 0 : i32
    %c0_i32_0 = arith.constant 0 : i32
    %c0_i32_1 = arith.constant 0 : i32
    return %c0_i32, %c0_i32_0 : i32, i32
  }
  func.func @transform_13(%arg0: i32) -> (i32, i32) {
    %c0_i32 = arith.constant 0 : i32
    %c0_i32_0 = arith.constant 0 : i32
    %c0_i32_1 = arith.constant 0 : i32
    return %c0_i32, %c0_i32_0 : i32, i32
  }
  func.func @transform_14(%arg0: i32) -> (i32, i32) {
    %c0_i32 = arith.constant 0 : i32
    %c0_i32_0 = arith.constant 0 : i32
    %c0_i32_1 = arith.constant 0 : i32
    return %c0_i32, %c0_i32_0 : i32, i32
  }
  func.func @transform_15(%arg0: i32) -> (i32, i32) {
    %c0_i32 = arith.constant 0 : i32
    %c0_i32_0 = arith.constant 0 : i32
    %c0_i32_1 = arith.constant 0 : i32
    return %c0_i32, %c0_i32_0 : i32, i32
  }
  func.func @transform_16(%arg0: i32) -> (i32, i32) {
    %c0_i32 = arith.constant 0 : i32
    %c0_i32_0 = arith.constant 0 : i32
    %c0_i32_1 = arith.constant 0 : i32
    return %c0_i32, %c0_i32_0 : i32, i32
  }
  func.func @transform_17(%arg0: i32) -> (i32, i32) {
    %c0_i32 = arith.constant 0 : i32
    %c0_i32_0 = arith.constant 0 : i32
    %c0_i32_1 = arith.constant 0 : i32
    return %c0_i32, %c0_i32_0 : i32, i32
  }
  func.func @transform_18(%arg0: i32) -> (i32, i32) {
    %c0_i32 = arith.constant 0 : i32
    %c0_i32_0 = arith.constant 0 : i32
    %c0_i32_1 = arith.constant 0 : i32
    return %c0_i32, %c0_i32_0 : i32, i32
  }
  func.func @transform_19(%arg0: i32) -> (i32, i32) {
    %c0_i32 = arith.constant 0 : i32
    %c0_i32_0 = arith.constant 0 : i32
    %c0_i32_1 = arith.constant 0 : i32
    return %c0_i32, %c0_i32_0 : i32, i32
  }
  func.func @transform_20(%arg0: i32) -> (i32, i32) {
    %c0_i32 = arith.constant 0 : i32
    %c0_i32_0 = arith.constant 0 : i32
    %c0_i32_1 = arith.constant 0 : i32
    return %c0_i32, %c0_i32_0 : i32, i32
  }
  func.func @transform_21(%arg0: i32) -> (i32, i32) {
    %c0_i32 = arith.constant 0 : i32
    %c0_i32_0 = arith.constant 0 : i32
    %c0_i32_1 = arith.constant 0 : i32
    return %c0_i32, %c0_i32_0 : i32, i32
  }
  func.func @transform_22(%arg0: i32) -> (i32, i32) {
    %c0_i32 = arith.constant 0 : i32
    %c0_i32_0 = arith.constant 0 : i32
    %c0_i32_1 = arith.constant 0 : i32
    return %c0_i32, %c0_i32_0 : i32, i32
  }
  func.func @transform_23(%arg0: i32) -> (i32, i32) {
    %c0_i32 = arith.constant 0 : i32
    %c0_i32_0 = arith.constant 0 : i32
    %c0_i32_1 = arith.constant 0 : i32
    return %c0_i32, %c0_i32_0 : i32, i32
  }
  func.func @transform_24(%arg0: i32) -> (i32, i32) {
    %c0_i32 = arith.constant 0 : i32
    %c0_i32_0 = arith.constant 0 : i32
    %c0_i32_1 = arith.constant 0 : i32
    return %c0_i32, %c0_i32_0 : i32, i32
  }
  func.func @transform_25(%arg0: i32) -> (i32, i32) {
    %c0_i32 = arith.constant 0 : i32
    %c0_i32_0 = arith.constant 0 : i32
    %c0_i32_1 = arith.constant 0 : i32
    return %c0_i32, %c0_i32_0 : i32, i32
  }
  func.func @transform_26(%arg0: i32) -> (i32, i32) {
    %c0_i32 = arith.constant 0 : i32
    %c0_i32_0 = arith.constant 0 : i32
    return %arg0, %c0_i32 : i32, i32
  }
}

</mosaic_0001>

<bundles_post_ra>
// kernel: sasrec_forward.1
= control target key start
LH: loop header
LB: loop body
LE: loop exit
PB: predicated region body
PF: predicated region fallthrough
CT: control target
= control target key end

     0   :  { %s4747_s27 = smov 0   ;;  %s6098_s0 = inlined_call_operand.vmem [shape: f32[16,16,32], index: 0, kind: input, shape index: {}]   ;;  %s6099_s1 = inlined_call_operand.vmem [shape: s32[16,1], index: 1, kind: input, shape index: {}]   ;;  %s6100_s2 = inlined_call_operand.vmem [shape: f32[256,128], index: 2, kind: input, shape index: {}]   ;;  %s6101_s3 = inlined_call_operand.vmem [shape: f32[16,1], index: 3, kind: input, shape index: {}]   ;;  %s6102_s4 = inlined_call_operand.vmem [shape: bf16[32,32], index: 4, kind: input, shape index: {}]   ;;  %s6103_s5 = inlined_call_operand.vmem [shape: f32[1,32], index: 5, kind: input, shape index: {}]   ;;  %s6104_s6 = inlined_call_operand.vmem [shape: bf16[32,96], index: 6, kind: input, shape index: {}]   ;;  %s6105_s7 = inlined_call_operand.vmem [shape: f32[1,96], index: 7, kind: input, shape index: {}]   ;;  %s6106_s8 = inlined_call_operand.vmem [shape: bf16[32,32], index: 8, kind: input, shape index: {}]   ;;  %s6107_s9 = inlined_call_operand.vmem [shape: f32[1,32], index: 9, kind: input, shape index: {}]   ;;  %s6108_s10 = inlined_call_operand.vmem [shape: f32[1,32], index: 10, kind: input, shape index: {}]   ;;  %s6109_s11 = inlined_call_operand.vmem [shape: f32[1,32], index: 11, kind: input, shape index: {}]   ;;  %s6110_s12 = inlined_call_operand.vmem [shape: bf16[32,128], index: 12, kind: input, shape index: {}]   ;;  %s6111_s13 = inlined_call_operand.vmem [shape: f32[1,128], index: 13, kind: input, shape index: {}]   ;;  %s6112_s14 = inlined_call_operand.vmem [shape: bf16[128,32], index: 14, kind: input, shape index: {}]   ;;  %s6113_s15 = inlined_call_operand.vmem [shape: f32[1,32], index: 15, kind: input, shape index: {}]   ;;  %s6114_s16 = inlined_call_operand.vmem [shape: f32[1,32], index: 16, kind: input, shape index: {}]   ;;  %s6115_s17 = inlined_call_operand.vmem [shape: f32[1,32], index: 17, kind: input, shape index: {}]   ;;  %s6116_s18 = inlined_call_operand.vmem [shape: bf16[32,32], index: 18, kind: input, shape index: {}]   ;;  %s6117_s19 = inlined_call_operand.vmem [shape: f32[1,32], index: 19, kind: input, shape index: {}]   ;;  %s6118_s20 = inlined_call_operand.vmem [shape: bf16[32,32], index: 20, kind: input, shape index: {}]   ;;  %s6119_s21 = inlined_call_operand.vmem [shape: f32[1,32], index: 21, kind: input, shape index: {}]   ;;  %s6120_s22 = inlined_call_operand.vmem [shape: bf16[32,32], index: 22, kind: input, shape index: {}]   ;;  %s6121_s23 = inlined_call_operand.vmem [shape: f32[1,32], index: 23, kind: input, shape index: {}]   ;;  %s6122_s24 = inlined_call_operand.vmem [shape: bf16[32,32], index: 24, kind: input, shape index: {}]   ;;  %s6123_s25 = inlined_call_operand.vmem [shape: f32[1,32], index: 25, kind: input, shape index: {}]   ;;  %s6124_s26 = inlined_call_operand.vmem [shape: f32[16,32], index: 26, kind: output, shape index: {}]  }
   0x1   :  { %6139 = sst [smem:[#allocation13_spill]] %s6098_s0 }
   0x2   :  { %6140 = sst [smem:[#allocation14_spill]] %s6099_s1 }
   0x3   :  { %6141 = sst [smem:[#allocation15_spill]] %s6100_s2 }
   0x4   :  { %6142 = sst [smem:[#allocation16_spill]] %s6101_s3 }
   0x5   :  { %6143 = sst [smem:[#allocation17_spill]] %s6102_s4 }
   0x6   :  { %6144 = sst [smem:[#allocation18_spill]] %s6103_s5 }
   0x7   :  { %6145 = sst [smem:[#allocation19_spill]] %s6104_s6 }
   0x8   :  { %6146 = sst [smem:[#allocation20_spill]] %s6105_s7 }
   0x9   :  { %6147 = sst [smem:[#allocation21_spill]] %s6106_s8 }
   0xa   :  { %6148 = sst [smem:[#allocation22_spill]] %s6107_s9 }
   0xb   :  { %6149 = sst [smem:[#allocation23_spill]] %s6108_s10 }
   0xc LB: > { %s4753_s3 = sadd.s32 4294967295, %s4599_s27   ;;  %p3681_p0 = scmp.ge.s32.totalorder %s4599_s27, 1  ;;  %s4599_s27 = sphi %s4747_s27, %s36_s27  }
   0xd   : > { %p743_p1 = scmp.lt.s32.totalorder %s4599_s27, 3 }
   0xf   : > { %p744_p2 = pnand %p3681_p0, %p743_p1 }
  0x11   : > { %747 = sbr.rel (%p744_p2) target bundleno = 4494 (0x118e), region = 124 }
  0x18   : > { %s6150_s8 = sld [smem:[#allocation17_spill]]  ;;  %s3682_s4 = sshll.u32 %s4753_s3, 3  ;;  %vm899_vm0 = vcmask 261120   ;;  %vm1237_vm1 = vcmask 130048   ;;  %vm4609_vm2 = vmmov 0  }
  0x19   : > { %p827_p3 = scmp.lt.s32.totalorder %s3682_s4, 15  ;;  %s6151_s5 = sld [smem:[#allocation13_spill]] }
  0x1a   : > { %s6152_s7 = sld [smem:[#allocation19_spill]]  ;;  %s4602_s6 = smov 64  }
  0x1b   : > { %s6184_s4 = smov (!%p827_p3, %s3682_s4), 15  ;;  %s3686_s1 = sshll.u32 %s4753_s3, 4 }
  0x1c   : > { %s3783_s9 = sshll.u32 %s6184_s4, 4  ;;  %p838_p4 = scmp.lt.s32.totalorder %s3686_s1, 31 }
  0x1d   : > { %s6166_s0 = sld [smem:[#allocation15_spill]]  ;;  %s4603_s30 = smov 80  }
  0x1e   : > { %v4341_v0 = vld [vmem:[%s6150_s8] sm:$0xff]   ;;  %v4342_v1 = vld [vmem:[%s6150_s8 + $0x8] sm:$0xff]   ;;  %s6186_s1 = smov (!%p838_p4, %s3686_s1), 31  ;;  %s4604_s2 = smov 112  }
  0x1f   : > { %3933 = vmatprep.subr.bf16.mxu0 %v4341_v0  ;;  %s4767_s10 = scalar_lea.vmem %s6151_s5, %s3783_s9  ;;  %s6153_s9 = sld [smem:[#allocation18_spill]] }
  0x20   : > { %3934 = vmatpush3.bf16.msra.mxu0 %v4341_v0  ;;  %v852_v2 = vld [vmem:[%s4767_s10] sm:$0xff]  ;;  %v853_v3 = vld [vmem:[%s4767_s10 + $0x8] sm:$0xff]  ;;  %v854_v4 = vld [vmem:[%s4767_s10 + $0x10] sm:$0xff]  ;;  %s6165_s5 = sld [smem:[#allocation20_spill]]  ;;  %s3687_s28 = sshll.u32 %s6186_s1, 3 }
  0x21   : > { %3935 = vmatprep.subr.bf16.mxu0 %v4342_v1  ;;  %v868_v5 = vpack.c.bf16 %v853_v3, %v852_v2  ;;  %v855_v6 = vld [vmem:[%s4767_s10 + $0x18] sm:$0xff]  ;;  %v856_v7 = vld [vmem:[%s4767_s10 + $0x20] sm:$0xff]  ;;  %v857_v8 = vld [vmem:[%s4767_s10 + $0x28] sm:$0xff]  ;;  %s6167_s1 = sld [smem:[#allocation21_spill]]  ;;  %s4606_s29 = smov 16  }
  0x22   : > { %v869_v9 = vpack.c.bf16 %v855_v6, %v854_v4  ;;  %v870_v10 = vpack.c.bf16 %v857_v8, %v856_v7  ;;  %v858_v11 = vld [vmem:[%s4767_s10 + $0x30] sm:$0xff]  ;;  %v859_v12 = vld [vmem:[%s4767_s10 + $0x38] sm:$0xff]  ;;  %v860_v13 = vld [vmem:[%s4767_s10 + $0x40] sm:$0xff]  ;;  %p833_p5 = scmp.lt.s32.totalorder %s4753_s3, 1 }
  0x23   : > { %3937 = vmatprep.mubr.msk.bf16.mxu0 %vm899_vm0, %v868_v5  ;;  %v861_v14 = vld [vmem:[%s4767_s10 + $0x48] sm:$0xff]  ;;  %v871_v15 = vpack.c.bf16 %v859_v12, %v858_v11  ;;  %v862_v17 = vld [vmem:[%s4767_s10 + $0x50] sm:$0xff]  ;;  %v863_v18 = vld [vmem:[%s4767_s10 + $0x58] sm:$0xff] }
  0x24   : > { %3936 = vmatpush3.bf16.msra.mxu0 %v4342_v1  ;;  %v872_v16 = vpack.c.bf16 %v861_v14, %v860_v13  ;;  %v864_v19 = vld [vmem:[%s4767_s10 + $0x60] sm:$0xff]  ;;  %v865_v20 = vld [vmem:[%s4767_s10 + $0x68] sm:$0xff]  ;;  %v873_v21 = vpack.c.bf16 %v863_v18, %v862_v17  ;;  %v866_v23 = vld [vmem:[%s4767_s10 + $0x70] sm:$0xff]  ;;  %s6188_s3 = smov (!%p833_p5, %s4753_s3), 1 }
  0x25   : > { %v874_v22 = vpack.c.bf16 %v865_v20, %v864_v19  ;;  %v867_v24 = vld [vmem:[%s4767_s10 + $0x78] sm:$0xff]  ;;  %v4343_v26 = vld [vmem:[%s6152_s7] sm:$0xff]   ;;  %v4344_v27 = vld [vmem:[%s6152_s7 + $0x8] sm:$0xff]   ;;  %s4601_s10 = smov 96  }
  0x26   : > { %v875_v25 = vpack.c.bf16 %v867_v24, %v866_v23  ;;  %3953 = vmatprep.subr.bf16.mxu1 %v4343_v26  ;;  %v3690_v28 = vld [vmem:[%s6153_s9] ss:$0 sm:$0xff]  ;;  %s4937_s9 = scalar_lea.vmem %s6166_s0, %s3687_s28  ;;  %s6182_s0 = sld [smem:[#allocation16_spill]] }
  0x27   : > { %3938 = vmatmul.mubr.msk.bf16.vlgmr.msra.gmra.mrb[0].mxu0 %vm899_vm0, %v869_v9  ;;  %3954 = vmatpush3.bf16.msra.mxu1 %v4343_v26 }
  0x28   : > { %3941 = vmatprep.mubr.msk.bf16.mxu0 %vm899_vm0, %v870_v10  ;;  %3955 = vmatprep.subr.bf16.mxu1 %v4344_v27 }
  0x2b   : > { %3956 = vmatpush3.bf16.msra.mxu1 %v4344_v27 }
  0x2f   : > { %3942 = vmatmul.mubr.msk.bf16.gmra.mrb[4].mxu0 %vm899_vm0, %v871_v15 }
  0x30   : > { %3945 = vmatprep.mubr.msk.bf16.mxu0 %vm899_vm0, %v872_v16 }
  0x37   : > { %3946 = vmatmul.mubr.msk.bf16.gmra.mrb[8].mxu0 %vm899_vm0, %v873_v21 }
  0x38   : > { %3949 = vmatprep.mubr.msk.bf16.mxu0 %vm899_vm0, %v874_v22  ;;  %v3701_v22 = vld [vmem:[%s6165_s5] ss:$0 sm:$0xff]  ;;  %s4605_s5 = smov 48  }
  0x3f   : > { %3950 = vmatmul.mubr.msk.bf16.gmra.mrb[12].mxu0 %vm899_vm0, %v875_v25 }
  0xfa   : > { %v3939_v29 = vpop.f32.mrb[0].mxu0 }
  0xfb   : > { %v958_v30 = vpop.f32.mrb[1].mxu0  ;;  %v967_v33 = vadd.f32 %v3939_v29, %v3690_v28 }
  0xfc   : > { %v959_v31 = vadd.f32 %v3690_v28, %v958_v30  ;;  %v3940_v32 = vpop.f32.mrb[2].mxu0 }
  0xfd   : > { %v970_v34 = vadd.f32 %v3940_v32, %v3690_v28  ;;  %v961_v35 = vpop.f32.mrb[3].mxu0 }
  0xfe   : > { %4365 = vtanh.f32 %v959_v31  ;;  %v962_v36 = vadd.f32 %v3690_v28, %v961_v35 }
  0xff   : > { %4367 = vtanh.f32 %v970_v34 }
 0x100   : > { %4369 = vtanh.f32 %v962_v36 }
 0x101   : > { %4371 = vtanh.f32 %v967_v33 }
 0x102   : > { %v3943_v37 = vpop.f32.mrb[4].mxu0 }
 0x103   : > { %v983_v38 = vadd.f32 %v3943_v37, %v3690_v28  ;;  %v974_v39 = vpop.f32.mrb[5].mxu0 }
 0x104   : > { %v975_v40 = vadd.f32 %v3690_v28, %v974_v39  ;;  %v3944_v41 = vpop.f32.mrb[6].mxu0 }
 0x105   : > { %4373 = vtanh.f32 %v983_v38  ;;  %v986_v42 = vadd.f32 %v3944_v41, %v3690_v28  ;;  %v977_v43 = vpop.f32.mrb[7].mxu0 }
 0x106   : > { %4375 = vtanh.f32 %v975_v40  ;;  %v978_v44 = vadd.f32 %v3690_v28, %v977_v43 }
 0x107   : > { %4377 = vtanh.f32 %v986_v42 }
 0x108   : > { %v4802_v45 = vpop.eup %4365  ;;  %4379 = vtanh.f32 %v978_v44 }
 0x109   : > { %v4804_v46 = vpop.eup %4367 }
 0x10a   : > { %v4806_v47 = vpop.eup %4369  ;;  %v3947_v48 = vpop.f32.mrb[8].mxu0 }
 0x10b   : > { %v4808_v49 = vpop.eup %4371  ;;  %v999_v50 = vadd.f32 %v3947_v48, %v3690_v28  ;;  %v990_v51 = vpop.f32.mrb[9].mxu0  ;;  %v1037_v52 = vpack.c.bf16 %v4806_v47, %v4802_v45 }
 0x10c   : > { %v991_v53 = vadd.f32 %v3690_v28, %v990_v51  ;;  %v3948_v54 = vpop.f32.mrb[10].mxu0  ;;  %v1038_v55 = vpack.c.bf16 %v4804_v46, %v4808_v49 }
 0x10d   : > { %4381 = vtanh.f32 %v999_v50  ;;  %v1002_v56 = vadd.f32 %v3948_v54, %v3690_v28  ;;  %v993_v57 = vpop.f32.mrb[11].mxu0  ;;  %3957 = vmatprep.mubr.msk.bf16.mxu1 %vm899_vm0, %v1037_v52 }
 0x10e   : > { %4383 = vtanh.f32 %v991_v53  ;;  %v994_v58 = vadd.f32 %v3690_v28, %v993_v57  ;;  %3958 = vmatmul.mubr.msk.bf16.vlgmr.msra.gmra.mrb[0].mxu1 %vm899_vm0, %v1038_v55 }
 0x10f   : > { %v4816_v59 = vpop.eup %4373  ;;  %4385 = vtanh.f32 %v1002_v56 }
 0x110   : > { %6154 = vst [vmem:[#allocation2_spill] sm:$0xff] %v4816_v59  ;;  %v4818_v60 = vpop.eup %4375  ;;  %4387 = vtanh.f32 %v994_v58 }
 0x111   : > { %v4820_v61 = vpop.eup %4377 }
 0x112   : > { %6155 = vst [vmem:[#allocation3_spill] sm:$0xff] %v4820_v61  ;;  %v4822_v62 = vpop.eup %4379  ;;  %v3951_v63 = vpop.f32.mrb[12].mxu0  ;;  %v1040_v0 = vpack.c.bf16 %v4820_v61, %v4816_v59 }
 0x113   : > { %6156 = vst [vmem:[#allocation4_spill] sm:$0xff] %v4822_v62  ;;  %v1015_v1 = vadd.f32 %v3951_v63, %v3690_v28  ;;  %v1006_v2 = vpop.f32.mrb[13].mxu0  ;;  %v1039_v3 = vpack.c.bf16 %v4822_v62, %v4818_v60 }
 0x114   : > { %v1007_v4 = vadd.f32 %v3690_v28, %v1006_v2  ;;  %v3952_v5 = vpop.f32.mrb[14].mxu0 }
 0x115   : > { %4389 = vtanh.f32 %v1015_v1  ;;  %v1018_v6 = vadd.f32 %v3952_v5, %v3690_v28  ;;  %v1009_v7 = vpop.f32.mrb[15].mxu0  ;;  %3961 = vmatprep.mubr.msk.bf16.mxu1 %vm899_vm0, %v1039_v3 }
 0x116   : > { %4391 = vtanh.f32 %v1007_v4  ;;  %v1010_v8 = vadd.f32 %v3690_v28, %v1009_v7  ;;  %3962 = vmatmul.mubr.msk.bf16.gmra.mrb[4].mxu1 %vm899_vm0, %v1040_v0 }
 0x117   : > { %v4830_v9 = vpop.eup %4381  ;;  %4393 = vtanh.f32 %v1018_v6 }
 0x118   : > { %6157 = vst [vmem:[#allocation5_spill] sm:$0xff] %v4830_v9  ;;  %v4832_v10 = vpop.eup %4383  ;;  %4395 = vtanh.f32 %v1010_v8 }
 0x119   : > { %6158 = vst [vmem:[#allocation6_spill] sm:$0xff] %v4832_v10  ;;  %v4834_v11 = vpop.eup %4385 }
 0x11a   : > { %6159 = vst [vmem:[#allocation7_spill] sm:$0xff] %v4834_v11  ;;  %v4836_v12 = vpop.eup %4387  ;;  %v1042_v13 = vpack.c.bf16 %v4834_v11, %v4830_v9 }
 0x11b   : > { %6160 = vst [vmem:[#allocation8_spill] sm:$0xff] %v4836_v12  ;;  %v1041_v14 = vpack.c.bf16 %v4836_v12, %v4832_v10 }
 0x11d   : > { %3965 = vmatprep.mubr.msk.bf16.mxu1 %vm899_vm0, %v1041_v14 }
 0x11e   : > { %3966 = vmatmul.mubr.msk.bf16.gmra.mrb[8].mxu1 %vm899_vm0, %v1042_v13 }
 0x11f   : > { %v4844_v15 = vpop.eup %4389 }
 0x120   : > { %6161 = vst [vmem:[#allocation9_spill] sm:$0xff] %v4844_v15  ;;  %v4846_v16 = vpop.eup %4391 }
 0x121   : > { %6162 = vst [vmem:[#allocation10_spill] sm:$0xff] %v4846_v16  ;;  %v4848_v17 = vpop.eup %4393 }
 0x122   : > { %6163 = vst [vmem:[#allocation11_spill] sm:$0xff] %v4848_v17  ;;  %v4850_v18 = vpop.eup %4395  ;;  %v1044_v19 = vpack.c.bf16 %v4848_v17, %v4844_v15 }
 0x123   : > { %6164 = vst [vmem:[#allocation12_spill] sm:$0xff] %v4850_v18  ;;  %v1043_v20 = vpack.c.bf16 %v4850_v18, %v4846_v16 }
 0x125   : > { %3969 = vmatprep.mubr.msk.bf16.mxu1 %vm899_vm0, %v1043_v20 }
 0x126   : > { %3970 = vmatmul.mubr.msk.bf16.gmra.mrb[12].mxu1 %vm899_vm0, %v1044_v19 }
 0x1e1   : > { %v3959_v21 = vpop.f32.mrb[0].mxu1 }
 0x1e2   : > { %v1126_v23 = vpop.f32.mrb[1].mxu1  ;;  %v1135_v25 = vadd.f32 %v3959_v21, %v3701_v22 }
 0x1e3   : > { %v3960_v24 = vpop.f32.mrb[2].mxu1  ;;  %v1127_v28 = vadd.f32 %v3701_v22, %v1126_v23 }
 0x1e4   : > { %v1138_v26 = vadd.f32 %v3960_v24, %v3701_v22  ;;  %v1129_v27 = vpop.f32.mrb[3].mxu1 }
 0x1e5   : > { %v1130_v29 = vadd.f32 %v3701_v22, %v1129_v27 }
 0x1e6   : > { %v4861_v30 = vpack.c.bf16 %v1138_v26, %v1135_v25 }
 0x1e7   : > { %v4863_v31 = vpack.c.bf16 %v1130_v29, %v1127_v28 }
 0x1e9   : > { %v3963_v32 = vpop.f32.mrb[4].mxu1  ;;  %1221 = vrot.lane.b32.xlu0 %v4863_v31, %s4601_s10  ;;  %3989 = vmatprep.mubr.msk.bf16.mxu0 %vm1237_vm1, %v4863_v31 }
 0x1ea   : > { %v1151_v33 = vadd.f32 %v3963_v32, %v3701_v22  ;;  %v1142_v34 = vpop.f32.mrb[5].mxu1 }
 0x1eb   : > { %v1143_v35 = vadd.f32 %v3701_v22, %v1142_v34  ;;  %v3964_v36 = vpop.f32.mrb[6].mxu1 }
 0x1ec   : > { %v1154_v37 = vadd.f32 %v3964_v36, %v3701_v22  ;;  %v1145_v38 = vpop.f32.mrb[7].mxu1 }
 0x1ed   : > { %v1146_v39 = vadd.f32 %v3701_v22, %v1145_v38  ;;  %1223 = vrot.lane.b32.xlu0 %v4861_v30, %s4601_s10 }
 0x1ee   : > { %v4871_v40 = vpack.c.bf16 %v1154_v37, %v1151_v33 }
 0x1ef   : > { %v4873_v41 = vpack.c.bf16 %v1146_v39, %v1143_v35 }
 0x1f1   : > { %1225 = vrot.lane.b32.xlu1 %v4873_v41, %s4601_s10  ;;  %v3967_v42 = vpop.f32.mrb[8].mxu1 }
 0x1f2   : > { %v1167_v43 = vadd.f32 %v3967_v42, %v3701_v22  ;;  %v1158_v44 = vpop.f32.mrb[9].mxu1  ;;  %v4940_v42 = vld [vmem:[%s4937_s9 + $0x10] sm:$0xff] }
 0x1f3   : > { %v1159_v48 = vadd.f32 %v3701_v22, %v1158_v44  ;;  %v3968_v50 = vpop.f32.mrb[10].mxu1 }
 0x1f4   : > { %v1170_v51 = vadd.f32 %v3968_v50, %v3701_v22  ;;  %v1161_v52 = vpop.f32.mrb[11].mxu1  ;;  %v4946_v50 = vld [vmem:[%s4937_s9 + $0x8] sm:$0xff] }
 0x1f5   : > { %1227 = vrot.lane.b32.xlu1 %v4871_v40, %s4601_s10  ;;  %v1162_v53 = vadd.f32 %v3701_v22, %v1161_v52 }
 0x1f6   : > { %v4879_v54 = vpack.c.bf16 %v1170_v51, %v1167_v43  ;;  %v4949_v51 = vld [vmem:[%s4937_s9] sm:$0xff] }
 0x1f7   : > { %v4881_v55 = vpack.c.bf16 %v1162_v53, %v1159_v48 }
 0x1f9   : > { %v3971_v56 = vpop.f32.mrb[12].mxu1  ;;  %1231 = vrot.lane.b32.xlu1 %v4879_v54, %s4601_s10  ;;  %1229 = vrot.lane.b32.xlu0 %v4881_v55, %s4601_s10 }
 0x1fa   : > { %v1183_v57 = vadd.f32 %v3971_v56, %v3701_v22  ;;  %v1174_v58 = vpop.f32.mrb[13].mxu1 }
 0x1fb   : > { %v1175_v63 = vadd.f32 %v3701_v22, %v1174_v58  ;;  %v3972_v0 = vpop.f32.mrb[14].mxu1  ;;  %v4959_v58 = vld [vmem:[%s4937_s9 + $0x18] sm:$0xff] }
 0x1fc   : > { %v1186_v1 = vadd.f32 %v3972_v0, %v3701_v22  ;;  %v1177_v2 = vpop.f32.mrb[15].mxu1 }
 0x1fd   : > { %v1178_v3 = vadd.f32 %v3701_v22, %v1177_v2 }
 0x1fe   : > { %v4887_v4 = vpack.c.bf16 %v1186_v1, %v1183_v57 }
 0x1ff   : > { %v4889_v5 = vpack.c.bf16 %v1178_v3, %v1175_v63 }
 0x200   : > { %1235 = vrot.lane.b32.xlu1 %v4887_v4, %s4601_s10 }
 0x201   : > { %1233 = vrot.lane.b32.xlu0 %v4889_v5, %s4601_s10  ;;  %s6181_s10 = sld [smem:[#allocation14_spill]] }
 0x204   : > { %1535 = vrot.lane.b32.xlu1 %v4863_v31, %s4602_s6 }
 0x205   : > { %1537 = vrot.lane.b32.xlu0 %v4861_v30, %s4602_s6 }
 0x208   : > { %1539 = vrot.lane.b32.xlu1 %v4873_v41, %s4602_s6 }
 0x209   : > { %1541 = vrot.lane.b32.xlu0 %v4871_v40, %s4602_s6 }
 0x20c   : > { %1543 = vrot.lane.b32.xlu1 %v4881_v55, %s4602_s6 }
 0x210   : > { %1545 = vrot.lane.b32.xlu1 %v4879_v54, %s4602_s6 }
 0x214   : > { %1549 = vrot.lane.b32.xlu1 %v4887_v4, %s4602_s6 }
 0x218   : > { %1547 = vrot.lane.b32.xlu1 %v4889_v5, %s4602_s6 }
 0x25b   : > { %v1222_v6 = vpop.permute.xlu0 %1221 }
 0x25c   : > { %4264 = vmatprep.subr.msk.bf16.mxu0 %vm1237_vm1, %v1222_v6  ;;  %v1263_v7 = vsel %vm1237_vm1, %v1222_v6, 0 }
 0x25d   : > { %3974 = vmatpush3.bf16.xpose.msra.mxu0 %v1263_v7 }
 0x25f   : > { %v1224_v8 = vpop.permute.xlu0 %1223 }
 0x260   : > { %4265 = vmatprep.subr.msk.bf16.mxu0 %vm1237_vm1, %v1224_v8  ;;  %v1266_v14 = vsel %vm1237_vm1, %v1224_v8, 0 }
 0x263   : > { %v1226_v13 = vpop.permute.xlu1 %1225 }
 0x264   : > { %v1269_v20 = vsel %vm1237_vm1, %v1226_v13, 0 }
 0x265   : > { %3976 = vmatpush3.bf16.xpose.msra.mxu0 %v1266_v14 }
 0x266   : > { %4266 = vmatprep.subr.msk.bf16.mxu0 %vm1237_vm1, %v1226_v13 }
 0x267   : > { %v1228_v19 = vpop.permute.xlu1 %1227 }
 0x268   : > { %v1272_v25 = vsel %vm1237_vm1, %v1228_v19, 0 }
 0x26b   : > { %v1232_v21 = vpop.permute.xlu1 %1231  ;;  %v1230_v22 = vpop.permute.xlu0 %1229 }
 0x26c   : > { %v1275_v29 = vsel %vm1237_vm1, %v1230_v22, 0  ;;  %v1278_v35 = vsel %vm1237_vm1, %v1232_v21, 0 }
 0x26d   : > { %3978 = vmatpush3.bf16.xpose.msra.mxu0 %v1269_v20 }
 0x26e   : > { %4267 = vmatprep.subr.msk.bf16.mxu0 %vm1237_vm1, %v1228_v19 }
 0x272   : > { %v1236_v23 = vpop.permute.xlu1 %1235 }
 0x273   : > { %v1234_v24 = vpop.permute.xlu0 %1233  ;;  %v1284_v39 = vsel %vm1237_vm1, %v1236_v23, 0 }
 0x274   : > { %v1281_v38 = vsel %vm1237_vm1, %v1234_v24, 0 }
 0x275   : > { %3980 = vmatpush3.bf16.xpose.msra.mxu0 %v1272_v25  ;;  %v4981_v25 = vld [vmem:[%s4937_s9 + $0x38] sm:$0xff] }
 0x276   : > { %v1536_v26 = vpop.permute.xlu1 %1535  ;;  %4268 = vmatprep.subr.msk.bf16.mxu0 %vm1237_vm1, %v1230_v22  ;;  %v4972_v22 = vld [vmem:[%s4937_s9 + $0x30] sm:$0xff] }
 0x277   : > { %4005 = vmatprep.subr.bf16.mxu1 %v1536_v26  ;;  %v1538_v27 = vpop.permute.xlu0 %1537 }
 0x278   : > { %4006 = vmatpush3.bf16.msra.mxu1 %v1536_v26 }
 0x279   : > { %4007 = vmatprep.subr.bf16.mxu1 %v1538_v27 }
 0x27a   : > { %v1540_v28 = vpop.permute.xlu1 %1539 }
 0x27b   : > { %v1542_v33 = vpop.permute.xlu0 %1541 }
 0x27c   : > { %4008 = vmatpush3.bf16.msra.mxu1 %v1538_v27 }
 0x27d   : > { %3982 = vmatpush3.bf16.xpose.msra.mxu0 %v1275_v29  ;;  %4009 = vmatprep.subr.bf16.mxu1 %v1540_v28  ;;  %v4994_v29 = vld [vmem:[%s4937_s9 + $0x28] sm:$0xff] }
 0x27e   : > { %v1544_v32 = vpop.permute.xlu1 %1543  ;;  %4269 = vmatprep.subr.msk.bf16.mxu0 %vm1237_vm1, %v1232_v21 }
 0x280   : > { %4010 = vmatpush3.bf16.msra.mxu1 %v1540_v28  ;;  %v4991_v28 = vld [vmem:[%s4937_s9 + $0x50] sm:$0xff] }
 0x281   : > { %4011 = vmatprep.subr.bf16.mxu1 %v1542_v33 }
 0x282   : > { %v1546_v34 = vpop.permute.xlu1 %1545 }
 0x284   : > { %4012 = vmatpush3.bf16.msra.mxu1 %v1542_v33 }
 0x285   : > { %3984 = vmatpush3.bf16.xpose.msra.mxu0 %v1278_v35  ;;  %4013 = vmatprep.subr.bf16.mxu1 %v1544_v32  ;;  %v5008_v35 = vld [vmem:[%s4937_s9 + $0x58] sm:$0xff] }
 0x286   : > { %v1550_v36 = vpop.permute.xlu1 %1549  ;;  %4270 = vmatprep.subr.msk.bf16.mxu0 %vm1237_vm1, %v1234_v24  ;;  %v4978_v24 = vld [vmem:[%s4937_s9 + $0x20] sm:$0xff] }
 0x288   : > { %4014 = vmatpush3.bf16.msra.mxu1 %v1544_v32 }
 0x289   : > { %4015 = vmatprep.subr.bf16.mxu1 %v1546_v34 }
 0x28a   : > { %v1548_v37 = vpop.permute.xlu1 %1547 }
 0x28c   : > { %4016 = vmatpush3.bf16.msra.mxu1 %v1546_v34  ;;  %v5005_v34 = vld [vmem:[%s4937_s9 + $0x40] sm:$0xff] }
 0x28d   : > { %3986 = vmatpush3.bf16.xpose.msra.mxu0 %v1281_v38  ;;  %4017 = vmatprep.subr.bf16.mxu1 %v1548_v37  ;;  %v5019_v38 = vld [vmem:[%s4937_s9 + $0x70] sm:$0xff] }
 0x28e   : > { %4271 = vmatprep.subr.msk.bf16.mxu0 %vm1237_vm1, %v1236_v23 }
 0x290   : > { %4018 = vmatpush3.bf16.msra.mxu1 %v1548_v37 }
 0x291   : > { %4019 = vmatprep.subr.bf16.mxu1 %v1550_v36 }
 0x294   : > { %4020 = vmatpush3.bf16.msra.mxu1 %v1550_v36 }
 0x295   : > { %3988 = vmatpush3.bf16.xpose.msra.mxu0 %v1284_v39  ;;  %v5022_v39 = vld [vmem:[%s4937_s9 + $0x48] sm:$0xff] }
 0x29c   : > { %3990 = vmatmul.mubr.msk.bf16.vlgmr.msra.gmra.mrb[16].mxu0 %vm1237_vm1, %v4861_v30 }
 0x29d   : > { %3993 = vmatprep.mubr.msk.bf16.mxu0 %vm1237_vm1, %v4873_v41 }
 0x2a4   : > { %3994 = vmatmul.mubr.msk.bf16.gmra.mrb[20].mxu0 %vm1237_vm1, %v4871_v40 }
 0x2a5   : > { %3997 = vmatprep.mubr.msk.bf16.mxu0 %vm1237_vm1, %v4881_v55 }
 0x2ac   : > { %3998 = vmatmul.mubr.msk.bf16.gmra.mrb[24].mxu0 %vm1237_vm1, %v4879_v54 }
 0x2ad   : > { %4001 = vmatprep.mubr.msk.bf16.mxu0 %vm1237_vm1, %v4889_v5 }
 0x2b4   : > { %4002 = vmatmul.mubr.msk.bf16.gmra.mrb[28].mxu0 %vm1237_vm1, %v4887_v4 }
 0x36f   : > { %v3991_v43 = vpop.f32.mrb[16].mxu0 }
 0x370   : > { %v4943_v44 = vadd.f32 %v3991_v43, %v4940_v42  ;;  %v1320_v48 = vpop.f32.mrb[17].mxu0 }
 0x371   : > { %v3992_v52 = vpop.f32.mrb[18].mxu0  ;;  %v4956_v57 = vadd.f32 %v1320_v48, %v4949_v51 }
 0x372   : > { %1387 = vmax.xlane.f32.xlu0 %v4943_v44  ;;  %v1323_v53 = vpop.f32.mrb[19].mxu0  ;;  %v4964_v0 = vadd.f32 %v3992_v52, %v4959_v58  ;;  %v5033_v52 = vld [vmem:[%s4937_s9 + $0x60] sm:$0xff] }
 0x373   : > { %v4953_v56 = vadd.f32 %v1323_v53, %v4946_v50  ;;  %v5036_v53 = vld [vmem:[%s4937_s9 + $0x78] sm:$0xff] }
 0x375   : > { %1385 = vmax.xlane.f32.xlu1 %v4953_v56 }
 0x376   : > { %1383 = vmax.xlane.f32.xlu0 %v4956_v57 }
 0x377   : > { %v3995_v63 = vpop.f32.mrb[20].mxu0 }
 0x378   : > { %v1336_v1 = vpop.f32.mrb[21].mxu0  ;;  %v4975_v23 = vadd.f32 %v3995_v63, %v4972_v22 }
 0x379   : > { %v3996_v2 = vpop.f32.mrb[22].mxu0  ;;  %v4985_v26 = vadd.f32 %v1336_v1, %v4978_v24 }
 0x37a   : > { %v1339_v3 = vpop.f32.mrb[23].mxu0  ;;  %1389 = vmax.xlane.f32.xlu0 %v4964_v0  ;;  %v4988_v27 = vadd.f32 %v3996_v2, %v4981_v25  ;;  %v5047_v2 = vld [vmem:[%s4937_s9 + $0x68] sm:$0xff]  ;;  %s6180_s9 = sld [smem:[#allocation23_spill]] }
 0x37b   : > { %v5002_v33 = vadd.f32 %v1339_v3, %v4994_v29 }
 0x37f   : > { %v3999_v6 = vpop.f32.mrb[24].mxu0 }
 0x380   : > { %v1352_v7 = vpop.f32.mrb[25].mxu0  ;;  %v4999_v32 = vadd.f32 %v3999_v6, %v4991_v28 }
 0x381   : > { %v4000_v8 = vpop.f32.mrb[26].mxu0  ;;  %v5013_v36 = vadd.f32 %v1352_v7, %v5005_v34 }
 0x382   : > { %v1355_v13 = vpop.f32.mrb[27].mxu0  ;;  %v5016_v37 = vadd.f32 %v4000_v8, %v5008_v35 }
 0x383   : > { %v5030_v48 = vadd.f32 %v1355_v13, %v5022_v39 }
 0x386   : > { %1674 = vrot.lane.b32.xlu1 %v4861_v30, %s4603_s30 }
 0x387   : > { %v4003_v14 = vpop.f32.mrb[28].mxu0 }
 0x388   : > { %v1368_v19 = vpop.f32.mrb[29].mxu0  ;;  %v5027_v43 = vadd.f32 %v4003_v14, %v5019_v38 }
 0x389   : > { %v4004_v20 = vpop.f32.mrb[30].mxu0  ;;  %v5041_v63 = vadd.f32 %v1368_v19, %v5033_v52 }
 0x38a   : > { %v1371_v21 = vpop.f32.mrb[31].mxu0  ;;  %v5044_v1 = vadd.f32 %v4004_v20, %v5036_v53 }
 0x38b   : > { %v5052_v3 = vadd.f32 %v1371_v21, %v5047_v2 }
 0x390   : > { %1672 = vrot.lane.b32.xlu0 %v4863_v31, %s4603_s30 }
 0x3aa   : > { %1395 = vmax.xlane.f32.xlu1 %v4975_v23 }
 0x3ae   : > { %1391 = vmax.xlane.f32.xlu1 %v4985_v26 }
 0x3af   : > { %1397 = vmax.xlane.f32.xlu0 %v4988_v27 }
 0x3b2   : > { %1403 = vmax.xlane.f32.xlu1 %v4999_v32 }
 0x3b3   : > { %1393 = vmax.xlane.f32.xlu0 %v5002_v33 }
 0x3b6   : > { %1399 = vmax.xlane.f32.xlu1 %v5013_v36 }
 0x3b7   : > { %1405 = vmax.xlane.f32.xlu0 %v5016_v37 }
 0x3ba   : > { %1411 = vmax.xlane.f32.xlu1 %v5027_v43 }
 0x3bb   : > { %1401 = vmax.xlane.f32.xlu0 %v5030_v48 }
 0x3be   : > { %1407 = vmax.xlane.f32.xlu1 %v5041_v63 }
 0x3bf   : > { %1413 = vmax.xlane.f32.xlu0 %v5044_v1 }
 0x3c3   : > { %1409 = vmax.xlane.f32.xlu0 %v5052_v3 }
 0x3cf   : > { %1676 = vrot.lane.b32.xlu1 %v4873_v41, %s4603_s30 }
 0x3ff   : > { %v1388_v6 = vpop.xlane.xlu0 %1387 }
 0x400   : > { %v1417_v7 = vsub.f32 %v4943_v44, %v1388_v6 }
 0x402   : > { %v1435_v8 = vmul.f32 1.442695, %v1417_v7  ;;  %v1386_v19 = vpop.xlane.xlu1 %1385 }
 0x403   : > { %v1384_v13 = vpop.xlane.xlu0 %1383  ;;  %v1416_v18 = vsub.f32 %v4953_v56, %v1386_v19 }
 0x404   : > { %4397 = vpow2.f32 %v1435_v8  ;;  %v1415_v14 = vsub.f32 %v4956_v57, %v1384_v13 }
 0x405   : > { %v1433_v11 = vmul.f32 1.442695, %v1416_v18 }
 0x406   : > { %v1431_v20 = vmul.f32 1.442695, %v1415_v14 }
 0x407   : > { %v1390_v17 = vpop.xlane.xlu0 %1389 }
 0x408   : > { %4399 = vpow2.f32 %v1431_v20  ;;  %v1418_v21 = vsub.f32 %v4964_v0, %v1390_v17 }
 0x40a   : > { %v1437_v15 = vmul.f32 1.442695, %v1418_v21 }
 0x40b   : > { %v5061_v16 = vpop.permute.xlu0 %1672 }
 0x40c   : > { %4401 = vpow2.f32 %v1437_v15  ;;  %4272 = vmatprep.subr.msk.bf16.mxu1 %vm1237_vm1, %v5061_v16  ;;  %v5077_v15 = vpop.permute.xlu1 %1674 }
 0x40d   : > { %4403 = vpow2.f32 %v1433_v11 }
 0x40e   : > { %v5065_v44 = vpop.eup %4397 }
 0x40f   : > { %1467 = vadd.xlane.f32.xlu0 %v5065_v44 }
 0x412   : > { %v5068_v57 = vpop.eup %4399 }
 0x413   : > { %1463 = vadd.xlane.f32.xlu1 %v5068_v57 }
 0x416   : > { %v5071_v56 = vpop.eup %4401 }
 0x417   : > { %1469 = vadd.xlane.f32.xlu0 %v5071_v56  ;;  %v5074_v17 = vpop.eup %4403 }
 0x41b   : > { %1465 = vadd.xlane.f32.xlu0 %v5074_v17 }
 0x437   : > { %v1396_v18 = vpop.xlane.xlu1 %1395 }
 0x438   : > { %v1421_v0 = vsub.f32 %v4975_v23, %v1396_v18 }
 0x43a   : > { %v1443_v6 = vmul.f32 1.442695, %v1421_v0 }
 0x43b   : > { %v1392_v7 = vpop.xlane.xlu1 %1391 }
 0x43c   : > { %4405 = vpow2.f32 %v1443_v6  ;;  %v1419_v11 = vsub.f32 %v4985_v26, %v1392_v7  ;;  %v1398_v8 = vpop.xlane.xlu0 %1397 }
 0x43d   : > { %v1422_v13 = vsub.f32 %v4988_v27, %v1398_v8 }
 0x43e   : > { %v1439_v14 = vmul.f32 1.442695, %v1419_v11 }
 0x43f   : > { %v1445_v19 = vmul.f32 1.442695, %v1422_v13  ;;  %v1404_v6 = vpop.xlane.xlu1 %1403 }
 0x440   : > { %4407 = vpow2.f32 %v1439_v14  ;;  %v1394_v20 = vpop.xlane.xlu0 %1393  ;;  %v1425_v11 = vsub.f32 %v4999_v32, %v1404_v6 }
 0x441   : > { %v1420_v21 = vsub.f32 %v5002_v33, %v1394_v20  ;;  %4409 = vpow2.f32 %v1445_v19 }
 0x442   : > { %v1451_v14 = vmul.f32 1.442695, %v1425_v11 }
 0x443   : > { %v1441_v9 = vmul.f32 1.442695, %v1420_v21  ;;  %v1400_v8 = vpop.xlane.xlu1 %1399 }
 0x444   : > { %v1406_v33 = vpop.xlane.xlu0 %1405  ;;  %v1423_v19 = vsub.f32 %v5013_v36, %v1400_v8 }
 0x445   : > { %4411 = vpow2.f32 %v1441_v9  ;;  %v1426_v21 = vsub.f32 %v5016_v37, %v1406_v33 }
 0x446   : > { %v5083_v12 = vpop.eup %4405  ;;  %v1447_v20 = vmul.f32 1.442695, %v1423_v19 }
 0x447   : > { %1475 = vadd.xlane.f32.xlu0 %v5083_v12  ;;  %v1412_v10 = vpop.xlane.xlu1 %1411  ;;  %v1453_v61 = vmul.f32 1.442695, %v1426_v21 }
 0x448   : > { %v1402_v9 = vpop.xlane.xlu0 %1401  ;;  %v1429_v32 = vsub.f32 %v5027_v43, %v1412_v10 }
 0x449   : > { %v1424_v59 = vsub.f32 %v5030_v48, %v1402_v9 }
 0x44a   : > { %v5086_v23 = vpop.eup %4407  ;;  %v1459_v6 = vmul.f32 1.442695, %v1429_v32 }
 0x44b   : > { %1471 = vadd.xlane.f32.xlu0 %v5086_v23  ;;  %v5089_v26 = vpop.eup %4409 }
 0x44c   : > { %v1414_v18 = vpop.xlane.xlu0 %1413 }
 0x44d   : > { %v1430_v10 = vsub.f32 %v5044_v1, %v1414_v18 }
 0x44f   : > { %v5091_v27 = vpop.eup %4411  ;;  %1477 = vadd.xlane.f32.xlu0 %v5089_v26  ;;  %v1461_v43 = vmul.f32 1.442695, %v1430_v10  ;;  %v1713_v10 = vsel %vm1237_vm1, %v5061_v16, 0 }
 0x450   : > { %1473 = vadd.xlane.f32.xlu1 %v5091_v27  ;;  %v1410_v0 = vpop.xlane.xlu0 %1409 }
 0x451   : > { %v1428_v7 = vsub.f32 %v5052_v3, %v1410_v0  ;;  %v1449_v3 = vmul.f32 1.442695, %v1424_v59  ;;  %v1408_v0 = vpop.xlane.xlu1 %1407 }
 0x452   : > { %v1427_v37 = vsub.f32 %v5041_v63, %v1408_v0 }
 0x453   : > { %v1457_v13 = vmul.f32 1.442695, %v1428_v7 }
 0x455   : > { %4413 = vpow2.f32 %v1457_v13  ;;  %v1677_v18 = vpop.permute.xlu1 %1676 }
 0x456   : > { %4415 = vpow2.f32 %v1451_v14  ;;  %v1719_v16 = vsel %vm1237_vm1, %v1677_v18, 0 }
 0x457   : > { %4417 = vpow2.f32 %v1447_v20 }
 0x458   : > { %4419 = vpow2.f32 %v1453_v61  ;;  %v1455_v61 = vmul.f32 1.442695, %v1427_v37 }
 0x459   : > { %4421 = vpow2.f32 %v1449_v3 }
 0x45a   : > { %4423 = vpow2.f32 %v1459_v6 }
 0x45b   : > { %4425 = vpow2.f32 %v1455_v61 }
 0x45c   : > { %4427 = vpow2.f32 %v1461_v43 }
 0x45f   : > { %v5106_v62 = vpop.eup %4413 }
 0x460   : > { %v5110_v36 = vpop.eup %4415 }
 0x461   : > { %1678 = vrot.lane.b32.xlu1 %v4871_v40, %s4603_s30  ;;  %v5114_v33 = vpop.eup %4417 }
 0x462   : > { %v5118_v59 = vpop.eup %4419 }
 0x463   : > { %v5121_v48 = vpop.eup %4421 }
 0x464   : > { %v5126_v63 = vpop.eup %4423 }
 0x465   : > { %1680 = vrot.lane.b32.xlu0 %v4881_v55, %s4603_s30  ;;  %v5131_v1 = vpop.eup %4425 }
 0x466   : > { %v5136_v9 = vpop.eup %4427 }
 0x469   : > { %1682 = vrot.lane.b32.xlu0 %v4879_v54, %s4603_s30 }
 0x485   : > { %1489 = vadd.xlane.f32.xlu1 %v5106_v62 }
 0x488   : > { %1483 = vadd.xlane.f32.xlu0 %v5110_v36 }
 0x48c   : > { %1479 = vadd.xlane.f32.xlu0 %v5114_v33 }
 0x490   : > { %1485 = vadd.xlane.f32.xlu0 %v5118_v59 }
 0x494   : > { %1481 = vadd.xlane.f32.xlu0 %v5121_v48 }
 0x496   : > { %1686 = vrot.lane.b32.xlu1 %v4887_v4, %s4603_s30 }
 0x498   : > { %1491 = vadd.xlane.f32.xlu0 %v5126_v63 }
 0x49a   : > { %1664 = vrot.lane.b32.xlu1 %v4881_v55, %s4604_s2 }
 0x49c   : > { %1487 = vadd.xlane.f32.xlu0 %v5131_v1  ;;  %v1468_v7 = vpop.xlane.xlu0 %1467 }
 0x49e   : > { %1668 = vrot.lane.b32.xlu1 %v4889_v5, %s4604_s2 }
 0x4a0   : > { %1493 = vadd.xlane.f32.xlu0 %v5136_v9  ;;  %v1464_v11 = vpop.xlane.xlu1 %1463 }
 0x4a2   : > { %1987 = vrot.lane.b32.xlu1 %v4861_v30, %s4605_s5 }
 0x4a4   : > { %v1470_v8 = vpop.xlane.xlu0 %1469 }
 0x4a5   : > { %4429 = vrcp.f32 %v1470_v8 }
 0x4a6   : > { %4431 = vrcp.f32 %v1464_v11 }
 0x4a7   : > { %4433 = vrcp.f32 %v1468_v7 }
 0x4a8   : > { %v1466_v13 = vpop.xlane.xlu0 %1465 }
 0x4a9   : > { %4435 = vrcp.f32 %v1466_v13 }
 0x4af   : > { %v4430_v14 = vpop.eup %4429 }
 0x4b0   : > { %v4432_v19 = vpop.eup %4431  ;;  %v1514_v32 = vmul.f32 %v4430_v14, %v5071_v56 }
 0x4b1   : > { %v4434_v20 = vpop.eup %4433  ;;  %v1511_v3 = vmul.f32 %v4432_v19, %v5068_v57 }
 0x4b2   : > { %v1513_v6 = vmul.f32 %v4434_v20, %v5065_v44  ;;  %v1716_v44 = vsel %vm1237_vm1, %v5077_v15, 0 }
 0x4b3   : > { %v4436_v21 = vpop.eup %4435 }
 0x4b4   : > { %v1512_v0 = vmul.f32 %v4436_v21, %v5074_v17  ;;  %v1528_v61 = vpack.c.bf16 %v1514_v32, %v1513_v6 }
 0x4b6   : > { %1684 = vrot.lane.b32.xlu0 %v4889_v5, %s4603_s30  ;;  %v1527_v37 = vpack.c.bf16 %v1512_v0, %v1511_v3  ;;  %s6168_s30 = sld [smem:[#allocation22_spill]] }
 0x4b8   : > { %4021 = vmatprep.mubr.bf16.mxu1 %v1527_v37 }
 0x4b9   : > { %4022 = vmatmul.mubr.bf16.vlgmr.msra.gmra.mrb[16].mxu1 %v1528_v61 }
 0x4ba   : > { %4038 = vmatpush3.bf16.xpose.msra.mxu1 %v1713_v10  ;;  %1656 = vrot.lane.b32.xlu0 %v4863_v31, %s4604_s2 }
 0x4bb   : > { %4273 = vmatprep.subr.msk.bf16.mxu1 %vm1237_vm1, %v5077_v15 }
 0x4be   : > { %1658 = vrot.lane.b32.xlu0 %v4861_v30, %s4604_s2 }
 0x4c2   : > { %4040 = vmatpush3.bf16.xpose.msra.mxu1 %v1716_v44  ;;  %1660 = vrot.lane.b32.xlu0 %v4873_v41, %s4604_s2 }
 0x4c3   : > { %4274 = vmatprep.subr.msk.bf16.mxu1 %vm1237_vm1, %v1677_v18 }
 0x4c6   : > { %1662 = vrot.lane.b32.xlu0 %v4871_v40, %s4604_s2 }
 0x4ca   : > { %4042 = vmatpush3.bf16.xpose.msra.mxu1 %v1719_v16  ;;  %1666 = vrot.lane.b32.xlu0 %v4879_v54, %s4604_s2 }
 0x4ce   : > { %1670 = vrot.lane.b32.xlu0 %v4887_v4, %s4604_s2 }
 0x4d2   : > { %1985 = vrot.lane.b32.xlu0 %v4863_v31, %s4605_s5 }
 0x4d4   : > { %v1476_v30 = vpop.xlane.xlu0 %1475 }
 0x4d5   : > { %4437 = vrcp.f32 %v1476_v30 }
 0x4d8   : > { %v1472_v57 = vpop.xlane.xlu0 %1471 }
 0x4d9   : > { %4439 = vrcp.f32 %v1472_v57 }
 0x4dc   : > { %v1478_v56 = vpop.xlane.xlu0 %1477 }
 0x4dd   : > { %4441 = vrcp.f32 %v1478_v56  ;;  %v1474_v17 = vpop.xlane.xlu1 %1473 }
 0x4de   : > { %4443 = vrcp.f32 %v1474_v17 }
 0x4df   : > { %v4438_v7 = vpop.eup %4437 }
 0x4e0   : > { %v1681_v18 = vpop.permute.xlu0 %1680  ;;  %v1517_v21 = vmul.f32 %v4438_v7, %v5083_v12 }
 0x4e1   : > { %v1679_v15 = vpop.permute.xlu1 %1678  ;;  %v1725_v20 = vsel %vm1237_vm1, %v1681_v18, 0 }
 0x4e2   : > { %4275 = vmatprep.subr.msk.bf16.mxu1 %vm1237_vm1, %v1679_v15  ;;  %v1722_v43 = vsel %vm1237_vm1, %v1679_v15, 0 }
 0x4e3   : > { %4044 = vmatpush3.bf16.xpose.msra.mxu1 %v1722_v43  ;;  %v4440_v11 = vpop.eup %4439 }
 0x4e4   : > { %4276 = vmatprep.subr.msk.bf16.mxu1 %vm1237_vm1, %v1681_v18  ;;  %v1515_v14 = vmul.f32 %v4440_v11, %v5086_v23  ;;  %v1683_v32 = vpop.permute.xlu0 %1682 }
 0x4e5   : > { %v1728_v6 = vsel %vm1237_vm1, %v1683_v32, 0 }
 0x4e7   : > { %v4442_v31 = vpop.eup %4441 }
 0x4e8   : > { %v4444_v8 = vpop.eup %4443  ;;  %v1518_v13 = vmul.f32 %v4442_v31, %v5089_v26 }
 0x4e9   : > { %v1516_v19 = vmul.f32 %v4444_v8, %v5091_v27 }
 0x4ea   : > { %v1530_v0 = vpack.c.bf16 %v1518_v13, %v1517_v21 }
 0x4eb   : > { %4046 = vmatpush3.bf16.xpose.msra.mxu1 %v1725_v20  ;;  %v1529_v3 = vpack.c.bf16 %v1516_v19, %v1515_v14 }
 0x4ec   : > { %4277 = vmatprep.subr.msk.bf16.mxu1 %vm1237_vm1, %v1683_v32 }
 0x4ed   : > { %4025 = vmatprep.mubr.bf16.mxu1 %v1529_v3 }
 0x4ee   : > { %4026 = vmatmul.mubr.bf16.gmra.mrb[20].mxu1 %v1530_v0 }
 0x4f3   : > { %4048 = vmatpush3.bf16.xpose.msra.mxu1 %v1728_v6 }
 0x512   : > { %v1490_v12 = vpop.xlane.xlu1 %1489 }
 0x515   : > { %v1484_v26 = vpop.xlane.xlu0 %1483 }
 0x516   : > { %v1687_v14 = vpop.permute.xlu1 %1686 }
 0x517   : > { %v1734_v6 = vsel %vm1237_vm1, %v1687_v14, 0 }
 0x519   : > { %v1480_v37 = vpop.xlane.xlu0 %1479 }
 0x51d   : > { %v1486_v23 = vpop.xlane.xlu0 %1485 }
 0x51e   : > { %4445 = vrcp.f32 %v1486_v23  ;;  %v1665_v23 = vpop.permute.xlu1 %1664 }
 0x51f   : > { %4447 = vrcp.f32 %v1480_v37 }
 0x520   : > { %4449 = vrcp.f32 %v1484_v26 }
 0x521   : > { %v1482_v27 = vpop.xlane.xlu0 %1481 }
 0x522   : > { %4451 = vrcp.f32 %v1482_v27  ;;  %v1669_v27 = vpop.permute.xlu1 %1668 }
 0x523   : > { %4453 = vrcp.f32 %v1490_v12 }
 0x525   : > { %v1492_v61 = vpop.xlane.xlu0 %1491 }
 0x528   : > { %v4446_v10 = vpop.eup %4445 }
 0x529   : > { %v1488_v44 = vpop.xlane.xlu0 %1487  ;;  %v4448_v16 = vpop.eup %4447  ;;  %v1522_v56 = vmul.f32 %v4446_v10, %v5118_v59 }
 0x52a   : > { %4455 = vrcp.f32 %v1488_v44  ;;  %v4450_v30 = vpop.eup %4449  ;;  %v1519_v15 = vmul.f32 %v4448_v16, %v5114_v33 }
 0x52b   : > { %4457 = vrcp.f32 %v1492_v61  ;;  %v1521_v18 = vmul.f32 %v4450_v30, %v5110_v36 }
 0x52c   : > { %v4452_v57 = vpop.eup %4451 }
 0x52d   : > { %v1494_v17 = vpop.xlane.xlu0 %1493  ;;  %v1520_v43 = vmul.f32 %v4452_v57, %v5121_v48  ;;  %v1532_v11 = vpack.c.bf16 %v1522_v56, %v1521_v18  ;;  %v4454_v8 = vpop.eup %4453 }
 0x52e   : > { %4459 = vrcp.f32 %v1494_v17  ;;  %v1524_v36 = vmul.f32 %v4454_v8, %v5106_v62 }
 0x52f   : > { %v1531_v7 = vpack.c.bf16 %v1520_v43, %v1519_v15 }
 0x531   : > { %4029 = vmatprep.mubr.bf16.mxu1 %v1531_v7  ;;  %v1685_v31 = vpop.permute.xlu0 %1684 }
 0x532   : > { %4030 = vmatmul.mubr.bf16.gmra.mrb[24].mxu1 %v1532_v11  ;;  %4278 = vmatprep.subr.msk.bf16.mxu1 %vm1237_vm1, %v1685_v31  ;;  %v1731_v13 = vsel %vm1237_vm1, %v1685_v31, 0 }
 0x533   : > { %4050 = vmatpush3.bf16.xpose.msra.mxu1 %v1731_v13 }
 0x534   : > { %v4456_v59 = vpop.eup %4455  ;;  %4279 = vmatprep.subr.msk.bf16.mxu1 %vm1237_vm1, %v1687_v14 }
 0x535   : > { %v1657_v33 = vpop.permute.xlu0 %1656  ;;  %v1523_v48 = vmul.f32 %v4456_v59, %v5131_v1  ;;  %v4458_v19 = vpop.eup %4457 }
 0x536   : > { %v1525_v3 = vmul.f32 %v4458_v19, %v5126_v63 }
 0x537   : > { %v1533_v20 = vpack.c.bf16 %v1524_v36, %v1523_v48 }
 0x538   : > { %v4460_v21 = vpop.eup %4459 }
 0x539   : > { %4033 = vmatprep.mubr.bf16.mxu1 %v1533_v20  ;;  %v1659_v32 = vpop.permute.xlu0 %1658  ;;  %v1526_v0 = vmul.f32 %v4460_v21, %v5136_v9  ;;  %v1988_v9 = vpop.permute.xlu1 %1987 }
 0x53b   : > { %4052 = vmatpush3.bf16.xpose.msra.mxu1 %v1734_v6  ;;  %v1534_v26 = vpack.c.bf16 %v1526_v0, %v1525_v3 }
 0x53d   : > { %4034 = vmatmul.mubr.bf16.gmra.mrb[28].mxu1 %v1534_v26  ;;  %v1661_v37 = vpop.permute.xlu0 %1660 }
 0x53e   : > { %4053 = vmatprep.mubr.msk.bf16.mxu1 %vm1237_vm1, %v1657_v33 }
 0x541   : > { %v1663_v1 = vpop.permute.xlu0 %1662 }
 0x545   : > { %4054 = vmatmul.mubr.msk.bf16.vlgmr.msra.gmra.mrb[32].mxu1 %vm1237_vm1, %v1659_v32  ;;  %v1667_v62 = vpop.permute.xlu0 %1666 }
 0x546   : > { %4057 = vmatprep.mubr.msk.bf16.mxu1 %vm1237_vm1, %v1661_v37 }
 0x549   : > { %v1671_v12 = vpop.permute.xlu0 %1670 }
 0x54d   : > { %4058 = vmatmul.mubr.msk.bf16.gmra.mrb[36].mxu1 %vm1237_vm1, %v1663_v1  ;;  %v1986_v63 = vpop.permute.xlu0 %1985 }
 0x54e   : > { %4061 = vmatprep.mubr.msk.bf16.mxu1 %vm1237_vm1, %v1665_v23  ;;  %4069 = vmatprep.subr.bf16.mxu0 %v1986_v63 }
 0x54f   : > { %4070 = vmatpush3.bf16.msra.mxu0 %v1986_v63 }
 0x550   : > { %4071 = vmatprep.subr.bf16.mxu0 %v1988_v9 }
 0x553   : > { %4072 = vmatpush3.bf16.msra.mxu0 %v1988_v9 }
 0x555   : > { %4062 = vmatmul.mubr.msk.bf16.gmra.mrb[40].mxu1 %vm1237_vm1, %v1667_v62 }
 0x556   : > { %4065 = vmatprep.mubr.msk.bf16.mxu1 %vm1237_vm1, %v1669_v27 }
 0x55d   : > { %4066 = vmatmul.mubr.msk.bf16.gmra.mrb[44].mxu1 %vm1237_vm1, %v1671_v12 }
 0x58c   : > { %v5199_v61 = vpop.f32.mrb[16].mxu1 }
 0x58d   : > { %v5201_v10 = vpop.f32.mrb[17].mxu1 }
 0x58e   : > { %v5203_v44 = vpop.f32.mrb[18].mxu1 }
 0x58f   : > { %v5205_v16 = vpop.f32.mrb[19].mxu1 }
 0x5c1   : > { %v5207_v30 = vpop.f32.mrb[20].mxu1 }
 0x5c2   : > { %v5209_v57 = vpop.f32.mrb[21].mxu1 }
 0x5c3   : > { %v5211_v56 = vpop.f32.mrb[22].mxu1 }
 0x5c4   : > { %v5213_v17 = vpop.f32.mrb[23].mxu1 }
 0x605   : > { %v5215_v15 = vpop.f32.mrb[24].mxu1 }
 0x606   : > { %v5217_v43 = vpop.f32.mrb[25].mxu1 }
 0x607   : > { %v5219_v18 = vpop.f32.mrb[26].mxu1 }
 0x608   : > { %v5221_v7 = vpop.f32.mrb[27].mxu1 }
 0x610   : > { %v5223_v11 = vpop.f32.mrb[28].mxu1 }
 0x611   : > { %v5225_v31 = vpop.f32.mrb[29].mxu1 }
 0x612   : > { %v5227_v8 = vpop.f32.mrb[30].mxu1 }
 0x613   : > { %v5229_v13 = vpop.f32.mrb[31].mxu1 }
 0x618   : > { %v4055_v14 = vpop.f32.mrb[32].mxu1 }
 0x619   : > { %v1779_v59 = vadd.f32 %v4055_v14, %v4940_v42  ;;  %v1770_v33 = vpop.f32.mrb[33].mxu1 }
 0x61a   : > { %v1771_v48 = vadd.f32 %v1770_v33, %v4949_v51  ;;  %v4056_v36 = vpop.f32.mrb[34].mxu1 }
 0x61b   : > { %1837 = vmax.xlane.f32.xlu0 %v1779_v59  ;;  %v1773_v19 = vpop.f32.mrb[35].mxu1  ;;  %v1782_v21 = vadd.f32 %v4056_v36, %v4959_v58 }
 0x61c   : > { %v5234_v20 = vadd.f32 %v1773_v19, %v4946_v50  ;;  %1833 = vmax.xlane.f32.xlu1 %v1771_v48 }
 0x61f   : > { %1835 = vmax.xlane.f32.xlu0 %v5234_v20 }
 0x620   : > { %1839 = vmax.xlane.f32.xlu1 %v1782_v21  ;;  %v4059_v32 = vpop.f32.mrb[36].mxu1 }
 0x621   : > { %v1795_v3 = vadd.f32 %v4059_v32, %v4972_v22  ;;  %v1786_v0 = vpop.f32.mrb[37].mxu1 }
 0x622   : > { %v4060_v42 = vpop.f32.mrb[38].mxu1  ;;  %v1787_v26 = vadd.f32 %v1786_v0, %v4978_v24 }
 0x623   : > { %v5240_v6 = vadd.f32 %v4060_v42, %v4981_v25  ;;  %1845 = vmax.xlane.f32.xlu0 %v1795_v3  ;;  %v1789_v51 = vpop.f32.mrb[39].mxu1 }
 0x624   : > { %v5245_v50 = vadd.f32 %v1789_v51, %v4994_v29 }
 0x625   : > { %1847 = vmax.xlane.f32.xlu1 %v5240_v6 }
 0x627   : > { %1841 = vmax.xlane.f32.xlu0 %v1787_v26 }
 0x628   : > { %v4063_v58 = vpop.f32.mrb[40].mxu1 }
 0x629   : > { %v5248_v37 = vadd.f32 %v4063_v58, %v4991_v28  ;;  %1843 = vmax.xlane.f32.xlu1 %v5245_v50  ;;  %v1802_v22 = vpop.f32.mrb[41].mxu1 }
 0x62a   : > { %v4064_v1 = vpop.f32.mrb[42].mxu1  ;;  %v5256_v23 = vadd.f32 %v1802_v22, %v5005_v34 }
 0x62b   : > { %v5252_v25 = vadd.f32 %v4064_v1, %v5008_v35  ;;  %1853 = vmax.xlane.f32.xlu0 %v5248_v37  ;;  %v1805_v24 = vpop.f32.mrb[43].mxu1 }
 0x62c   : > { %v5260_v29 = vadd.f32 %v1805_v24, %v5022_v39 }
 0x62d   : > { %1855 = vmax.xlane.f32.xlu1 %v5252_v25 }
 0x62f   : > { %1849 = vmax.xlane.f32.xlu0 %v5256_v23 }
 0x630   : > { %v4067_v28 = vpop.f32.mrb[44].mxu1 }
 0x631   : > { %v5264_v62 = vadd.f32 %v4067_v28, %v5019_v38  ;;  %1851 = vmax.xlane.f32.xlu1 %v5260_v29  ;;  %v1818_v35 = vpop.f32.mrb[45].mxu1 }
 0x632   : > { %v4068_v27 = vpop.f32.mrb[46].mxu1  ;;  %v5269_v34 = vadd.f32 %v1818_v35, %v5033_v52 }
 0x633   : > { %1861 = vmax.xlane.f32.xlu0 %v5264_v62  ;;  %v1821_v12 = vpop.f32.mrb[47].mxu1  ;;  %v5281_v38 = vadd.f32 %v4068_v27, %v5036_v53 }
 0x634   : > { %v5285_v39 = vadd.f32 %v1821_v12, %v5047_v2 }
 0x637   : > { %1857 = vmax.xlane.f32.xlu0 %v5269_v34 }
 0x642   : > { %1993 = vrot.lane.b32.xlu1 %v4881_v55, %s4605_s5 }
 0x64d   : > { %1989 = vrot.lane.b32.xlu0 %v4873_v41, %s4605_s5 }
 0x651   : > { %1991 = vrot.lane.b32.xlu0 %v4871_v40, %s4605_s5 }
 0x655   : > { %1997 = vrot.lane.b32.xlu0 %v4889_v5, %s4605_s5 }
 0x666   : > { %1863 = vmax.xlane.f32.xlu1 %v5281_v38 }
 0x66a   : > { %1859 = vmax.xlane.f32.xlu1 %v5285_v39 }
 0x67b   : > { %1995 = vrot.lane.b32.xlu1 %v4879_v54, %s4605_s5 }
 0x6a8   : > { %v1838_v41 = vpop.xlane.xlu0 %1837 }
 0x6a9   : > { %v1867_v55 = vsub.f32 %v1779_v59, %v1838_v41  ;;  %v1834_v52 = vpop.xlane.xlu1 %1833 }
 0x6aa   : > { %v1865_v40 = vsub.f32 %v1771_v48, %v1834_v52 }
 0x6ab   : > { %v1885_v63 = vmul.f32 1.442695, %v1867_v55 }
 0x6ac   : > { %v1836_v9 = vpop.xlane.xlu0 %1835  ;;  %v1881_v5 = vmul.f32 1.442695, %v1865_v40 }
 0x6ad   : > { %4461 = vpow2.f32 %v1885_v63  ;;  %v1840_v53 = vpop.xlane.xlu1 %1839  ;;  %v1866_v33 = vsub.f32 %v5234_v20, %v1836_v9 }
 0x6ae   : > { %v1868_v14 = vsub.f32 %v1782_v21, %v1840_v53  ;;  %4463 = vpow2.f32 %v1881_v5 }
 0x6af   : > { %v1883_v42 = vmul.f32 1.442695, %v1866_v33 }
 0x6b0   : > { %v1887_v36 = vmul.f32 1.442695, %v1868_v14  ;;  %v1846_v2 = vpop.xlane.xlu0 %1845 }
 0x6b1   : > { %v1871_v19 = vsub.f32 %v1795_v3, %v1846_v2 }
 0x6b2   : > { %v1848_v32 = vpop.xlane.xlu1 %1847  ;;  %4465 = vpow2.f32 %v1887_v36 }
 0x6b3   : > { %v1893_v0 = vmul.f32 1.442695, %v1871_v19  ;;  %v1872_v54 = vsub.f32 %v5240_v6, %v1848_v32 }
 0x6b4   : > { %v1842_v59 = vpop.xlane.xlu0 %1841 }
 0x6b5   : > { %4467 = vpow2.f32 %v1893_v0  ;;  %v1869_v48 = vsub.f32 %v1787_v26, %v1842_v59  ;;  %v1895_v20 = vmul.f32 1.442695, %v1872_v54 }
 0x6b6   : > { %v1844_v51 = vpop.xlane.xlu1 %1843  ;;  %4469 = vpow2.f32 %v1883_v42 }
 0x6b7   : > { %v5292_v58 = vpop.eup %4461  ;;  %v1889_v22 = vmul.f32 1.442695, %v1869_v48  ;;  %v1870_v21 = vsub.f32 %v5245_v50, %v1844_v51 }
 0x6b8   : > { %1917 = vadd.xlane.f32.xlu1 %v5292_v58  ;;  %v1854_v3 = vpop.xlane.xlu0 %1853  ;;  %v5297_v6 = vpop.eup %4463 }
 0x6b9   : > { %4471 = vpow2.f32 %v1889_v22  ;;  %v1891_v1 = vmul.f32 1.442695, %v1870_v21  ;;  %v1875_v24 = vsub.f32 %v5248_v37, %v1854_v3 }
 0x6ba   : > { %v1856_v28 = vpop.xlane.xlu1 %1855  ;;  %4473 = vpow2.f32 %v1895_v20 }
 0x6bb   : > { %4475 = vpow2.f32 %v1891_v1  ;;  %v1901_v35 = vmul.f32 1.442695, %v1875_v24  ;;  %v1876_v37 = vsub.f32 %v5252_v25, %v1856_v28 }
 0x6bc   : > { %1913 = vadd.xlane.f32.xlu1 %v5297_v6  ;;  %v1850_v26 = vpop.xlane.xlu0 %1849  ;;  %v5301_v27 = vpop.eup %4465 }
 0x6bd   : > { %v1873_v50 = vsub.f32 %v5256_v23, %v1850_v26  ;;  %4477 = vpow2.f32 %v1901_v35 }
 0x6be   : > { %v1852_v12 = vpop.xlane.xlu1 %1851 }
 0x6bf   : > { %v5303_v41 = vpop.eup %4467  ;;  %v1874_v55 = vsub.f32 %v5260_v29, %v1852_v12  ;;  %v1897_v40 = vmul.f32 1.442695, %v1873_v50  ;;  %v1903_v29 = vmul.f32 1.442695, %v1876_v37 }
 0x6c0   : > { %1919 = vadd.xlane.f32.xlu1 %v5301_v27  ;;  %1925 = vadd.xlane.f32.xlu0 %v5303_v41  ;;  %v1862_v52 = vpop.xlane.xlu0 %1861  ;;  %v5310_v23 = vpop.eup %4469 }
 0x6c1   : > { %v1899_v63 = vmul.f32 1.442695, %v1874_v55  ;;  %v1879_v9 = vsub.f32 %v5264_v62, %v1862_v52 }
 0x6c2   : > { %v1994_v0 = vpop.permute.xlu1 %1993 }
 0x6c3   : > { %v5312_v5 = vpop.eup %4471  ;;  %4479 = vpow2.f32 %v1899_v63  ;;  %v1909_v53 = vmul.f32 1.442695, %v1879_v9 }
 0x6c4   : > { %1915 = vadd.xlane.f32.xlu1 %v5310_v23  ;;  %1921 = vadd.xlane.f32.xlu0 %v5312_v5  ;;  %v1858_v25 = vpop.xlane.xlu0 %1857  ;;  %4481 = vpow2.f32 %v1897_v40  ;;  %v5317_v33 = vpop.eup %4473 }
 0x6c5   : > { %v1877_v14 = vsub.f32 %v5269_v34, %v1858_v25  ;;  %v5319_v36 = vpop.eup %4475  ;;  %4483 = vpow2.f32 %v1909_v53 }
 0x6c6   : > { %4485 = vpow2.f32 %v1903_v29 }
 0x6c7   : > { %v1905_v62 = vmul.f32 1.442695, %v1877_v14  ;;  %v5323_v19 = vpop.eup %4477 }
 0x6c8   : > { %1923 = vadd.xlane.f32.xlu1 %v5319_v36  ;;  %1927 = vadd.xlane.f32.xlu0 %v5317_v33  ;;  %v1990_v2 = vpop.permute.xlu0 %1989 }
 0x6c9   : > { %4073 = vmatprep.subr.bf16.mxu0 %v1990_v2  ;;  %4487 = vpow2.f32 %v1905_v62 }
 0x6ca   : > { %4074 = vmatpush3.bf16.msra.mxu0 %v1990_v2 }
 0x6cc   : > { %1933 = vadd.xlane.f32.xlu0 %v5323_v19  ;;  %v1992_v34 = vpop.permute.xlu0 %1991 }
 0x6cd   : > { %v5326_v32 = vpop.eup %4479  ;;  %4075 = vmatprep.subr.bf16.mxu0 %v1992_v34 }
 0x6ce   : > { %1931 = vadd.xlane.f32.xlu1 %v5326_v32  ;;  %4076 = vmatpush3.bf16.msra.mxu0 %v1992_v34  ;;  %v5329_v42 = vpop.eup %4481 }
 0x6cf   : > { %4077 = vmatprep.subr.bf16.mxu0 %v1994_v0  ;;  %v5332_v54 = vpop.eup %4483 }
 0x6d0   : > { %1929 = vadd.xlane.f32.xlu0 %v5329_v42  ;;  %v5335_v59 = vpop.eup %4485  ;;  %v1998_v28 = vpop.permute.xlu0 %1997 }
 0x6d2   : > { %1941 = vadd.xlane.f32.xlu1 %v5332_v54  ;;  %4078 = vmatpush3.bf16.msra.mxu0 %v1994_v0 }
 0x6d3   : > { %v5338_v48 = vpop.eup %4487 }
 0x6d4   : > { %1935 = vadd.xlane.f32.xlu0 %v5335_v59 }
 0x6d6   : > { %1937 = vadd.xlane.f32.xlu1 %v5338_v48 }
 0x6e7   : > { %1999 = vrot.lane.b32.xlu1 %v4887_v4, %s4605_s5 }
 0x6f3   : > { %v1864_v51 = vpop.xlane.xlu1 %1863 }
 0x6f4   : > { %v1880_v21 = vsub.f32 %v5281_v38, %v1864_v51 }
 0x6f6   : > { %v1911_v24 = vmul.f32 1.442695, %v1880_v21 }
 0x6f7   : > { %v1860_v22 = vpop.xlane.xlu1 %1859 }
 0x6f8   : > { %v1878_v20 = vsub.f32 %v5285_v39, %v1860_v22 }
 0x6fa   : > { %v1907_v3 = vmul.f32 1.442695, %v1878_v20 }
 0x6fb   : > { %v1996_v1 = vpop.permute.xlu1 %1995 }
 0x6fc   : > { %4489 = vpow2.f32 %v1907_v3  ;;  %4079 = vmatprep.subr.bf16.mxu0 %v1996_v1 }
 0x6fd   : > { %4080 = vmatpush3.bf16.msra.mxu0 %v1996_v1  ;;  %4491 = vpow2.f32 %v1911_v24 }
 0x6fe   : > { %4081 = vmatprep.subr.bf16.mxu0 %v1998_v28 }
 0x701   : > { %4082 = vmatpush3.bf16.msra.mxu0 %v1998_v28 }
 0x706   : > { %v5345_v26 = vpop.eup %4489 }
 0x707   : > { %1939 = vadd.xlane.f32.xlu0 %v5345_v26  ;;  %v5348_v4 = vpop.eup %4491 }
 0x70b   : > { %1943 = vadd.xlane.f32.xlu0 %v5348_v4 }
 0x745   : > { %v1918_v38 = vpop.xlane.xlu1 %1917 }
 0x749   : > { %v1914_v39 = vpop.xlane.xlu1 %1913 }
 0x74a   : > { %4493 = vrcp.f32 %v1914_v39 }
 0x74d   : > { %v1920_v35 = vpop.xlane.xlu1 %1919  ;;  %v1926_v50 = vpop.xlane.xlu0 %1925 }
 0x751   : > { %v1916_v12 = vpop.xlane.xlu1 %1915  ;;  %v1922_v55 = vpop.xlane.xlu0 %1921 }
 0x752   : > { %4495 = vrcp.f32 %v1916_v12 }
 0x753   : > { %4497 = vrcp.f32 %v1920_v35 }
 0x754   : > { %v4494_v63 = vpop.eup %4493 }
 0x755   : > { %v1928_v37 = vpop.xlane.xlu0 %1927  ;;  %v1924_v52 = vpop.xlane.xlu1 %1923  ;;  %v1961_v25 = vmul.f32 %v4494_v63, %v5297_v6 }
 0x756   : > { %4499 = vrcp.f32 %v1924_v52 }
 0x757   : > { %4501 = vrcp.f32 %v1918_v38 }
 0x758   : > { %4503 = vrcp.f32 %v1922_v55 }
 0x759   : > { %v1934_v40 = vpop.xlane.xlu0 %1933  ;;  %4505 = vrcp.f32 %v1928_v37 }
 0x75b   : > { %v1932_v9 = vpop.xlane.xlu1 %1931 }
 0x75c   : > { %v4496_v53 = vpop.eup %4495 }
 0x75d   : > { %v1962_v29 = vmul.f32 %v4496_v53, %v5310_v23  ;;  %v1930_v14 = vpop.xlane.xlu0 %1929  ;;  %v4498_v34 = vpop.eup %4497 }
 0x75e   : > { %4507 = vrcp.f32 %v1930_v14  ;;  %v1964_v20 = vmul.f32 %v4498_v34, %v5301_v27 }
 0x75f   : > { %v1942_v62 = vpop.xlane.xlu1 %1941  ;;  %v1977_v2 = vpack.c.bf16 %v1962_v29, %v1961_v25  ;;  %4509 = vrcp.f32 %v1926_v50 }
 0x760   : > { %v4500_v51 = vpop.eup %4499  ;;  %4511 = vrcp.f32 %v1932_v9 }
 0x761   : > { %4085 = vmatprep.mubr.bf16.mxu0 %v1977_v2  ;;  %v4502_v22 = vpop.eup %4501  ;;  %v1936_v3 = vpop.xlane.xlu0 %1935  ;;  %v1966_v6 = vmul.f32 %v4500_v51, %v5319_v36 }
 0x762   : > { %v4504_v21 = vpop.eup %4503  ;;  %v1963_v23 = vmul.f32 %v4502_v22, %v5292_v58  ;;  %4513 = vrcp.f32 %v1936_v3 }
 0x763   : > { %v1938_v0 = vpop.xlane.xlu1 %1937  ;;  %v1965_v24 = vmul.f32 %v4504_v21, %v5312_v5  ;;  %v4506_v38 = vpop.eup %4505  ;;  %4515 = vrcp.f32 %v1934_v40 }
 0x764   : > { %v1978_v28 = vpack.c.bf16 %v1964_v20, %v1963_v23  ;;  %v1968_v12 = vmul.f32 %v4506_v38, %v5317_v33  ;;  %4517 = vrcp.f32 %v1938_v0 }
 0x765   : > { %v1979_v39 = vpack.c.bf16 %v1966_v6, %v1965_v24 }
 0x767   : > { %v2000_v1 = vpop.permute.xlu1 %1999 }
 0x768   : > { %4083 = vmatprep.subr.bf16.mxu0 %v2000_v1  ;;  %v4508_v35 = vpop.eup %4507 }
 0x769   : > { %4084 = vmatpush3.bf16.msra.mxu0 %v2000_v1  ;;  %v4510_v50 = vpop.eup %4509  ;;  %v1969_v36 = vmul.f32 %v4508_v35, %v5329_v42 }
 0x76a   : > { %v4512_v27 = vpop.eup %4511  ;;  %v1967_v58 = vmul.f32 %v4510_v50, %v5303_v41 }
 0x76b   : > { %v1970_v55 = vmul.f32 %v4512_v27, %v5326_v32 }
 0x76c   : > { %4086 = vmatmul.mubr.bf16.vlgmr.msra.gmra.mrb[32].mxu0 %v1978_v28  ;;  %v1980_v37 = vpack.c.bf16 %v1968_v12, %v1967_v58  ;;  %v4514_v52 = vpop.eup %4513 }
 0x76d   : > { %4089 = vmatprep.mubr.bf16.mxu0 %v1979_v39  ;;  %v1981_v5 = vpack.c.bf16 %v1970_v55, %v1969_v36  ;;  %v4516_v63 = vpop.eup %4515  ;;  %v1972_v40 = vmul.f32 %v4514_v52, %v5335_v59 }
 0x76e   : > { %v1971_v9 = vmul.f32 %v4516_v63, %v5323_v19  ;;  %v4518_v41 = vpop.eup %4517 }
 0x76f   : > { %v1973_v25 = vmul.f32 %v4518_v41, %v5338_v48  ;;  %v4346_v48 = vld [vmem:[%s6167_s1 + $0x8] sm:$0xff]  }
 0x770   : > { %v1982_v53 = vpack.c.bf16 %v1972_v40, %v1971_v9 }
 0x774   : > { %4090 = vmatmul.mubr.bf16.gmra.mrb[36].mxu0 %v1980_v37 }
 0x775   : > { %4093 = vmatprep.mubr.bf16.mxu0 %v1981_v5 }
 0x77c   : > { %4094 = vmatmul.mubr.bf16.gmra.mrb[40].mxu0 %v1982_v53 }
 0x794   : > { %v1940_v33 = vpop.xlane.xlu0 %1939 }
 0x795   : > { %4519 = vrcp.f32 %v1940_v33 }
 0x796   : > { %4521 = vrcp.f32 %v1942_v62  ;;  %v4345_v62 = vld [vmem:[%s6167_s1] sm:$0xff]  }
 0x797   : > { %4101 = vmatprep.subr.bf16.mxu0 %v4345_v62 }
 0x798   : > { %v1944_v42 = vpop.xlane.xlu0 %1943  ;;  %4102 = vmatpush3.bf16.msra.mxu0 %v4345_v62 }
 0x799   : > { %4523 = vrcp.f32 %v1944_v42  ;;  %4103 = vmatprep.subr.bf16.mxu0 %v4346_v48 }
 0x79c   : > { %4104 = vmatpush3.bf16.msra.mxu0 %v4346_v48 }
 0x79f   : > { %v4520_v32 = vpop.eup %4519 }
 0x7a0   : > { %v1974_v29 = vmul.f32 %v4520_v32, %v5345_v26  ;;  %v4522_v14 = vpop.eup %4521 }
 0x7a1   : > { %v1975_v19 = vmul.f32 %v4522_v14, %v5332_v54 }
 0x7a2   : > { %v1983_v2 = vpack.c.bf16 %v1974_v29, %v1973_v25 }
 0x7a3   : > { %v4524_v34 = vpop.eup %4523 }
 0x7a4   : > { %4097 = vmatprep.mubr.bf16.mxu0 %v1983_v2  ;;  %v1976_v59 = vmul.f32 %v4524_v34, %v5348_v4 }
 0x7a6   : > { %v1984_v0 = vpack.c.bf16 %v1976_v59, %v1975_v19 }
 0x7a8   : > { %4098 = vmatmul.mubr.bf16.gmra.mrb[44].mxu0 %v1984_v0 }
 0x83f   : > { %v4087_v26 = vpop.f32.mrb[32].mxu0 }
 0x840   : > { %v2043_v51 = vpop.f32.mrb[33].mxu0 }
 0x841   : > { %v4088_v22 = vpop.f32.mrb[34].mxu0 }
 0x842   : > { %v4304_v54 = vpack.i.bf16 %v4088_v22, %v4087_v26  ;;  %v2046_v21 = vpop.f32.mrb[35].mxu0 }
 0x843   : > { %v4299_v4 = vpack.i.bf16 %v2046_v21, %v2043_v51 }
 0x844   : > { %4305 = vrot.lane.b32.xlu1 %v4304_v54, %s4606_s29 }
 0x845   : > { %4300 = vrot.lane.b32.xlu0 %v4299_v4, %s4606_s29 }
 0x847   : > { %v4091_v20 = vpop.f32.mrb[36].mxu0 }
 0x848   : > { %v2059_v3 = vpop.f32.mrb[37].mxu0 }
 0x849   : > { %v4092_v1 = vpop.f32.mrb[38].mxu0 }
 0x84a   : > { %v4314_v6 = vpack.i.bf16 %v4092_v1, %v4091_v20  ;;  %v2062_v23 = vpop.f32.mrb[39].mxu0 }
 0x84b   : > { %v4309_v24 = vpack.i.bf16 %v2062_v23, %v2059_v3 }
 0x84c   : > { %4315 = vrot.lane.b32.xlu0 %v4314_v6, %s4606_s29 }
 0x84d   : > { %4310 = vrot.lane.b32.xlu1 %v4309_v24, %s4606_s29 }
 0x84f   : > { %v4095_v28 = vpop.f32.mrb[40].mxu0 }
 0x850   : > { %v2075_v38 = vpop.f32.mrb[41].mxu0 }
 0x851   : > { %v4096_v39 = vpop.f32.mrb[42].mxu0 }
 0x852   : > { %v4324_v35 = vpack.i.bf16 %v4096_v39, %v4095_v28  ;;  %v2078_v50 = vpop.f32.mrb[43].mxu0 }
 0x853   : > { %v4319_v27 = vpack.i.bf16 %v2078_v50, %v2075_v38 }
 0x854   : > { %4325 = vrot.lane.b32.xlu0 %v4324_v35, %s4606_s29 }
 0x855   : > { %4320 = vrot.lane.b32.xlu1 %v4319_v27, %s4606_s29  ;;  %v5416_v27 = vld [vmem:[%s6168_s30] ss:$0 sm:$0xff]  ;;  %s5957_s30 = sshll.u32 %s6188_s3, 3 }
 0x856   : > { %s836_s6 = scalar_lea.vmem %s6181_s10, %s5957_s30 }
 0x87b   : > { %v4099_v12 = vpop.f32.mrb[44].mxu0 }
 0x87c   : > { %v2091_v36 = vpop.f32.mrb[45].mxu0 }
 0x87d   : > { %v4100_v58 = vpop.f32.mrb[46].mxu0 }
 0x87e   : > { %v4334_v55 = vpack.i.bf16 %v4100_v58, %v4099_v12  ;;  %v2094_v37 = vpop.f32.mrb[47].mxu0 }
 0x87f   : > { %v4329_v52 = vpack.i.bf16 %v2094_v37, %v2091_v36 }
 0x880   : > { %4335 = vrot.lane.b32.xlu0 %v4334_v55, %s4606_s29 }
 0x881   : > { %4330 = vrot.lane.b32.xlu1 %v4329_v52, %s4606_s29 }
 0x8b6   : > { %v4306_v5 = vpop.permute.xlu1 %4305 }
 0x8b7   : > { %v4308_v63 = vunpack.i.h.bf16 %v4306_v5  ;;  %v4307_v40 = vunpack.i.l.bf16 %v4306_v5  ;;  %v4301_v9 = vpop.permute.xlu0 %4300 }
 0x8b8   : > { %v4303_v53 = vunpack.i.h.bf16 %v4301_v9  ;;  %v4302_v33 = vunpack.i.l.bf16 %v4301_v9 }
 0x8b9   : > { %v2173_v42 = vsel %vm1237_vm1, %v5203_v44, %v4308_v63  ;;  %v2172_v41 = vsel %vm1237_vm1, %v5199_v61, %v4307_v40 }
 0x8ba   : > { %v2187_v32 = vpack.c.bf16 %v2173_v42, %v2172_v41  ;;  %v2171_v25 = vsel %vm1237_vm1, %v5205_v16, %v4303_v53  ;;  %v2170_v29 = vsel %vm1237_vm1, %v5201_v10, %v4302_v33 }
 0x8bb   : > { %v2186_v14 = vpack.c.bf16 %v2171_v25, %v2170_v29 }
 0x8bd   : > { %4105 = vmatprep.mubr.msk.bf16.mxu0 %vm899_vm0, %v2186_v14  ;;  %v6169_v14 = vld [vmem:[#allocation4_spill] sm:$0xff] }
 0x8be   : > { %v4316_v2 = vpop.permute.xlu0 %4315  ;;  %4106 = vmatmul.mubr.msk.bf16.vlgmr.msra.gmra.mrb[48].mxu0 %vm899_vm0, %v2187_v32 }
 0x8bf   : > { %v4318_v34 = vunpack.i.h.bf16 %v4316_v2  ;;  %v4317_v19 = vunpack.i.l.bf16 %v4316_v2  ;;  %v4311_v59 = vpop.permute.xlu1 %4310 }
 0x8c0   : > { %v4313_v44 = vunpack.i.h.bf16 %v4311_v59  ;;  %v4312_v0 = vunpack.i.l.bf16 %v4311_v59  ;;  %v6171_v59 = vld [vmem:[#allocation3_spill] sm:$0xff] }
 0x8c1   : > { %v2177_v61 = vsel %vm1237_vm1, %v5211_v56, %v4318_v34  ;;  %v2176_v16 = vsel %vm1237_vm1, %v5207_v30, %v4317_v19  ;;  %v6170_v34 = vld [vmem:[#allocation2_spill] sm:$0xff] }
 0x8c2   : > { %v2189_v62 = vpack.c.bf16 %v2177_v61, %v2176_v16  ;;  %v2175_v10 = vsel %vm1237_vm1, %v5213_v17, %v4313_v44  ;;  %v2174_v48 = vsel %vm1237_vm1, %v5209_v57, %v4312_v0 }
 0x8c3   : > { %v2188_v26 = vpack.c.bf16 %v2175_v10, %v2174_v48 }
 0x8c5   : > { %4109 = vmatprep.mubr.msk.bf16.mxu0 %vm899_vm0, %v2188_v26 }
 0x8c6   : > { %v4326_v51 = vpop.permute.xlu0 %4325  ;;  %4110 = vmatmul.mubr.msk.bf16.gmra.mrb[52].mxu0 %vm899_vm0, %v2189_v62 }
 0x8c7   : > { %v4328_v22 = vunpack.i.h.bf16 %v4326_v51  ;;  %v4327_v54 = vunpack.i.l.bf16 %v4326_v51  ;;  %v4321_v21 = vpop.permute.xlu1 %4320 }
 0x8c8   : > { %v4323_v56 = vunpack.i.h.bf16 %v4321_v21  ;;  %v4322_v4 = vunpack.i.l.bf16 %v4321_v21 }
 0x8c9   : > { %v2181_v30 = vsel %vm1237_vm1, %v5219_v18, %v4328_v22  ;;  %v2180_v17 = vsel %vm1237_vm1, %v5215_v15, %v4327_v54  ;;  %v6172_v54 = vld [vmem:[#allocation6_spill] sm:$0xff] }
 0x8ca   : > { %v2191_v20 = vpack.c.bf16 %v2181_v30, %v2180_v17  ;;  %v2179_v57 = vsel %vm1237_vm1, %v5221_v7, %v4323_v56  ;;  %v2178_v3 = vsel %vm1237_vm1, %v5217_v43, %v4322_v4  ;;  %v6173_v30 = vld [vmem:[#allocation8_spill] sm:$0xff] }
 0x8cb   : > { %v2190_v1 = vpack.c.bf16 %v2179_v57, %v2178_v3  ;;  %v6175_v3 = vld [vmem:[#allocation7_spill] sm:$0xff] }
 0x8cd   : > { %4113 = vmatprep.mubr.msk.bf16.mxu0 %vm899_vm0, %v2190_v1 }
 0x8ce   : > { %4114 = vmatmul.mubr.msk.bf16.gmra.mrb[56].mxu0 %vm899_vm0, %v2191_v20  ;;  %v6174_v20 = vld [vmem:[#allocation5_spill] sm:$0xff] }
 0x8f2   : > { %v4336_v6 = vpop.permute.xlu0 %4335 }
 0x8f3   : > { %v4338_v23 = vunpack.i.h.bf16 %v4336_v6  ;;  %v4337_v24 = vunpack.i.l.bf16 %v4336_v6  ;;  %v4331_v28 = vpop.permute.xlu1 %4330 }
 0x8f4   : > { %v4333_v18 = vunpack.i.h.bf16 %v4331_v28  ;;  %v4332_v38 = vunpack.i.l.bf16 %v4331_v28 }
 0x8f5   : > { %v2185_v15 = vsel %vm1237_vm1, %v5227_v8, %v4338_v23  ;;  %v2184_v7 = vsel %vm1237_vm1, %v5223_v11, %v4337_v24 }
 0x8f6   : > { %v2193_v39 = vpack.c.bf16 %v2185_v15, %v2184_v7  ;;  %v2183_v43 = vsel %vm1237_vm1, %v5229_v13, %v4333_v18  ;;  %v2182_v35 = vsel %vm1237_vm1, %v5225_v31, %v4332_v38 }
 0x8f7   : > { %v2192_v50 = vpack.c.bf16 %v2183_v43, %v2182_v35 }
 0x8f9   : > { %4117 = vmatprep.mubr.msk.bf16.mxu0 %vm899_vm0, %v2192_v50  ;;  %v6176_v50 = vld [vmem:[#allocation10_spill] sm:$0xff] }
 0x8fa   : > { %4118 = vmatmul.mubr.msk.bf16.gmra.mrb[60].mxu0 %vm899_vm0, %v2193_v39 }
 0x991   : > { %v4107_v8 = vpop.f32.mrb[48].mxu0 }
 0x992   : > { %v2275_v12 = vpop.f32.mrb[49].mxu0  ;;  %v2284_v31 = vadd.f32 %v4107_v8, %v5416_v27 }
 0x993   : > { %v2276_v11 = vadd.f32 %v5416_v27, %v2275_v12  ;;  %v4108_v36 = vpop.f32.mrb[50].mxu0 }
 0x994   : > { %v2287_v13 = vadd.f32 %v4108_v36, %v5416_v27  ;;  %v2278_v58 = vpop.f32.mrb[51].mxu0  ;;  %v5434_v40 = vadd.f32 %v4808_v49, %v2284_v31 }
 0x995   : > { %v5422_v55 = vadd.f32 %v4802_v45, %v2276_v11  ;;  %v2279_v37 = vadd.f32 %v5416_v27, %v2278_v58  ;;  %v6177_v11 = vld [vmem:[#allocation9_spill] sm:$0xff] }
 0x996   : > { %v5426_v52 = vadd.f32 %v4804_v46, %v2287_v13  ;;  %v2362_v29 = vsel %vm899_vm0, %v5434_v40, 0.0  ;;  %v6178_v13 = vld [vmem:[#allocation12_spill] sm:$0xff] }
 0x997   : > { %v5429_v5 = vadd.f32 %v4806_v47, %v2279_v37  ;;  %v2356_v63 = vsel %vm899_vm0, %v5422_v55, 0.0  ;;  %v6179_v37 = vld [vmem:[#allocation11_spill] sm:$0xff] }
 0x998   : > { %2357 = vadd.xlane.f32.xlu1 %v2356_v63  ;;  %v2365_v47 = vsel %vm899_vm0, %v5426_v52, 0.0 }
 0x999   : > { %v4111_v9 = vpop.f32.mrb[52].mxu0  ;;  %v2359_v45 = vsel %vm899_vm0, %v5429_v5, 0.0 }
 0x99a   : > { %v2291_v53 = vpop.f32.mrb[53].mxu0  ;;  %2360 = vadd.xlane.f32.xlu0 %v2359_v45  ;;  %v2300_v42 = vadd.f32 %v4111_v9, %v5416_v27 }
 0x99b   : > { %v2292_v33 = vadd.f32 %v5416_v27, %v2291_v53  ;;  %v4112_v46 = vpop.f32.mrb[54].mxu0 }
 0x99c   : > { %v2303_v41 = vadd.f32 %v4112_v46, %v5416_v27  ;;  %v2294_v32 = vpop.f32.mrb[55].mxu0  ;;  %2366 = vadd.xlane.f32.xlu1 %v2365_v47  ;;  %v5453_v19 = vadd.f32 %v6170_v34, %v2300_v42 }
 0x99d   : > { %v5444_v49 = vadd.f32 %v4818_v60, %v2292_v33  ;;  %v2295_v25 = vadd.f32 %v5416_v27, %v2294_v32 }
 0x99e   : > { %2363 = vadd.xlane.f32.xlu0 %v2362_v29  ;;  %v5456_v44 = vadd.f32 %v6171_v59, %v2303_v41  ;;  %v2374_v26 = vsel %vm899_vm0, %v5453_v19, 0.0 }
 0x99f   : > { %v5450_v2 = vadd.f32 %v6169_v14, %v2295_v25  ;;  %v2368_v60 = vsel %vm899_vm0, %v5444_v49, 0.0 }
 0x9a0   : > { %v2377_v51 = vsel %vm899_vm0, %v5456_v44, 0.0 }
 0x9a1   : > { %v4115_v0 = vpop.f32.mrb[56].mxu0  ;;  %v2371_v61 = vsel %vm899_vm0, %v5450_v2, 0.0 }
 0x9a2   : > { %v2307_v16 = vpop.f32.mrb[57].mxu0  ;;  %2369 = vadd.xlane.f32.xlu0 %v2368_v60  ;;  %2372 = vadd.xlane.f32.xlu1 %v2371_v61  ;;  %v2316_v22 = vadd.f32 %v4115_v0, %v5416_v27 }
 0x9a3   : > { %v2308_v62 = vadd.f32 %v5416_v27, %v2307_v16  ;;  %v4116_v10 = vpop.f32.mrb[58].mxu0 }
 0x9a4   : > { %v2310_v48 = vpop.f32.mrb[59].mxu0  ;;  %v2319_v56 = vadd.f32 %v4116_v10, %v5416_v27  ;;  %v5477_v57 = vadd.f32 %v6174_v20, %v2316_v22 }
 0x9a5   : > { %v5469_v21 = vadd.f32 %v6172_v54, %v2308_v62  ;;  %v2311_v4 = vadd.f32 %v5416_v27, %v2310_v48 }
 0x9a6   : > { %2375 = vadd.xlane.f32.xlu0 %v2374_v26  ;;  %2378 = vadd.xlane.f32.xlu1 %v2377_v51  ;;  %v5480_v1 = vadd.f32 %v6175_v3, %v2319_v56  ;;  %v2386_v24 = vsel %vm899_vm0, %v5477_v57, 0.0 }
 0x9a7   : > { %v5474_v17 = vadd.f32 %v6173_v30, %v2311_v4  ;;  %v2380_v6 = vsel %vm899_vm0, %v5469_v21, 0.0 }
 0x9a8   : > { %v2389_v28 = vsel %vm899_vm0, %v5480_v1, 0.0 }
 0x9a9   : > { %v2383_v23 = vsel %vm899_vm0, %v5474_v17, 0.0 }
 0x9aa   : > { %2381 = vadd.xlane.f32.xlu0 %v2380_v6  ;;  %2384 = vadd.xlane.f32.xlu1 %v2383_v23 }
 0x9ae   : > { %2387 = vadd.xlane.f32.xlu0 %v2386_v24  ;;  %2390 = vadd.xlane.f32.xlu1 %v2389_v28 }
 0x9cd   : > { %v4119_v18 = vpop.f32.mrb[60].mxu0 }
 0x9ce   : > { %v2332_v38 = vadd.f32 %v4119_v18, %v5416_v27  ;;  %v2323_v15 = vpop.f32.mrb[61].mxu0 }
 0x9cf   : > { %v2324_v7 = vadd.f32 %v5416_v27, %v2323_v15  ;;  %v4120_v39 = vpop.f32.mrb[62].mxu0 }
 0x9d0   : > { %v2335_v43 = vadd.f32 %v4120_v39, %v5416_v27  ;;  %v2326_v35 = vpop.f32.mrb[63].mxu0  ;;  %v5498_v36 = vadd.f32 %v6177_v11, %v2332_v38 }
 0x9d1   : > { %v5494_v8 = vadd.f32 %v6176_v50, %v2324_v7  ;;  %v2327_v12 = vadd.f32 %v5416_v27, %v2326_v35 }
 0x9d2   : > { %v5506_v63 = vadd.f32 %v6179_v37, %v2335_v43  ;;  %v2398_v27 = vsel %vm899_vm0, %v5498_v36, 0.0 }
 0x9d3   : > { %v5501_v58 = vadd.f32 %v6178_v13, %v2327_v12  ;;  %v2392_v31 = vsel %vm899_vm0, %v5494_v8, 0.0 }
 0x9d4   : > { %2393 = vadd.xlane.f32.xlu0 %v2392_v31  ;;  %v2401_v45 = vsel %vm899_vm0, %v5506_v63, 0.0 }
 0x9d5   : > { %v2395_v9 = vsel %vm899_vm0, %v5501_v58, 0.0 }
 0x9d6   : > { %2396 = vadd.xlane.f32.xlu1 %v2395_v9 }
 0x9d8   : > { %2399 = vadd.xlane.f32.xlu0 %v2398_v27 }
 0x9da   : > { %2402 = vadd.xlane.f32.xlu1 %v2401_v45 }
 0xa25   : > { %v2358_v53 = vpop.xlane.xlu1 %2357 }
 0xa26   : > { %v2405_v33 = vmul.f32 0.03125, %v2358_v53 }
 0xa27   : > { %v2361_v46 = vpop.xlane.xlu0 %2360 }
 0xa28   : > { %v5515_v47 = vsub.f32 %v5422_v55, %v2405_v33  ;;  %v2406_v42 = vmul.f32 0.03125, %v2361_v46  ;;  %v4348_v33 = vld [vmem:[%s6110_s12 + $0x8] sm:$0xff]  }
 0xa29   : > { %v2367_v41 = vpop.xlane.xlu1 %2366 }
 0xa2a   : > { %v5518_v32 = vsub.f32 %v5429_v5, %v2406_v42  ;;  %v2408_v25 = vmul.f32 0.03125, %v2367_v41  ;;  %v2437_v29 = vmul.f32 %v5515_v47, %v5515_v47 }
 0xa2b   : > { %v2364_v14 = vpop.xlane.xlu0 %2363 }
 0xa2c   : > { %v5523_v34 = vsub.f32 %v5426_v52, %v2408_v25  ;;  %v2407_v59 = vmul.f32 0.03125, %v2364_v14  ;;  %v2453_v0 = vsel %vm899_vm0, %v2437_v29, 0.0  ;;  %v2438_v55 = vmul.f32 %v5518_v32, %v5518_v32 }
 0xa2d   : > { %2454 = vadd.xlane.f32.xlu0 %v2453_v0 }
 0xa2e   : > { %v5529_v60 = vsub.f32 %v5434_v40, %v2407_v59  ;;  %v2456_v5 = vsel %vm899_vm0, %v2438_v55, 0.0  ;;  %v2440_v61 = vmul.f32 %v5523_v34, %v5523_v34 }
 0xa2f   : > { %v2370_v16 = vpop.xlane.xlu0 %2369  ;;  %2457 = vadd.xlane.f32.xlu1 %v2456_v5  ;;  %v2373_v62 = vpop.xlane.xlu1 %2372 }
 0xa30   : > { %v2409_v52 = vmul.f32 0.03125, %v2370_v16  ;;  %v2410_v10 = vmul.f32 0.03125, %v2373_v62  ;;  %v2439_v48 = vmul.f32 %v5529_v60, %v5529_v60  ;;  %v2462_v22 = vsel %vm899_vm0, %v2440_v61, 0.0 }
 0xa32   : > { %v5537_v26 = vsub.f32 %v5444_v49, %v2409_v52  ;;  %v5540_v51 = vsub.f32 %v5450_v2, %v2410_v10  ;;  %v2459_v40 = vsel %vm899_vm0, %v2439_v48, 0.0 }
 0xa33   : > { %v2376_v54 = vpop.xlane.xlu0 %2375  ;;  %2460 = vadd.xlane.f32.xlu0 %v2459_v40  ;;  %2463 = vadd.xlane.f32.xlu1 %v2462_v22  ;;  %v2379_v56 = vpop.xlane.xlu1 %2378  ;;  %v4350_v22 = vld [vmem:[%s6112_s14 + $0x8] sm:$0xff]  }
 0xa34   : > { %v2411_v4 = vmul.f32 0.03125, %v2376_v54  ;;  %v2412_v30 = vmul.f32 0.03125, %v2379_v56  ;;  %v2441_v20 = vmul.f32 %v5537_v26, %v5537_v26  ;;  %v2442_v49 = vmul.f32 %v5540_v51, %v5540_v51  ;;  %v4351_v54 = vld [vmem:[%s6112_s14 + $0x10] sm:$0xff]   ;;  %v4352_v56 = vld [vmem:[%s6112_s14 + $0x18] sm:$0xff]  }
 0xa36   : > { %v5549_v3 = vsub.f32 %v5453_v19, %v2411_v4  ;;  %v5552_v2 = vsub.f32 %v5456_v44, %v2412_v30  ;;  %v2465_v6 = vsel %vm899_vm0, %v2441_v20, 0.0  ;;  %v2468_v23 = vsel %vm899_vm0, %v2442_v49, 0.0  ;;  %v4353_v4 = vld [vmem:[%s6112_s14 + $0x20] sm:$0xff]   ;;  %v4354_v30 = vld [vmem:[%s6112_s14 + $0x28] sm:$0xff]  }
 0xa37   : > { %v2382_v24 = vpop.xlane.xlu0 %2381  ;;  %2466 = vadd.xlane.f32.xlu0 %v2465_v6  ;;  %2469 = vadd.xlane.f32.xlu1 %v2468_v23  ;;  %v2385_v28 = vpop.xlane.xlu1 %2384 }
 0xa38   : > { %v2413_v18 = vmul.f32 0.03125, %v2382_v24  ;;  %v2414_v38 = vmul.f32 0.03125, %v2385_v28  ;;  %v2443_v15 = vmul.f32 %v5549_v3, %v5549_v3  ;;  %v2444_v19 = vmul.f32 %v5552_v2, %v5552_v2 }
 0xa3a   : > { %v5561_v7 = vsub.f32 %v5469_v21, %v2413_v18  ;;  %v5564_v44 = vsub.f32 %v5474_v17, %v2414_v38  ;;  %v2471_v39 = vsel %vm899_vm0, %v2443_v15, 0.0  ;;  %v2474_v43 = vsel %vm899_vm0, %v2444_v19, 0.0 }
 0xa3b   : > { %v2388_v35 = vpop.xlane.xlu0 %2387  ;;  %2472 = vadd.xlane.f32.xlu0 %v2471_v39  ;;  %2475 = vadd.xlane.f32.xlu1 %v2474_v43  ;;  %v2391_v50 = vpop.xlane.xlu1 %2390 }
 0xa3c   : > { %v2415_v12 = vmul.f32 0.03125, %v2388_v35  ;;  %v2416_v11 = vmul.f32 0.03125, %v2391_v50  ;;  %v2445_v13 = vmul.f32 %v5561_v7, %v5561_v7  ;;  %v2446_v21 = vmul.f32 %v5564_v44, %v5564_v44 }
 0xa3e   : > { %v5573_v31 = vsub.f32 %v5477_v57, %v2415_v12  ;;  %v5576_v17 = vsub.f32 %v5480_v1, %v2416_v11  ;;  %v2477_v37 = vsel %vm899_vm0, %v2445_v13, 0.0  ;;  %v2480_v9 = vsel %vm899_vm0, %v2446_v21, 0.0  ;;  %v4347_v1 = vld [vmem:[%s6110_s12] sm:$0xff]  }
 0xa3f   : > { %2478 = vadd.xlane.f32.xlu0 %v2477_v37  ;;  %2481 = vadd.xlane.f32.xlu1 %v2480_v9 }
 0xa40   : > { %v2447_v27 = vmul.f32 %v5573_v31, %v5573_v31  ;;  %v2448_v45 = vmul.f32 %v5576_v17, %v5576_v17  ;;  %4121 = vmatprep.subr.bf16.mxu1 %v4347_v1 }
 0xa41   : > { %4122 = vmatpush3.bf16.msra.mxu1 %v4347_v1 }
 0xa42   : > { %v2483_v53 = vsel %vm899_vm0, %v2447_v27, 0.0  ;;  %v2486_v57 = vsel %vm899_vm0, %v2448_v45, 0.0  ;;  %4123 = vmatprep.subr.bf16.mxu1 %v4348_v33  ;;  %v5637_v45 = vld [vmem:[%s6180_s9] ss:$0 sm:$0xff]  ;;  %s846_s9 = scalar_lea.vmem %s6182_s0, %s5957_s30  ;;  %s850_s0 = scalar_lea.vmem %s6124_s26, %s5957_s30 }
 0xa43   : > { %2484 = vadd.xlane.f32.xlu0 %v2483_v53  ;;  %2487 = vadd.xlane.f32.xlu1 %v2486_v57 }
 0xa45   : > { %4124 = vmatpush3.bf16.msra.mxu1 %v4348_v33 }
 0xa61   : > { %v2394_v46 = vpop.xlane.xlu0 %2393 }
 0xa62   : > { %v2417_v42 = vmul.f32 0.03125, %v2394_v46 }
 0xa63   : > { %v2397_v41 = vpop.xlane.xlu1 %2396 }
 0xa64   : > { %v5593_v25 = vsub.f32 %v5494_v8, %v2417_v42  ;;  %v2418_v29 = vmul.f32 0.03125, %v2397_v41 }
 0xa65   : > { %v2400_v14 = vpop.xlane.xlu0 %2399 }
 0xa66   : > { %v5596_v59 = vsub.f32 %v5501_v58, %v2418_v29  ;;  %v2419_v0 = vmul.f32 0.03125, %v2400_v14  ;;  %v2449_v55 = vmul.f32 %v5593_v25, %v5593_v25 }
 0xa67   : > { %v2403_v5 = vpop.xlane.xlu1 %2402 }
 0xa68   : > { %v5601_v61 = vsub.f32 %v5498_v36, %v2419_v0  ;;  %v2420_v16 = vmul.f32 0.03125, %v2403_v5  ;;  %v2489_v62 = vsel %vm899_vm0, %v2449_v55, 0.0  ;;  %v2450_v8 = vmul.f32 %v5596_v59, %v5596_v59  ;;  %v5645_v55 = vld [vmem:[%s6109_s11] ss:$0 sm:$0xff] }
 0xa69   : > { %2490 = vadd.xlane.f32.xlu0 %v2489_v62 }
 0xa6a   : > { %v5607_v52 = vsub.f32 %v5506_v63, %v2420_v16  ;;  %v2492_v58 = vsel %vm899_vm0, %v2450_v8, 0.0  ;;  %v2451_v10 = vmul.f32 %v5601_v61, %v5601_v61  ;;  %v4349_v63 = vld [vmem:[%s6112_s14] sm:$0xff]  }
 0xa6b   : > { %2493 = vadd.xlane.f32.xlu1 %v2492_v58  ;;  %4141 = vmatprep.subr.bf16.mxu0 %v4349_v63 }
 0xa6c   : > { %v2495_v48 = vsel %vm899_vm0, %v2451_v10, 0.0  ;;  %v2452_v36 = vmul.f32 %v5607_v52, %v5607_v52  ;;  %4142 = vmatpush3.bf16.msra.mxu0 %v4349_v63 }
 0xa6d   : > { %2496 = vadd.xlane.f32.xlu0 %v2495_v48  ;;  %4143 = vmatprep.subr.bf16.mxu0 %v4350_v22 }
 0xa6e   : > { %v2498_v40 = vsel %vm899_vm0, %v2452_v36, 0.0 }
 0xa6f   : > { %2499 = vadd.xlane.f32.xlu1 %v2498_v40 }
 0xa70   : > { %4144 = vmatpush3.bf16.msra.mxu0 %v4350_v22 }
 0xa71   : > { %4145 = vmatprep.subr.bf16.mxu0 %v4351_v54 }
 0xa74   : > { %4146 = vmatpush3.bf16.msra.mxu0 %v4351_v54 }
 0xa75   : > { %4147 = vmatprep.subr.bf16.mxu0 %v4352_v56 }
 0xa78   : > { %4148 = vmatpush3.bf16.msra.mxu0 %v4352_v56 }
 0xa79   : > { %4149 = vmatprep.subr.bf16.mxu0 %v4353_v4 }
 0xa7c   : > { %4150 = vmatpush3.bf16.msra.mxu0 %v4353_v4 }
 0xa7d   : > { %4151 = vmatprep.subr.bf16.mxu0 %v4354_v30 }
 0xa80   : > { %4152 = vmatpush3.bf16.msra.mxu0 %v4354_v30 }
 0xaba   : > { %v2455_v20 = vpop.xlane.xlu0 %2454 }
 0xabb   : > { %v2501_v49 = vmul.f32 0.03125, %v2455_v20 }
 0xabc   : > { %v2458_v6 = vpop.xlane.xlu1 %2457 }
 0xabd   : > { %v2517_v23 = vadd.f32 1e-05, %v2501_v49  ;;  %v2502_v24 = vmul.f32 0.03125, %v2458_v6 }
 0xabf   : > { %4525 = vrsqrt.f32 %v2517_v23  ;;  %v2518_v28 = vadd.f32 1e-05, %v2502_v24 }
 0xac0   : > { %v2461_v18 = vpop.xlane.xlu0 %2460  ;;  %v2464_v38 = vpop.xlane.xlu1 %2463 }
 0xac1   : > { %4527 = vrsqrt.f32 %v2518_v28  ;;  %v2503_v15 = vmul.f32 0.03125, %v2461_v18  ;;  %v2504_v19 = vmul.f32 0.03125, %v2464_v38 }
 0xac3   : > { %v2519_v39 = vadd.f32 1e-05, %v2503_v15  ;;  %v2520_v43 = vadd.f32 1e-05, %v2504_v19 }
 0xac4   : > { %v2467_v35 = vpop.xlane.xlu0 %2466  ;;  %v2470_v50 = vpop.xlane.xlu1 %2469 }
 0xac5   : > { %4529 = vrsqrt.f32 %v2519_v39  ;;  %v2505_v12 = vmul.f32 0.03125, %v2467_v35  ;;  %v2506_v11 = vmul.f32 0.03125, %v2470_v50 }
 0xac6   : > { %4531 = vrsqrt.f32 %v2520_v43 }
 0xac7   : > { %v2521_v13 = vadd.f32 1e-05, %v2505_v12  ;;  %v2522_v21 = vadd.f32 1e-05, %v2506_v11 }
 0xac8   : > { %v2473_v37 = vpop.xlane.xlu0 %2472  ;;  %v2476_v9 = vpop.xlane.xlu1 %2475 }
 0xac9   : > { %v4526_v27 = vpop.eup %4525  ;;  %4533 = vrsqrt.f32 %v2521_v13  ;;  %v2507_v53 = vmul.f32 0.03125, %v2473_v37  ;;  %v2508_v57 = vmul.f32 0.03125, %v2476_v9 }
 0xaca   : > { %v2549_v1 = vmul.f32 %v4526_v27, %v5515_v47  ;;  %4535 = vrsqrt.f32 %v2522_v21 }
 0xacb   : > { %v4528_v33 = vpop.eup %4527  ;;  %v2523_v46 = vadd.f32 1e-05, %v2507_v53  ;;  %v2524_v42 = vadd.f32 1e-05, %v2508_v57 }
 0xacc   : > { %v2550_v41 = vmul.f32 %v4528_v33, %v5518_v32  ;;  %v2479_v29 = vpop.xlane.xlu0 %2478  ;;  %v2482_v14 = vpop.xlane.xlu1 %2481  ;;  %v2571_v0 = vmul.f32 %v5637_v45, %v2549_v1 }
 0xacd   : > { %4537 = vrsqrt.f32 %v2523_v46  ;;  %v2509_v5 = vmul.f32 0.03125, %v2479_v29  ;;  %v2510_v16 = vmul.f32 0.03125, %v2482_v14 }
 0xace   : > { %4539 = vrsqrt.f32 %v2524_v42  ;;  %v2572_v47 = vmul.f32 %v5637_v45, %v2550_v41  ;;  %v5650_v40 = vadd.f32 %v5645_v55, %v2571_v0 }
 0xacf   : > { %v4530_v62 = vpop.eup %4529  ;;  %v2525_v8 = vadd.f32 1e-05, %v2509_v5  ;;  %v2526_v58 = vadd.f32 1e-05, %v2510_v16 }
 0xad0   : > { %v4532_v10 = vpop.eup %4531  ;;  %v2551_v32 = vmul.f32 %v4530_v62, %v5529_v60  ;;  %v2485_v48 = vpop.xlane.xlu0 %2484  ;;  %v5653_v63 = vadd.f32 %v5645_v55, %v2572_v47 }
 0xad1   : > { %v2488_v36 = vpop.xlane.xlu1 %2487  ;;  %v2552_v22 = vmul.f32 %v4532_v10, %v5523_v34  ;;  %4541 = vrsqrt.f32 %v2525_v8  ;;  %v2511_v54 = vmul.f32 0.03125, %v2485_v48 }
 0xad2   : > { %v2512_v56 = vmul.f32 0.03125, %v2488_v36  ;;  %v2573_v4 = vmul.f32 %v5637_v45, %v2551_v32  ;;  %4543 = vrsqrt.f32 %v2526_v58  ;;  %v2609_v30 = vpack.c.bf16 %v5653_v63, %v5650_v40 }
 0xad3   : > { %v4534_v60 = vpop.eup %4533  ;;  %v2574_v20 = vmul.f32 %v5637_v45, %v2552_v22  ;;  %v2527_v49 = vadd.f32 1e-05, %v2511_v54 }
 0xad4   : > { %v2528_v6 = vadd.f32 1e-05, %v2512_v56  ;;  %v4536_v23 = vpop.eup %4535  ;;  %v5661_v24 = vadd.f32 %v5645_v55, %v2573_v4  ;;  %v2553_v34 = vmul.f32 %v4534_v60, %v5537_v26  ;;  %4125 = vmatprep.mubr.msk.bf16.mxu1 %vm899_vm0, %v2609_v30 }
 0xad5   : > { %v5666_v28 = vadd.f32 %v5645_v55, %v2574_v20  ;;  %v2554_v18 = vmul.f32 %v4536_v23, %v5540_v51  ;;  %4545 = vrsqrt.f32 %v2527_v49 }
 0xad6   : > { %4547 = vrsqrt.f32 %v2528_v6  ;;  %v2575_v38 = vmul.f32 %v5637_v45, %v2553_v34 }
 0xad7   : > { %v4538_v15 = vpop.eup %4537  ;;  %v2610_v19 = vpack.c.bf16 %v5666_v28, %v5661_v24  ;;  %v2576_v39 = vmul.f32 %v5637_v45, %v2554_v18 }
 0xad8   : > { %v4540_v43 = vpop.eup %4539  ;;  %v2555_v26 = vmul.f32 %v4538_v15, %v5549_v3  ;;  %v5675_v35 = vadd.f32 %v5645_v55, %v2575_v38 }
 0xad9   : > { %v2556_v50 = vmul.f32 %v4540_v43, %v5552_v2  ;;  %4126 = vmatmul.mubr.msk.bf16.vlgmr.msra.gmra.mrb[48].mxu1 %vm899_vm0, %v2610_v19  ;;  %v5680_v51 = vadd.f32 %v5645_v55, %v2576_v39 }
 0xada   : > { %v2577_v12 = vmul.f32 %v5637_v45, %v2555_v26  ;;  %v4355_v26 = vld [vmem:[%s6112_s14 + $0x30] sm:$0xff]  }
 0xadb   : > { %v4542_v11 = vpop.eup %4541  ;;  %v2611_v13 = vpack.c.bf16 %v5680_v51, %v5675_v35  ;;  %v2578_v21 = vmul.f32 %v5637_v45, %v2556_v50  ;;  %4153 = vmatprep.subr.bf16.mxu0 %v4355_v26 }
 0xadc   : > { %v4544_v37 = vpop.eup %4543  ;;  %v2557_v3 = vmul.f32 %v4542_v11, %v5561_v7  ;;  %v5688_v9 = vadd.f32 %v5645_v55, %v2577_v12  ;;  %4154 = vmatpush3.bf16.msra.mxu0 %v4355_v26 }
 0xadd   : > { %v2558_v2 = vmul.f32 %v4544_v37, %v5564_v44  ;;  %4129 = vmatprep.mubr.msk.bf16.mxu1 %vm899_vm0, %v2611_v13  ;;  %v5693_v27 = vadd.f32 %v5645_v55, %v2578_v21 }
 0xade   : > { %v2579_v53 = vmul.f32 %v5637_v45, %v2557_v3 }
 0xadf   : > { %v4546_v57 = vpop.eup %4545  ;;  %v2612_v1 = vpack.c.bf16 %v5693_v27, %v5688_v9  ;;  %v2580_v33 = vmul.f32 %v5637_v45, %v2558_v2 }
 0xae0   : > { %v4548_v46 = vpop.eup %4547  ;;  %v2559_v7 = vmul.f32 %v4546_v57, %v5573_v31  ;;  %v5701_v42 = vadd.f32 %v5645_v55, %v2579_v53 }
 0xae1   : > { %v2560_v44 = vmul.f32 %v4548_v46, %v5576_v17  ;;  %4130 = vmatmul.mubr.msk.bf16.gmra.mrb[52].mxu1 %vm899_vm0, %v2612_v1  ;;  %v5706_v41 = vadd.f32 %v5645_v55, %v2580_v33 }
 0xae2   : > { %v2581_v29 = vmul.f32 %v5637_v45, %v2559_v7 }
 0xae3   : > { %v2613_v14 = vpack.c.bf16 %v5706_v41, %v5701_v42  ;;  %v2582_v0 = vmul.f32 %v5637_v45, %v2560_v44 }
 0xae4   : > { %v5713_v5 = vadd.f32 %v5645_v55, %v2581_v29 }
 0xae5   : > { %4133 = vmatprep.mubr.msk.bf16.mxu1 %vm899_vm0, %v2613_v14  ;;  %v5717_v31 = vadd.f32 %v5645_v55, %v2582_v0 }
 0xae7   : > { %v2614_v17 = vpack.c.bf16 %v5717_v31, %v5713_v5 }
 0xae9   : > { %4134 = vmatmul.mubr.msk.bf16.gmra.mrb[56].mxu1 %vm899_vm0, %v2614_v17 }
 0xaf6   : > { %v2491_v16 = vpop.xlane.xlu0 %2490 }
 0xaf7   : > { %v2513_v47 = vmul.f32 0.03125, %v2491_v16 }
 0xaf8   : > { %v2494_v62 = vpop.xlane.xlu1 %2493 }
 0xaf9   : > { %v2529_v8 = vadd.f32 1e-05, %v2513_v47  ;;  %v2514_v58 = vmul.f32 0.03125, %v2494_v62 }
 0xafa   : > { %v2497_v10 = vpop.xlane.xlu0 %2496 }
 0xafb   : > { %4549 = vrsqrt.f32 %v2529_v8  ;;  %v2530_v32 = vadd.f32 1e-05, %v2514_v58  ;;  %v2515_v48 = vmul.f32 0.03125, %v2497_v10 }
 0xafc   : > { %v2500_v36 = vpop.xlane.xlu1 %2499 }
 0xafd   : > { %4551 = vrsqrt.f32 %v2530_v32  ;;  %v2531_v22 = vadd.f32 1e-05, %v2515_v48  ;;  %v2516_v54 = vmul.f32 0.03125, %v2500_v36 }
 0xaff   : > { %4553 = vrsqrt.f32 %v2531_v22  ;;  %v2532_v56 = vadd.f32 1e-05, %v2516_v54 }
 0xb01   : > { %4555 = vrsqrt.f32 %v2532_v56 }
 0xb05   : > { %v4550_v4 = vpop.eup %4549 }
 0xb06   : > { %v2561_v30 = vmul.f32 %v4550_v4, %v5593_v25 }
 0xb07   : > { %v4552_v60 = vpop.eup %4551 }
 0xb08   : > { %v2562_v20 = vmul.f32 %v4552_v60, %v5596_v59  ;;  %v2583_v49 = vmul.f32 %v5637_v45, %v2561_v30 }
 0xb09   : > { %v4554_v6 = vpop.eup %4553 }
 0xb0a   : > { %v2563_v23 = vmul.f32 %v4554_v6, %v5601_v61  ;;  %v2584_v34 = vmul.f32 %v5637_v45, %v2562_v20  ;;  %v5729_v15 = vadd.f32 %v5645_v55, %v2583_v49 }
 0xb0b   : > { %v4556_v18 = vpop.eup %4555 }
 0xb0c   : > { %v2564_v38 = vmul.f32 %v4556_v18, %v5607_v52  ;;  %v5732_v19 = vadd.f32 %v5645_v55, %v2584_v34  ;;  %v2585_v25 = vmul.f32 %v5637_v45, %v2563_v23 }
 0xb0e   : > { %v2615_v59 = vpack.c.bf16 %v5732_v19, %v5729_v15  ;;  %v2586_v39 = vmul.f32 %v5637_v45, %v2564_v38  ;;  %v5739_v61 = vadd.f32 %v5645_v55, %v2585_v25  ;;  %v4356_v45 = vld [vmem:[%s6112_s14 + $0x38] sm:$0xff]  }
 0xb0f   : > { %4155 = vmatprep.subr.bf16.mxu0 %v4356_v45 }
 0xb10   : > { %4137 = vmatprep.mubr.msk.bf16.mxu1 %vm899_vm0, %v2615_v59  ;;  %v5743_v52 = vadd.f32 %v5645_v55, %v2586_v39  ;;  %4156 = vmatpush3.bf16.msra.mxu0 %v4356_v45  ;;  %v3741_v55 = vld [vmem:[%s6111_s13] ss:$0 sm:$0xff] }
 0xb12   : > { %v2616_v43 = vpack.c.bf16 %v5743_v52, %v5739_v61 }
 0xb14   : > { %4138 = vmatmul.mubr.msk.bf16.gmra.mrb[60].mxu1 %vm899_vm0, %v2616_v43 }
 0xbac   : > { %v4127_v50 = vpop.f32.mrb[48].mxu1 }
 0xbad   : > { %v2707_v12 = vadd.f32 %v4127_v50, %v3741_v55  ;;  %v2698_v11 = vpop.f32.mrb[49].mxu1 }
 0xbae   : > { %v2699_v13 = vadd.f32 %v3741_v55, %v2698_v11  ;;  %v4128_v21 = vpop.f32.mrb[50].mxu1 }
 0xbaf   : > { %v2710_v37 = vadd.f32 %v4128_v21, %v3741_v55  ;;  %v2701_v3 = vpop.f32.mrb[51].mxu1  ;;  %v2763_v53 = vmax.f32 %v2707_v12, 0.0 }
 0xbb0   : > { %v2702_v2 = vadd.f32 %v3741_v55, %v2701_v3  ;;  %v2761_v1 = vmax.f32 %v2699_v13, 0.0 }
 0xbb1   : > { %v2764_v57 = vmax.f32 %v2710_v37, 0.0 }
 0xbb2   : > { %v2762_v33 = vmax.f32 %v2702_v2, 0.0 }
 0xbb3   : > { %v2778_v46 = vpack.c.bf16 %v2764_v57, %v2763_v53  ;;  %v5760_v57 = vld [vmem:[%s6113_s15] ss:$0 sm:$0xff] }
 0xbb4   : > { %v2777_v7 = vpack.c.bf16 %v2762_v33, %v2761_v1  ;;  %v4131_v44 = vpop.f32.mrb[52].mxu1 }
 0xbb5   : > { %v2723_v29 = vadd.f32 %v4131_v44, %v3741_v55  ;;  %v2714_v14 = vpop.f32.mrb[53].mxu1 }
 0xbb6   : > { %v2715_v0 = vadd.f32 %v3741_v55, %v2714_v14  ;;  %v4132_v17 = vpop.f32.mrb[54].mxu1  ;;  %4157 = vmatprep.mubr.bf16.mxu0 %v2777_v7 }
 0xbb7   : > { %v2726_v16 = vadd.f32 %v4132_v17, %v3741_v55  ;;  %v2717_v47 = vpop.f32.mrb[55].mxu1  ;;  %4158 = vmatmul.mubr.bf16.vlgmr.msra.gmra.mrb[64].mxu0 %v2778_v46  ;;  %v2767_v8 = vmax.f32 %v2723_v29, 0.0 }
 0xbb8   : > { %v2718_v62 = vadd.f32 %v3741_v55, %v2717_v47  ;;  %v2765_v10 = vmax.f32 %v2715_v0, 0.0 }
 0xbb9   : > { %v2768_v58 = vmax.f32 %v2726_v16, 0.0 }
 0xbba   : > { %v2766_v32 = vmax.f32 %v2718_v62, 0.0 }
 0xbbb   : > { %v2780_v48 = vpack.c.bf16 %v2768_v58, %v2767_v8 }
 0xbbc   : > { %v2779_v36 = vpack.c.bf16 %v2766_v32, %v2765_v10  ;;  %v4135_v22 = vpop.f32.mrb[56].mxu1 }
 0xbbd   : > { %v2739_v54 = vadd.f32 %v4135_v22, %v3741_v55  ;;  %v2730_v56 = vpop.f32.mrb[57].mxu1 }
 0xbbe   : > { %v2731_v4 = vadd.f32 %v3741_v55, %v2730_v56  ;;  %v4136_v30 = vpop.f32.mrb[58].mxu1  ;;  %4161 = vmatprep.mubr.bf16.mxu0 %v2779_v36 }
 0xbbf   : > { %v2742_v60 = vadd.f32 %v4136_v30, %v3741_v55  ;;  %v2733_v20 = vpop.f32.mrb[59].mxu1  ;;  %4162 = vmatmul.mubr.bf16.gmra.mrb[68].mxu0 %v2780_v48  ;;  %v2771_v6 = vmax.f32 %v2739_v54, 0.0 }
 0xbc0   : > { %v2734_v49 = vadd.f32 %v3741_v55, %v2733_v20  ;;  %v2769_v34 = vmax.f32 %v2731_v4, 0.0 }
 0xbc1   : > { %v2772_v23 = vmax.f32 %v2742_v60, 0.0 }
 0xbc2   : > { %v2770_v18 = vmax.f32 %v2734_v49, 0.0 }
 0xbc3   : > { %v2782_v38 = vpack.c.bf16 %v2772_v23, %v2771_v6 }
 0xbc4   : > { %v2781_v25 = vpack.c.bf16 %v2770_v18, %v2769_v34 }
 0xbc6   : > { %4165 = vmatprep.mubr.bf16.mxu0 %v2781_v25 }
 0xbc7   : > { %4166 = vmatmul.mubr.bf16.gmra.mrb[72].mxu0 %v2782_v38 }
 0xbe7   : > { %v4139_v59 = vpop.f32.mrb[60].mxu1 }
 0xbe8   : > { %v2755_v39 = vadd.f32 %v4139_v59, %v3741_v55  ;;  %v2746_v43 = vpop.f32.mrb[61].mxu1 }
 0xbe9   : > { %v2747_v26 = vadd.f32 %v3741_v55, %v2746_v43  ;;  %v4140_v45 = vpop.f32.mrb[62].mxu1 }
 0xbea   : > { %v2758_v50 = vadd.f32 %v4140_v45, %v3741_v55  ;;  %v2749_v12 = vpop.f32.mrb[63].mxu1  ;;  %v2775_v13 = vmax.f32 %v2755_v39, 0.0 }
 0xbeb   : > { %v2750_v11 = vadd.f32 %v3741_v55, %v2749_v12  ;;  %v2773_v37 = vmax.f32 %v2747_v26, 0.0 }
 0xbec   : > { %v2776_v21 = vmax.f32 %v2758_v50, 0.0 }
 0xbed   : > { %v2774_v3 = vmax.f32 %v2750_v11, 0.0 }
 0xbee   : > { %v2784_v2 = vpack.c.bf16 %v2776_v21, %v2775_v13 }
 0xbef   : > { %v2783_v53 = vpack.c.bf16 %v2774_v3, %v2773_v37 }
 0xbf1   : > { %4169 = vmatprep.mubr.bf16.mxu0 %v2783_v53 }
 0xbf2   : > { %4170 = vmatmul.mubr.bf16.gmra.mrb[76].mxu0 %v2784_v2 }
 0xc8a   : > { %v4159_v1 = vpop.f32.mrb[64].mxu0 }
 0xc8b   : > { %v2890_v33 = vpop.f32.mrb[65].mxu0  ;;  %v2899_v46 = vadd.f32 %v4159_v1, %v5760_v57 }
 0xc8c   : > { %v2891_v7 = vadd.f32 %v5760_v57, %v2890_v33  ;;  %v4160_v55 = vpop.f32.mrb[66].mxu0 }
 0xc8d   : > { %v2893_v44 = vpop.f32.mrb[67].mxu0  ;;  %v2902_v14 = vadd.f32 %v4160_v55, %v5760_v57  ;;  %v5770_v17 = vadd.f32 %v2899_v46, %v5661_v24 }
 0xc8e   : > { %v5765_v29 = vadd.f32 %v2891_v7, %v5650_v40  ;;  %v2894_v0 = vadd.f32 %v5760_v57, %v2893_v44 }
 0xc8f   : > { %v5778_v62 = vadd.f32 %v2902_v14, %v5666_v28 }
 0xc90   : > { %v5773_v16 = vadd.f32 %v2894_v0, %v5653_v63  ;;  %v2971_v47 = vsel %vm899_vm0, %v5765_v29, 0.0  ;;  %v2977_v63 = vsel %vm899_vm0, %v5770_v17, 0.0 }
 0xc91   : > { %2972 = vadd.xlane.f32.xlu0 %v2971_v47  ;;  %v2980_v54 = vsel %vm899_vm0, %v5778_v62, 0.0 }
 0xc92   : > { %v4163_v8 = vpop.f32.mrb[68].mxu0  ;;  %v2974_v40 = vsel %vm899_vm0, %v5773_v16, 0.0 }
 0xc93   : > { %2975 = vadd.xlane.f32.xlu1 %v2974_v40  ;;  %v2906_v58 = vpop.f32.mrb[69].mxu0  ;;  %v2915_v10 = vadd.f32 %v4163_v8, %v5760_v57 }
 0xc94   : > { %v2907_v24 = vadd.f32 %v5760_v57, %v2906_v58  ;;  %v4164_v32 = vpop.f32.mrb[70].mxu0 }
 0xc95   : > { %2978 = vadd.xlane.f32.xlu0 %v2977_v63  ;;  %v2909_v48 = vpop.f32.mrb[71].mxu0  ;;  %v2918_v28 = vadd.f32 %v4164_v32, %v5760_v57  ;;  %v5794_v56 = vadd.f32 %v2915_v10, %v5688_v9 }
 0xc96   : > { %v5787_v36 = vadd.f32 %v2907_v24, %v5675_v35  ;;  %v2910_v22 = vadd.f32 %v5760_v57, %v2909_v48 }
 0xc97   : > { %2981 = vadd.xlane.f32.xlu1 %v2980_v54  ;;  %v5802_v35 = vadd.f32 %v2918_v28, %v5693_v27 }
 0xc98   : > { %v5797_v4 = vadd.f32 %v2910_v22, %v5680_v51  ;;  %v2983_v30 = vsel %vm899_vm0, %v5787_v36, 0.0  ;;  %v2989_v51 = vsel %vm899_vm0, %v5794_v56, 0.0 }
 0xc99   : > { %2984 = vadd.xlane.f32.xlu0 %v2983_v30  ;;  %v2992_v25 = vsel %vm899_vm0, %v5802_v35, 0.0 }
 0xc9a   : > { %v4167_v60 = vpop.f32.mrb[72].mxu0  ;;  %v2986_v20 = vsel %vm899_vm0, %v5797_v4, 0.0 }
 0xc9b   : > { %2987 = vadd.xlane.f32.xlu1 %v2986_v20  ;;  %v2922_v49 = vpop.f32.mrb[73].mxu0  ;;  %v2931_v6 = vadd.f32 %v4167_v60, %v5760_v57 }
 0xc9c   : > { %v2923_v9 = vadd.f32 %v5760_v57, %v2922_v49  ;;  %v4168_v23 = vpop.f32.mrb[74].mxu0 }
 0xc9d   : > { %2990 = vadd.xlane.f32.xlu0 %v2989_v51  ;;  %v2925_v34 = vpop.f32.mrb[75].mxu0  ;;  %v2934_v27 = vadd.f32 %v4168_v23, %v5760_v57  ;;  %v5818_v59 = vadd.f32 %v2931_v6, %v5713_v5 }
 0xc9e   : > { %v5811_v18 = vadd.f32 %v2923_v9, %v5701_v42  ;;  %v2926_v38 = vadd.f32 %v5760_v57, %v2925_v34 }
 0xc9f   : > { %2993 = vadd.xlane.f32.xlu1 %v2992_v25  ;;  %v5826_v42 = vadd.f32 %v2934_v27, %v5717_v31  ;;  %v3001_v45 = vsel %vm899_vm0, %v5818_v59, 0.0 }
 0xca0   : > { %v5821_v39 = vadd.f32 %v2926_v38, %v5706_v41  ;;  %v2995_v43 = vsel %vm899_vm0, %v5811_v18, 0.0 }
 0xca1   : > { %2996 = vadd.xlane.f32.xlu0 %v2995_v43  ;;  %v3004_v5 = vsel %vm899_vm0, %v5826_v42, 0.0 }
 0xca2   : > { %v2998_v26 = vsel %vm899_vm0, %v5821_v39, 0.0 }
 0xca3   : > { %2999 = vadd.xlane.f32.xlu1 %v2998_v26 }
 0xca5   : > { %3002 = vadd.xlane.f32.xlu0 %v3001_v45 }
 0xca7   : > { %3005 = vadd.xlane.f32.xlu1 %v3004_v5 }
 0xcc5   : > { %v4171_v41 = vpop.f32.mrb[76].mxu0 }
 0xcc6   : > { %v2938_v50 = vpop.f32.mrb[77].mxu0  ;;  %v2947_v12 = vadd.f32 %v4171_v41, %v5760_v57 }
 0xcc7   : > { %v2939_v11 = vadd.f32 %v5760_v57, %v2938_v50  ;;  %v4172_v31 = vpop.f32.mrb[78].mxu0 }
 0xcc8   : > { %v2950_v13 = vadd.f32 %v4172_v31, %v5760_v57  ;;  %v2941_v21 = vpop.f32.mrb[79].mxu0  ;;  %v5842_v2 = vadd.f32 %v2947_v12, %v5739_v61 }
 0xcc9   : > { %v5838_v37 = vadd.f32 %v2939_v11, %v5729_v15  ;;  %v2942_v3 = vadd.f32 %v5760_v57, %v2941_v21 }
 0xcca   : > { %v5850_v33 = vadd.f32 %v2950_v13, %v5743_v52  ;;  %v3013_v15 = vsel %vm899_vm0, %v5842_v2, 0.0 }
 0xccb   : > { %v5845_v53 = vadd.f32 %v2942_v3, %v5732_v19  ;;  %v3007_v1 = vsel %vm899_vm0, %v5838_v37, 0.0  ;;  %v4607_v19 = vmov 0  }
 0xccc   : > { %3008 = vadd.xlane.f32.xlu0 %v3007_v1  ;;  %v3016_v61 = vsel %vm899_vm0, %v5850_v33, 0.0  ;;  %4340 = vset.pattern.permute.xlu1 %v4607_v19 }
 0xccd   : > { %v3010_v46 = vsel %vm899_vm0, %v5845_v53, 0.0  ;;  %4339 = vset.pattern.permute.xlu0 %v4607_v19 }
 0xcce   : > { %3011 = vadd.xlane.f32.xlu1 %v3010_v46 }
 0xcd0   : > { %3014 = vadd.xlane.f32.xlu0 %v3013_v15 }
 0xcd2   : > { %3017 = vadd.xlane.f32.xlu1 %v3016_v61 }
 0xd1e   : > { %v2973_v57 = vpop.xlane.xlu0 %2972 }
 0xd1f   : > { %v3019_v7 = vmul.f32 0.03125, %v2973_v57 }
 0xd20   : > { %v2976_v55 = vpop.xlane.xlu1 %2975 }
 0xd21   : > { %v5859_v52 = vsub.f32 %v5765_v29, %v3019_v7  ;;  %v3020_v44 = vmul.f32 0.03125, %v2976_v55  ;;  %v4608_v7 = vmov 0.0|0.0  }
 0xd22   : > { %v2979_v14 = vpop.xlane.xlu0 %2978  ;;  %4240 = vmatprep.subr.bf16.mxu1 %v4608_v7 }
 0xd23   : > { %v5862_v0 = vsub.f32 %v5773_v16, %v3020_v44  ;;  %v3021_v47 = vmul.f32 0.03125, %v2979_v14  ;;  %v3051_v8 = vmul.f32 %v5859_v52, %v5859_v52 }
 0xd24   : > { %v2982_v40 = vpop.xlane.xlu1 %2981 }
 0xd25   : > { %v5867_v58 = vsub.f32 %v5770_v17, %v3021_v47  ;;  %v3022_v10 = vmul.f32 0.03125, %v2982_v40  ;;  %v3067_v24 = vsel %vm899_vm0, %v3051_v8, 0.0  ;;  %v3052_v29 = vmul.f32 %v5862_v0, %v5862_v0 }
 0xd26   : > { %v2985_v32 = vpop.xlane.xlu0 %2984  ;;  %3068 = vadd.xlane.f32.xlu0 %v3067_v24 }
 0xd27   : > { %v5873_v63 = vsub.f32 %v5778_v62, %v3022_v10  ;;  %v3023_v16 = vmul.f32 0.03125, %v2985_v32  ;;  %v3070_v48 = vsel %vm899_vm0, %v3052_v29, 0.0  ;;  %v3053_v28 = vmul.f32 %v5867_v58, %v5867_v58 }
 0xd28   : > { %3071 = vadd.xlane.f32.xlu1 %v3070_v48  ;;  %v2988_v17 = vpop.xlane.xlu1 %2987 }
 0xd29   : > { %v5879_v22 = vsub.f32 %v5787_v36, %v3023_v16  ;;  %v3024_v54 = vmul.f32 0.03125, %v2988_v17  ;;  %v3073_v30 = vsel %vm899_vm0, %v3053_v28, 0.0  ;;  %v3054_v60 = vmul.f32 %v5873_v63, %v5873_v63 }
 0xd2a   : > { %v2991_v20 = vpop.xlane.xlu0 %2990  ;;  %3074 = vadd.xlane.f32.xlu0 %v3073_v30 }
 0xd2b   : > { %v5885_v62 = vsub.f32 %v5797_v4, %v3024_v54  ;;  %v3025_v49 = vmul.f32 0.03125, %v2991_v20  ;;  %v3076_v6 = vsel %vm899_vm0, %v3054_v60, 0.0  ;;  %v3055_v9 = vmul.f32 %v5879_v22, %v5879_v22 }
 0xd2c   : > { %3077 = vadd.xlane.f32.xlu1 %v3076_v6  ;;  %v2994_v36 = vpop.xlane.xlu1 %2993  ;;  %v4610_v60 = vmov 0.0  }
 0xd2d   : > { %v5891_v23 = vsub.f32 %v5794_v56, %v3025_v49  ;;  %v3026_v51 = vmul.f32 0.03125, %v2994_v36  ;;  %v3079_v34 = vsel %vm899_vm0, %v3055_v9, 0.0  ;;  %v3056_v27 = vmul.f32 %v5885_v62, %v5885_v62  ;;  %4205 = vmatprep.mubr.msk.f32.mxu1 %vm4609_vm2, %v4610_v60  ;;  %4232 = vmatprep.subr.bf16.mxu0 %v4610_v60 }
 0xd2e   : > { %v2997_v38 = vpop.xlane.xlu0 %2996  ;;  %3080 = vadd.xlane.f32.xlu0 %v3079_v34  ;;  %4236 = vmatprep.mubr.msk.bf16.mxu0 %vm4609_vm2, %v4610_v60 }
 0xd2f   : > { %v5897_v4 = vsub.f32 %v5802_v35, %v3026_v51  ;;  %v3027_v25 = vmul.f32 0.03125, %v2997_v38  ;;  %v3082_v43 = vsel %vm899_vm0, %v3056_v27, 0.0  ;;  %v3057_v26 = vmul.f32 %v5891_v23, %v5891_v23 }
 0xd30   : > { %3083 = vadd.xlane.f32.xlu1 %v3082_v43  ;;  %v3000_v56 = vpop.xlane.xlu1 %2999 }
 0xd31   : > { %v5903_v45 = vsub.f32 %v5811_v18, %v3027_v25  ;;  %v3028_v5 = vmul.f32 0.03125, %v3000_v56  ;;  %v3085_v41 = vsel %vm899_vm0, %v3057_v26, 0.0  ;;  %v3058_v50 = vmul.f32 %v5897_v4, %v5897_v4 }
 0xd32   : > { %v3003_v12 = vpop.xlane.xlu0 %3002  ;;  %3086 = vadd.xlane.f32.xlu0 %v3085_v41 }
 0xd33   : > { %v5909_v35 = vsub.f32 %v5821_v39, %v3028_v5  ;;  %v3029_v11 = vmul.f32 0.03125, %v3003_v12  ;;  %v3088_v31 = vsel %vm899_vm0, %v3058_v50, 0.0  ;;  %v3059_v13 = vmul.f32 %v5903_v45, %v5903_v45 }
 0xd34   : > { %3089 = vadd.xlane.f32.xlu1 %v3088_v31  ;;  %v3006_v18 = vpop.xlane.xlu1 %3005 }
 0xd35   : > { %v5915_v21 = vsub.f32 %v5818_v59, %v3029_v11  ;;  %v3030_v3 = vmul.f32 0.03125, %v3006_v18  ;;  %v3091_v1 = vsel %vm899_vm0, %v3059_v13, 0.0  ;;  %v3060_v46 = vmul.f32 %v5909_v35, %v5909_v35 }
 0xd36   : > { %3092 = vadd.xlane.f32.xlu0 %v3091_v1 }
 0xd37   : > { %v5921_v39 = vsub.f32 %v5826_v42, %v3030_v3  ;;  %v3094_v15 = vsel %vm899_vm0, %v3060_v46, 0.0  ;;  %v3061_v61 = vmul.f32 %v5915_v21, %v5915_v21 }
 0xd38   : > { %3095 = vadd.xlane.f32.xlu1 %v3094_v15  ;;  %v5971_v15 = vld [vmem:[%s6114_s16] ss:$0 sm:$0xff] }
 0xd39   : > { %v3097_v19 = vsel %vm899_vm0, %v3061_v61, 0.0  ;;  %v3062_v59 = vmul.f32 %v5921_v39, %v5921_v39 }
 0xd3a   : > { %3098 = vadd.xlane.f32.xlu0 %v3097_v19 }
 0xd3b   : > { %v3100_v57 = vsel %vm899_vm0, %v3062_v59, 0.0 }
 0xd3c   : > { %3101 = vadd.xlane.f32.xlu1 %v3100_v57 }
 0xd59   : > { %v3009_v42 = vpop.xlane.xlu0 %3008 }
 0xd5a   : > { %v3031_v55 = vmul.f32 0.03125, %v3009_v42 }
 0xd5b   : > { %v3012_v44 = vpop.xlane.xlu1 %3011 }
 0xd5c   : > { %v5932_v14 = vsub.f32 %v5838_v37, %v3031_v55  ;;  %v3032_v47 = vmul.f32 0.03125, %v3012_v44 }
 0xd5d   : > { %v3015_v8 = vpop.xlane.xlu0 %3014 }
 0xd5e   : > { %v5935_v40 = vsub.f32 %v5845_v53, %v3032_v47  ;;  %v3033_v10 = vmul.f32 0.03125, %v3015_v8  ;;  %v3063_v24 = vmul.f32 %v5932_v14, %v5932_v14 }
 0xd5f   : > { %v3018_v29 = vpop.xlane.xlu1 %3017 }
 0xd60   : > { %v5940_v32 = vsub.f32 %v5842_v2, %v3033_v10  ;;  %v3034_v16 = vmul.f32 0.03125, %v3018_v29  ;;  %v3103_v48 = vsel %vm899_vm0, %v3063_v24, 0.0  ;;  %v3064_v37 = vmul.f32 %v5935_v40, %v5935_v40  ;;  %v5979_v29 = vld [vmem:[%s6115_s17] ss:$0 sm:$0xff] }
 0xd61   : > { %3104 = vadd.xlane.f32.xlu0 %v3103_v48 }
 0xd62   : > { %v5946_v53 = vsub.f32 %v5850_v33, %v3034_v16  ;;  %v3106_v28 = vsel %vm899_vm0, %v3064_v37, 0.0  ;;  %v3065_v17 = vmul.f32 %v5940_v32, %v5940_v32  ;;  %v3223_v33 = vld [vmem:[%s836_s6] sm:$0xff] }
 0xd63   : > { %3107 = vadd.xlane.f32.xlu1 %v3106_v28 }
 0xd64   : > { %v3109_v54 = vsel %vm899_vm0, %v3065_v17, 0.0  ;;  %v3066_v2 = vmul.f32 %v5946_v53, %v5946_v53 }
 0xd65   : > { %3110 = vadd.xlane.f32.xlu0 %v3109_v54 }
 0xd66   : > { %v3112_v30 = vsel %vm899_vm0, %v3066_v2, 0.0 }
 0xd67   : > { %3113 = vadd.xlane.f32.xlu1 %v3112_v30 }
 0xd7b   : > { %3230 = vperm.xlu0 %4339, %v3223_v33  }
 0xdb3   : > { %v3069_v20 = vpop.xlane.xlu0 %3068 }
 0xdb4   : > { %v3115_v49 = vmul.f32 0.03125, %v3069_v20 }
 0xdb5   : > { %v3072_v6 = vpop.xlane.xlu1 %3071 }
 0xdb6   : > { %v3131_v9 = vadd.f32 1e-05, %v3115_v49  ;;  %v3116_v36 = vmul.f32 0.03125, %v3072_v6 }
 0xdb7   : > { %v3075_v51 = vpop.xlane.xlu0 %3074 }
 0xdb8   : > { %4557 = vrsqrt.f32 %v3131_v9  ;;  %v3132_v34 = vadd.f32 1e-05, %v3116_v36  ;;  %v3117_v27 = vmul.f32 0.03125, %v3075_v51 }
 0xdb9   : > { %v3078_v38 = vpop.xlane.xlu1 %3077 }
 0xdba   : > { %4559 = vrsqrt.f32 %v3132_v34  ;;  %v3133_v25 = vadd.f32 1e-05, %v3117_v27  ;;  %v3118_v43 = vmul.f32 0.03125, %v3078_v38 }
 0xdbb   : > { %v3081_v26 = vpop.xlane.xlu0 %3080 }
 0xdbc   : > { %4561 = vrsqrt.f32 %v3133_v25  ;;  %v3134_v56 = vadd.f32 1e-05, %v3118_v43  ;;  %v3119_v5 = vmul.f32 0.03125, %v3081_v26 }
 0xdbd   : > { %v3084_v41 = vpop.xlane.xlu1 %3083 }
 0xdbe   : > { %4563 = vrsqrt.f32 %v3134_v56  ;;  %v3135_v50 = vadd.f32 1e-05, %v3119_v5  ;;  %v3120_v12 = vmul.f32 0.03125, %v3084_v41 }
 0xdbf   : > { %v3087_v11 = vpop.xlane.xlu0 %3086 }
 0xdc0   : > { %4565 = vrsqrt.f32 %v3135_v50  ;;  %v3136_v31 = vadd.f32 1e-05, %v3120_v12  ;;  %v3121_v13 = vmul.f32 0.03125, %v3087_v11 }
 0xdc1   : > { %v3090_v18 = vpop.xlane.xlu1 %3089 }
 0xdc2   : > { %v4558_v3 = vpop.eup %4557  ;;  %4567 = vrsqrt.f32 %v3136_v31  ;;  %v3137_v1 = vadd.f32 1e-05, %v3121_v13  ;;  %v3122_v46 = vmul.f32 0.03125, %v3090_v18 }
 0xdc3   : > { %v3163_v61 = vmul.f32 %v4558_v3, %v5859_v52  ;;  %v3093_v19 = vpop.xlane.xlu0 %3092 }
 0xdc4   : > { %v4560_v59 = vpop.eup %4559  ;;  %4569 = vrsqrt.f32 %v3137_v1  ;;  %v3138_v57 = vadd.f32 1e-05, %v3122_v46  ;;  %v3123_v42 = vmul.f32 0.03125, %v3093_v19 }
 0xdc5   : > { %v3164_v55 = vmul.f32 %v4560_v59, %v5862_v0  ;;  %v3096_v44 = vpop.xlane.xlu1 %3095  ;;  %v3185_v47 = vmul.f32 %v5971_v15, %v3163_v61 }
 0xdc6   : > { %v4562_v8 = vpop.eup %4561  ;;  %4571 = vrsqrt.f32 %v3138_v57  ;;  %v3139_v10 = vadd.f32 1e-05, %v3123_v42  ;;  %v3124_v24 = vmul.f32 0.03125, %v3096_v44 }
 0xdc7   : > { %v3165_v52 = vmul.f32 %v4562_v8, %v5867_v58  ;;  %v3099_v16 = vpop.xlane.xlu0 %3098  ;;  %v3186_v48 = vmul.f32 %v5971_v15, %v3164_v55  ;;  %v3207_v2 = vadd.f32 %v5979_v29, %v3185_v47 }
 0xdc8   : > { %v4564_v37 = vpop.eup %4563  ;;  %4573 = vrsqrt.f32 %v3139_v10  ;;  %v3140_v0 = vadd.f32 1e-05, %v3124_v24  ;;  %v3125_v28 = vmul.f32 0.03125, %v3099_v16 }
 0xdc9   : > { %v3166_v17 = vmul.f32 %v4564_v37, %v5873_v63  ;;  %v3102_v54 = vpop.xlane.xlu1 %3101  ;;  %v3208_v30 = vadd.f32 %v5979_v29, %v3186_v48  ;;  %v3187_v33 = vmul.f32 %v5971_v15, %v3165_v52 }
 0xdca   : > { %v4566_v20 = vpop.eup %4565  ;;  %4575 = vrsqrt.f32 %v3140_v0  ;;  %v3141_v49 = vadd.f32 1e-05, %v3125_v28  ;;  %v3126_v58 = vmul.f32 0.03125, %v3102_v54 }
 0xdcb   : > { %v3167_v6 = vmul.f32 %v4566_v20, %v5879_v22  ;;  %v4241_v9 = vpack.c.bf16 %v3208_v30, %v3207_v2  ;;  %v3188_v36 = vmul.f32 %v5971_v15, %v3166_v17  ;;  %v3209_v27 = vadd.f32 %v5979_v29, %v3187_v33 }
 0xdcc   : > { %v4568_v51 = vpop.eup %4567  ;;  %4577 = vrsqrt.f32 %v3141_v49  ;;  %v3142_v34 = vadd.f32 1e-05, %v3126_v58  ;;  %v3224_v20 = vlaneseq }
 0xdcd   : > { %v3168_v63 = vmul.f32 %v4568_v51, %v5885_v62  ;;  %4242 = vmatpush3.bf16.msra.mxu1 %v4241_v9  ;;  %v3210_v38 = vadd.f32 %v5979_v29, %v3188_v36  ;;  %v3189_v25 = vmul.f32 %v5971_v15, %v3167_v6 }
 0xdce   : > { %v4570_v43 = vpop.eup %4569  ;;  %4579 = vrsqrt.f32 %v3142_v34  ;;  %4243 = vmatprep.subr.bf16.mxu1 %v4608_v7  ;;  %v3225_v9 = vshrl.u32 %v3224_v20, 7 }
 0xdcf   : > { %v3169_v22 = vmul.f32 %v4570_v43, %v5891_v23  ;;  %v4244_v26 = vpack.c.bf16 %v3210_v38, %v3209_v27  ;;  %v3190_v56 = vmul.f32 %v5971_v15, %v3168_v63  ;;  %v3211_v62 = vadd.f32 %v5979_v29, %v3189_v25 }
 0xdd0   : > { %v4572_v5 = vpop.eup %4571  ;;  %v3228_v25 = vmul.u32 16, %v3225_v9 }
 0xdd1   : > { %v3170_v41 = vmul.f32 %v4572_v5, %v5897_v4  ;;  %4245 = vmatpush3.bf16.msra.mxu1 %v4244_v26  ;;  %v3212_v50 = vadd.f32 %v5979_v29, %v3190_v56  ;;  %v3191_v12 = vmul.f32 %v5971_v15, %v3169_v22 }
 0xdd2   : > { %v4574_v11 = vpop.eup %4573  ;;  %4246 = vmatprep.subr.bf16.mxu1 %v4608_v7 }
 0xdd3   : > { %v3171_v31 = vmul.f32 %v4574_v11, %v5903_v45  ;;  %v4247_v13 = vpack.c.bf16 %v3212_v50, %v3211_v62  ;;  %v3192_v23 = vmul.f32 %v5971_v15, %v3170_v41  ;;  %v3213_v4 = vadd.f32 %v5979_v29, %v3191_v12  ;;  %v4357_v12 = vld [vmem:[%s6116_s18] sm:$0xff]  }
 0xdd4   : > { %v4576_v18 = vpop.eup %4575  ;;  %v3227_v41 = vand.u32 127, %v3224_v20  ;;  %v4611_v11 = vmov 1.0  }
 0xdd5   : > { %v3172_v3 = vmul.f32 %v4576_v18, %v5909_v35  ;;  %4248 = vmatpush3.bf16.msra.mxu1 %v4247_v13  ;;  %v3214_v1 = vadd.f32 %v5979_v29, %v3192_v23  ;;  %v3193_v46 = vmul.f32 %v5971_v15, %v3171_v31  ;;  %v4359_v13 = vld [vmem:[%s6118_s20] sm:$0xff]   ;;  %v4360_v23 = vld [vmem:[%s6118_s20 + $0x8] sm:$0xff]  }
 0xdd6   : > { %v4578_v61 = vpop.eup %4577  ;;  %4249 = vmatprep.subr.bf16.mxu1 %v4608_v7  ;;  %v4363_v18 = vld [vmem:[%s6122_s24] sm:$0xff]  }
 0xdd7   : > { %v3173_v19 = vmul.f32 %v4578_v61, %v5915_v21  ;;  %v4250_v59 = vpack.c.bf16 %v3214_v1, %v3213_v4  ;;  %v3194_v45 = vmul.f32 %v5971_v15, %v3172_v3  ;;  %v3215_v35 = vadd.f32 %v5979_v29, %v3193_v46  ;;  %v3572_v3 = vld [vmem:[%s846_s9] sm:$0xff]  ;;  %4233 = vmatpush3.bf16.msra.mxu0 %v4363_v18 }
 0xdd8   : > { %v4580_v57 = vpop.eup %4579  ;;  %v3579_v4 = vsub.f32 1.0, %v3572_v3  ;;  %3575 = vperm.xlu1 %4340, %v3572_v3   ;;  %4234 = vmatprep.subr.bf16.mxu0 %v4610_v60  ;;  %v3765_v1 = vld [vmem:[%s6117_s19] ss:$0 sm:$0xff] }
 0xdd9   : > { %v3174_v42 = vmul.f32 %v4580_v57, %v5921_v39  ;;  %4251 = vmatpush3.bf16.msra.mxu1 %v4250_v59  ;;  %v3216_v55 = vadd.f32 %v5979_v29, %v3194_v45  ;;  %v3195_v44 = vmul.f32 %v5971_v15, %v3173_v19 }
 0xdda   : > { %4252 = vmatprep.subr.bf16.mxu1 %v4608_v7 }
 0xddb   : > { %v4253_v47 = vpack.c.bf16 %v3216_v55, %v3215_v35  ;;  %v3196_v8 = vmul.f32 %v5971_v15, %v3174_v42  ;;  %v3217_v21 = vadd.f32 %v5979_v29, %v3195_v44  ;;  %v4361_v42 = vld [vmem:[%s6120_s22] sm:$0xff]   ;;  %v4362_v55 = vld [vmem:[%s6120_s22 + $0x8] sm:$0xff]  }
 0xddc   : > { %3582 = vperm.xlu1 %4340, %v3579_v4   ;;  %v4364_v44 = vld [vmem:[%s6122_s24 + $0x8] sm:$0xff]  }
 0xddd   : > { %4254 = vmatpush3.bf16.msra.mxu1 %v4253_v47  ;;  %v3218_v10 = vadd.f32 %v5979_v29, %v3196_v8  ;;  %4235 = vmatpush3.bf16.msra.mxu0 %v4364_v44 }
 0xdde   : > { %4255 = vmatprep.subr.bf16.mxu1 %v4608_v7 }
 0xddf   : > { %v4256_v39 = vpack.c.bf16 %v3218_v10, %v3217_v21 }
 0xde1   : > { %4257 = vmatpush3.bf16.msra.mxu1 %v4256_v39  ;;  %v3773_v39 = vld [vmem:[%s6121_s23] ss:$0 sm:$0xff] }
 0xde2   : > { %4258 = vmatprep.subr.bf16.mxu1 %v4608_v7 }
 0xdee   : > { %v3105_v24 = vpop.xlane.xlu0 %3104 }
 0xdef   : > { %v3127_v52 = vmul.f32 0.03125, %v3105_v24 }
 0xdf0   : > { %v3108_v16 = vpop.xlane.xlu1 %3107 }
 0xdf1   : > { %v3143_v48 = vadd.f32 1e-05, %v3127_v52  ;;  %v3128_v37 = vmul.f32 0.03125, %v3108_v16 }
 0xdf2   : > { %v3111_v0 = vpop.xlane.xlu0 %3110 }
 0xdf3   : > { %4581 = vrsqrt.f32 %v3143_v48  ;;  %v3144_v28 = vadd.f32 1e-05, %v3128_v37  ;;  %v3129_v17 = vmul.f32 0.03125, %v3111_v0 }
 0xdf4   : > { %v3114_v54 = vpop.xlane.xlu1 %3113 }
 0xdf5   : > { %4583 = vrsqrt.f32 %v3144_v28  ;;  %v3145_v2 = vadd.f32 1e-05, %v3129_v17  ;;  %v3130_v30 = vmul.f32 0.03125, %v3114_v54  ;;  %v3769_v28 = vld [vmem:[%s6119_s21] ss:$0 sm:$0xff] }
 0xdf6   : > { %v3777_v54 = vld [vmem:[%s6123_s25] ss:$0 sm:$0xff] }
 0xdf7   : > { %4585 = vrsqrt.f32 %v3145_v2  ;;  %v3146_v33 = vadd.f32 1e-05, %v3130_v30 }
 0xdf9   : > { %4587 = vrsqrt.f32 %v3146_v33 }
 0xdfa   : > { %v3231_v56 = vpop.permute.xlu0 %3230 }
 0xdfb   : > { %v3232_v62 = vadd.s32 %v3231_v56, %v3228_v25 }
 0xdfd   : > { %v4582_v49 = vpop.eup %4581  ;;  %vm3233_vm3 = vcmp.eq.s32.totalorder %v3227_v41, %v3232_v62 }
 0xdfe   : > { %v3175_v58 = vmul.f32 %v4582_v49, %v5932_v14 }
 0xdff   : > { %v4584_v6 = vpop.eup %4583 }
 0xe00   : > { %v3176_v36 = vmul.f32 %v4584_v6, %v5935_v40  ;;  %v3197_v51 = vmul.f32 %v5971_v15, %v3175_v58 }
 0xe01   : > { %v4586_v34 = vpop.eup %4585 }
 0xe02   : > { %v3177_v63 = vmul.f32 %v4586_v34, %v5940_v32  ;;  %v3198_v27 = vmul.f32 %v5971_v15, %v3176_v36  ;;  %v3219_v22 = vadd.f32 %v5979_v29, %v3197_v51 }
 0xe03   : > { %v4588_v38 = vpop.eup %4587 }
 0xe04   : > { %v3178_v43 = vmul.f32 %v4588_v38, %v5946_v53  ;;  %v3220_v26 = vadd.f32 %v5979_v29, %v3198_v27  ;;  %v3199_v14 = vmul.f32 %v5971_v15, %v3177_v63 }
 0xe06   : > { %v4259_v5 = vpack.c.bf16 %v3220_v26, %v3219_v22  ;;  %v3200_v40 = vmul.f32 %v5971_v15, %v3178_v43  ;;  %v3221_v32 = vadd.f32 %v5979_v29, %v3199_v14 }
 0xe08   : > { %4260 = vmatpush3.bf16.msra.mxu1 %v4259_v5  ;;  %v3222_v50 = vadd.f32 %v5979_v29, %v3200_v40 }
 0xe09   : > { %4261 = vmatprep.subr.bf16.mxu1 %v4608_v7  ;;  %v4358_v7 = vld [vmem:[%s6116_s18 + $0x8] sm:$0xff]  }
 0xe0a   : > { %v4262_v53 = vpack.c.bf16 %v3222_v50, %v3221_v32 }
 0xe0c   : > { %4263 = vmatpush3.bf16.msra.mxu1 %v4262_v53 }
 0xe0d   : > { %4208 = vmatprep.subr.bf16.mxu1 %v4610_v60 }
 0xe0f   : > { %4206 = vmatmul.mubr.msk.f32.vlgmr.msra.gmra.mrb[64].mxu1 %vm3233_vm3, %v4611_v11 }
 0xe10   : > { %4209 = vmatpush3.bf16.msra.mxu1 %v4357_v12  ;;  %4212 = vmatprep.mubr.msk.bf16.mxu1 %vm4609_vm2, %v4610_v60 }
 0xe11   : > { %4210 = vmatprep.subr.bf16.mxu1 %v4610_v60 }
 0xe14   : > { %4211 = vmatpush3.bf16.msra.mxu1 %v4358_v7 }
 0xe15   : > { %4216 = vmatprep.subr.bf16.mxu1 %v4610_v60 }
 0xe57   : > { %v3576_v17 = vpop.permute.xlu1 %3575 }
 0xe5b   : > { %v3583_v49 = vpop.permute.xlu1 %3582 }
 0xee2   : > { %v3302_v15 = vpop.f32.mrb[64].mxu1 }
 0xee3   : > { %v3306_v29 = vpack.c.bf16 %v3302_v15, %v3302_v15  ;;  %v4207_v31 = vpop.f32.mrb[65].mxu1 }
 0xee5   : > { %4213 = vmatmul.mubr.msk.bf16.vlgmr.msra.gmra.mrb[68].mxu1 %vm899_vm0, %v3306_v29 }
 0xee6   : > { %4220 = vmatprep.mubr.msk.bf16.mxu1 %vm4609_vm2, %v4610_v60  ;;  %4217 = vmatpush3.bf16.msra.mxu1 %v4359_v13 }
 0xee7   : > { %4218 = vmatprep.subr.bf16.mxu1 %v4610_v60 }
 0xeea   : > { %4219 = vmatpush3.bf16.msra.mxu1 %v4360_v23 }
 0xeeb   : > { %4224 = vmatprep.subr.bf16.mxu1 %v4610_v60 }
 0xfb8   : > { %v3367_v46 = vpop.f32.mrb[68].mxu1 }
 0xfb9   : > { %v3368_v61 = vadd.f32 %v3765_v1, %v3367_v46  ;;  %v4214_v19 = vpop.f32.mrb[69].mxu1 }
 0xfba   : > { %v3370_v59 = vpop.f32.mrb[70].mxu1 }
 0xfbb   : > { %4589 = vtanh.f32 %v3368_v61  ;;  %v4215_v45 = vpop.f32.mrb[71].mxu1 }
 0xfc5   : > { %v4590_v57 = vpop.eup %4589 }
 0xfc6   : > { %v3374_v35 = vpack.c.bf16 %v4590_v57, %v4590_v57 }
 0xfc8   : > { %4221 = vmatmul.mubr.msk.bf16.vlgmr.msra.gmra.mrb[72].mxu1 %vm899_vm0, %v3374_v35 }
 0xfc9   : > { %4225 = vmatpush3.bf16.msra.mxu1 %v4361_v42  ;;  %4228 = vmatprep.mubr.msk.bf16.mxu1 %vm4609_vm2, %v4610_v60 }
 0xfca   : > { %4226 = vmatprep.subr.bf16.mxu1 %v4610_v60 }
 0xfcd   : > { %4227 = vmatpush3.bf16.msra.mxu1 %v4362_v55 }
 0xfd0   : > { %4229 = vmatmul.mubr.msk.bf16.vlgmr.msra.gmra.mrb[76].mxu1 %vm899_vm0, %v3306_v29 }
0x109b   : > { %v3435_v47 = vpop.f32.mrb[72].mxu1 }
0x109c   : > { %v4222_v8 = vpop.f32.mrb[73].mxu1  ;;  %v3436_v2 = vadd.f32 %v3769_v28, %v3435_v47 }
0x109d   : > { %v3438_v21 = vpop.f32.mrb[74].mxu1 }
0x109e   : > { %v4223_v10 = vpop.f32.mrb[75].mxu1  ;;  %v3578_v6 = vmul.f32 %v3576_v17, %v3436_v2 }
0x10a3   : > { %v3498_v24 = vpop.f32.mrb[76].mxu1 }
0x10a4   : > { %v3499_v52 = vadd.f32 %v3773_v39, %v3498_v24  ;;  %v4230_v16 = vpop.f32.mrb[77].mxu1 }
0x10a5   : > { %v3501_v60 = vpop.f32.mrb[78].mxu1 }
0x10a6   : > { %4591 = vtanh.f32 %v3499_v52  ;;  %v4231_v48 = vpop.f32.mrb[79].mxu1 }
0x10b0   : > { %v4592_v37 = vpop.eup %4591 }
0x10b1   : > { %v3505_v0 = vpack.c.bf16 %v4592_v37, %v4592_v37 }
0x10b3   : > { %4237 = vmatmul.mubr.msk.bf16.vlgmr.msra.gmra.mrb[80].mxu0 %vm899_vm0, %v3505_v0 }
0x1186   : > { %v3566_v30 = vpop.f32.mrb[80].mxu0 }
0x1187   : > { %v3567_v33 = vadd.f32 %v3777_v54, %v3566_v30  ;;  %v4238_v20 = vpop.f32.mrb[81].mxu0 }
0x1188   : > { %v3569_v58 = vpop.f32.mrb[82].mxu0 }
0x1189   : > { %v3585_v9 = vmul.f32 %v3583_v49, %v3567_v33  ;;  %v4239_v36 = vpop.f32.mrb[83].mxu0 }
0x118b   : > { %v3586_v51 = vadd.f32 %v3585_v9, %v3578_v6 }
0x118d   : > { %3587 = vst.msk [vmem:[%s850_s0] sm:$0xff] %vm899_vm0, %v3586_v51 }
0x118e PF: > { %s36_s27 = sadd.s32 1, %s4599_s27  }
0x118f   : > { %p33_p6 = scmp.ge.s32.totalorder %s36_s27, 4  }
0x1191   :  { %35 = sbr.rel (!%p33_p6) target bundleno = 12 (0xc), region = 163 }

</bundles_post_ra>
